<compile_context>
chip_gen: v7x
topology: tpu7x:2x2x1
jax: 0.10.0
libtpu: 0.0.40
codegen_flags: <defaults>
</compile_context>

<pallas_src>
import functools

import jax
import jax.numpy as jnp
from jax.experimental import pallas as pl
from jax.experimental.pallas import tpu as pltpu


# ---------------------------------------------------------------------------
# Host-side helpers (plain JAX, outside the kernel)
# ---------------------------------------------------------------------------
def im2col_3x3(x):
    # x: (N, C, H, W) -> (N, H*W, C*9), last-dim index = c*9 + (ki*3 + kj)
    N, C, H, W = x.shape
    xp = jnp.pad(x, ((0, 0), (0, 0), (1, 1), (1, 1)))
    taps = [xp[:, :, i:i + H, j:j + W] for i in range(3) for j in range(3)]
    p = jnp.stack(taps, axis=-1)                 # (N, C, H, W, 9)
    p = p.transpose(0, 2, 3, 1, 4)               # (N, H, W, C, 9)
    return p.reshape(N, H * W, C * 9)


def make_pool_matrix(num_frames, hw):
    # Block-averaging matrix so the per-frame global average pool is an MXU
    # matmul (keeps the XLU free).  pooled = pool @ feat.
    row = jnp.arange(num_frames, dtype=jnp.int32)[:, None]
    col = jnp.arange(num_frames * hw, dtype=jnp.int32)[None, :]
    return jnp.where(col // hw == row, 1.0 / hw, 0.0).astype(jnp.bfloat16)


# ---------------------------------------------------------------------------
# Fused kernel: CNN head + hoisted input projection + unrolled LSTM + classifier
# ---------------------------------------------------------------------------
def _fused_kernel(patch_ref, wc_ref, bc_ref, pool_ref, wfc_ref, bfc_ref,
                  wih_ref, bl_ref, whh_ref, wcls_ref, bcls_ref, out_ref,
                  *, seq_len, batch_size, hidden_dim):
    S, B, Hd = seq_len, batch_size, hidden_dim
    fourH = 4 * Hd

    # ---- CNN head over ALL S*B frames in one shot (bf16 MXU, f32 accum) ----
    feat = jnp.dot(patch_ref[...], wc_ref[...],
                   preferred_element_type=jnp.float32) + bc_ref[...]
    feat = jnp.maximum(feat, 0.0)                                   # (S*B*HW, Cmid)
    pooled = jnp.dot(pool_ref[...], feat.astype(jnp.bfloat16),
                     preferred_element_type=jnp.float32)            # (S*B, Cmid)
    cnn = jnp.dot(pooled, wfc_ref[...],
                  preferred_element_type=jnp.float32) + bfc_ref[...]  # (S*B, D)

    # ---- hoisted LSTM input projection for all timesteps at once ----
    xw = jnp.dot(cnn, wih_ref[...],
                 preferred_element_type=jnp.float32) + bl_ref[...]    # (S*B, 4H)

    # ---- LSTM recurrence, fully unrolled, gate math on full 4H-lane vregs ----
    whh = whh_ref[...]                       # (4H, 4H); rows >= Hd are zero
    lane = jax.lax.broadcasted_iota(jnp.int32, (B, fourH), 1)
    g_mask = (lane >= 2 * Hd) & (lane < 3 * Hd)

    h = jnp.zeros((B, fourH), jnp.float32)   # lanes >= Hd are dead (killed by zero rows)
    c = jnp.zeros((B, fourH), jnp.float32)
    for t in range(S):                       # static unroll: no grid-step overhead
        gates = xw[t * B:(t + 1) * B, :] + jnp.dot(
            h, whh, preferred_element_type=jnp.float32)             # (B, 4H) = [i|f|g|o]
        act = jnp.where(g_mask, jnp.tanh(gates), jax.nn.sigmoid(gates))
        f_al = pltpu.roll(act, shift=3 * Hd, axis=1)   # forget gate  -> lanes [0, Hd)
        g_al = pltpu.roll(act, shift=2 * Hd, axis=1)   # cell cand.   -> lanes [0, Hd)
        o_al = pltpu.roll(act, shift=1 * Hd, axis=1)   # output gate  -> lanes [0, Hd)
        c = f_al * c + act * g_al                      # act holds i in lanes [0, Hd)
        h = o_al * jnp.tanh(c)

    # ---- hidden2class on the last hidden state ----
    logits = jnp.dot(h, wcls_ref[...],
                     preferred_element_type=jnp.float32) + bcls_ref[...]
    out_ref[...] = logits.astype(out_ref.dtype)


def cnn_lstm_forward(x, params, seq_len, batch_size):
    B, S, C, H, W = x.shape
    assert B == batch_size and S == seq_len
    HW = H * W
    K, Cmid = params["wc"].shape
    D = params["wih_t"].shape[0]
    Hd, fourH = params["whh_t"].shape
    NC = params["wcls_t"].shape[1]

    # Frames in (t, b) order: timestep t occupies rows [t*B, (t+1)*B).
    xf = jnp.transpose(x, (1, 0, 2, 3, 4)).reshape(S * B, C, H, W)
    patches = im2col_3x3(xf).reshape(S * B * HW, K).astype(jnp.bfloat16)
    pool = make_pool_matrix(S * B, HW)

    # Zero-pad recurrent / classifier weights to 4H rows so h can be carried as
    # a full (B, 4H) vreg inside the kernel.
    whh_pad = jnp.zeros((fourH, fourH), jnp.float32).at[:Hd].set(params["whh_t"])
    wcls_pad = jnp.zeros((fourH, NC), jnp.float32).at[:Hd].set(params["wcls_t"])

    kernel = functools.partial(_fused_kernel, seq_len=S, batch_size=B,
                               hidden_dim=Hd)
    const = lambda i: (0, 0)
    return pl.pallas_call(
        kernel,
        out_shape=jax.ShapeDtypeStruct((B, NC), jnp.float32),
        grid=(1,),
        in_specs=[
            pl.BlockSpec((S * B * HW, K), const),      # patches (bf16)
            pl.BlockSpec((K, Cmid), const),            # conv weight (bf16)
            pl.BlockSpec((1, Cmid), const),            # conv bias
            pl.BlockSpec((S * B, S * B * HW), const),  # pooling matrix (bf16)
            pl.BlockSpec((Cmid, D), const),            # fc weight
            pl.BlockSpec((1, D), const),               # fc bias
            pl.BlockSpec((D, fourH), const),           # W_ih^T
            pl.BlockSpec((1, fourH), const),           # b_ih + b_hh
            pl.BlockSpec((fourH, fourH), const),       # W_hh^T zero-padded
            pl.BlockSpec((fourH, NC), const),          # W_cls^T zero-padded
            pl.BlockSpec((1, NC), const),              # classifier bias
        ],
        out_specs=pl.BlockSpec((B, NC), const),
        compiler_params=pltpu.CompilerParams(dimension_semantics=("arbitrary",)),
    )(patches, params["wc"], params["bc"], pool, params["wfc"], params["bfc"],
      params["wih_t"], params["b_lstm"], whh_pad, wcls_pad, params["bcls"])


# ---------------------------------------------------------------------------
# Pure-JAX reference (same math / dtypes) for a correctness check.
# ---------------------------------------------------------------------------
def reference_forward(x, params, seq_len, batch_size, hidden_dim):
    B, S, C, H, W = x.shape
    HW = H * W
    Hd = hidden_dim
    xf = jnp.transpose(x, (1, 0, 2, 3, 4)).reshape(S * B, C, H, W)
    patches = im2col_3x3(xf).reshape(S * B * HW, -1).astype(jnp.bfloat16)
    feat = jnp.maximum(
        jnp.dot(patches, params["wc"], preferred_element_type=jnp.float32)
        + params["bc"], 0.0)
    pool = make_pool_matrix(S * B, HW)
    pooled = jnp.dot(pool, feat.astype(jnp.bfloat16),
                     preferred_element_type=jnp.float32)
    cnn = pooled @ params["wfc"] + params["bfc"]      # (S*B, D) in (t, b) order
    seq = cnn.reshape(S, B, -1)
    h = jnp.zeros((B, Hd), jnp.float32)
    c = jnp.zeros((B, Hd), jnp.float32)
    for t in range(S):
        gates = seq[t] @ params["wih_t"] + h @ params["whh_t"] + params["b_lstm"]
        i = jax.nn.sigmoid(gates[:, 0 * Hd:1 * Hd])
        f = jax.nn.sigmoid(gates[:, 1 * Hd:2 * Hd])
        g = jnp.tanh(gates[:, 2 * Hd:3 * Hd])
        o = jax.nn.sigmoid(gates[:, 3 * Hd:4 * Hd])
        c = f * c + i * g
        h = o * jnp.tanh(c)
    return h @ params["wcls_t"] + params["bcls"]


if __name__ == "__main__":
    batch_size = 2
    seq_len = 8
    C_in, H, W = 4, 16, 16
    C_mid = 8                  # stand-in CNN channels
    num_img_features = 128     # output_dim fed to the LSTM
    hidden_dim = 32
    num_classes = 10

    key = jax.random.PRNGKey(0)
    ks = jax.random.split(key, 10)
    sc = 0.1
    conv_w = sc * jax.random.normal(ks[0], (C_mid, C_in, 3, 3), jnp.float32)
    conv_b = sc * jax.random.normal(ks[1], (C_mid,), jnp.float32)
    fc_w = sc * jax.random.normal(ks[2], (num_img_features, C_mid), jnp.float32)
    fc_b = sc * jax.random.normal(ks[3], (num_img_features,), jnp.float32)
    w_ih = sc * jax.random.normal(ks[4], (4 * hidden_dim, num_img_features), jnp.float32)
    w_hh = sc * jax.random.normal(ks[5], (4 * hidden_dim, hidden_dim), jnp.float32)
    b_ih = sc * jax.random.normal(ks[6], (4 * hidden_dim,), jnp.float32)
    b_hh = sc * jax.random.normal(ks[7], (4 * hidden_dim,), jnp.float32)
    w_cls = sc * jax.random.normal(ks[8], (num_classes, hidden_dim), jnp.float32)
    b_cls = sc * jax.random.normal(ks[9], (num_classes,), jnp.float32)

    params = {
        # conv weight as (C_in*9, C_mid) matching im2col layout (c*9 + k); bf16 for MXU
        "wc": conv_w.reshape(C_mid, C_in * 9).T.astype(jnp.bfloat16),
        "bc": conv_b.reshape(1, C_mid),
        "wfc": fc_w.T,                                  # (C_mid, D)
        "bfc": fc_b.reshape(1, num_img_features),
        "wih_t": w_ih.T,                                # (D, 4H)  gate order [i,f,g,o]
        "whh_t": w_hh.T,                                # (Hd, 4H)
        "b_lstm": (b_ih + b_hh).reshape(1, 4 * hidden_dim),
        "wcls_t": w_cls.T,                              # (Hd, num_classes)
        "bcls": b_cls.reshape(1, num_classes),
    }

    x = jax.random.normal(jax.random.PRNGKey(42),
                          (batch_size, seq_len, C_in, H, W), jnp.float32)

    fwd = jax.jit(functools.partial(cnn_lstm_forward,
                                    seq_len=seq_len, batch_size=batch_size))
    out = jax.block_until_ready(fwd(x, params))

    ref = reference_forward(x, params, seq_len, batch_size, hidden_dim)
    assert out.shape == (batch_size, num_classes)
    assert jnp.allclose(out, ref, atol=1e-2, rtol=1e-2), float(jnp.max(jnp.abs(out - ref)))

    print("KERNEL_OK")
</pallas_src>

<mosaic_0001>
module attributes {stable_mosaic.version = 11 : i64} {
  func.func @_fused_kernel(%arg0: i32, %arg1: memref<4096x36xbf16, #tpu.memory_space<vmem>>, %arg2: memref<36x8xbf16, #tpu.memory_space<vmem>>, %arg3: memref<1x8xf32, #tpu.memory_space<vmem>>, %arg4: memref<16x4096xbf16, #tpu.memory_space<vmem>>, %arg5: memref<8x128xf32, #tpu.memory_space<vmem>>, %arg6: memref<1x128xf32, #tpu.memory_space<vmem>>, %arg7: memref<128x128xf32, #tpu.memory_space<vmem>>, %arg8: memref<1x128xf32, #tpu.memory_space<vmem>>, %arg9: memref<128x128xf32, #tpu.memory_space<vmem>>, %arg10: memref<128x10xf32, #tpu.memory_space<vmem>>, %arg11: memref<1x10xf32, #tpu.memory_space<vmem>>, %arg12: memref<2x10xf32, #tpu.memory_space<vmem>>) attributes {dimension_semantics = [#tpu.dimension_semantics<arbitrary>], iteration_bounds = array<i64: 1>, scalar_prefetch = 0 : i64, scratch_operands = 0 : i64, tpu.core_type = #tpu.core_type<tc>, window_params = [{pipeline_mode = #tpu.pipeline_mode<synchronous>, transform_indices = @transform_0, window_bounds = array<i64: 4096, 36>}, {pipeline_mode = #tpu.pipeline_mode<synchronous>, transform_indices = @transform_1, window_bounds = array<i64: 36, 8>}, {pipeline_mode = #tpu.pipeline_mode<synchronous>, transform_indices = @transform_2, window_bounds = array<i64: 1, 8>}, {pipeline_mode = #tpu.pipeline_mode<synchronous>, transform_indices = @transform_3, window_bounds = array<i64: 16, 4096>}, {pipeline_mode = #tpu.pipeline_mode<synchronous>, transform_indices = @transform_4, window_bounds = array<i64: 8, 128>}, {pipeline_mode = #tpu.pipeline_mode<synchronous>, transform_indices = @transform_5, window_bounds = array<i64: 1, 128>}, {pipeline_mode = #tpu.pipeline_mode<synchronous>, transform_indices = @transform_6, window_bounds = array<i64: 128, 128>}, {pipeline_mode = #tpu.pipeline_mode<synchronous>, transform_indices = @transform_7, window_bounds = array<i64: 1, 128>}, {pipeline_mode = #tpu.pipeline_mode<synchronous>, transform_indices = @transform_8, window_bounds = array<i64: 128, 128>}, {pipeline_mode = #tpu.pipeline_mode<synchronous>, transform_indices = @transform_9, window_bounds = array<i64: 128, 10>}, {pipeline_mode = #tpu.pipeline_mode<synchronous>, transform_indices = @transform_10, window_bounds = array<i64: 1, 10>}, {pipeline_mode = #tpu.pipeline_mode<synchronous>, transform_indices = @transform_11, window_bounds = array<i64: 2, 10>}]} {
    %c0 = arith.constant 0 : index
    %c0_0 = arith.constant 0 : index
    %0 = vector.load %arg1[%c0, %c0_0] : memref<4096x36xbf16, #tpu.memory_space<vmem>>, vector<4096x36xbf16>
    %c0_1 = arith.constant 0 : index
    %c0_2 = arith.constant 0 : index
    %1 = vector.load %arg2[%c0_1, %c0_2] : memref<36x8xbf16, #tpu.memory_space<vmem>>, vector<36x8xbf16>
    %cst = arith.constant dense<0.000000e+00> : vector<4096x8xf32>
    %2 = tpu.matmul %0, %1, %cst {dimension_numbers = #tpu.dot_dimension_numbers<[1], [0], [0], [1], [0, 0, 1, 1], [], []>} : vector<4096x36xbf16>, vector<36x8xbf16>, vector<4096x8xf32> -> vector<4096x8xf32>
    %c0_3 = arith.constant 0 : index
    %c0_4 = arith.constant 0 : index
    %3 = vector.load %arg3[%c0_3, %c0_4] : memref<1x8xf32, #tpu.memory_space<vmem>>, vector<1x8xf32>
    %4 = vector.broadcast %3 : vector<1x8xf32> to vector<4096x8xf32>
    %5 = arith.addf %2, %4 : vector<4096x8xf32>
    %cst_5 = arith.constant 0.000000e+00 : f32
    %6 = vector.broadcast %cst_5 : f32 to vector<4096x8xf32>
    %7 = arith.maximumf %5, %6 : vector<4096x8xf32>
    %c0_6 = arith.constant 0 : index
    %c0_7 = arith.constant 0 : index
    %8 = vector.load %arg4[%c0_6, %c0_7] : memref<16x4096xbf16, #tpu.memory_space<vmem>>, vector<16x4096xbf16>
    %9 = arith.truncf %7 : vector<4096x8xf32> to vector<4096x8xbf16>
    %cst_8 = arith.constant dense<0.000000e+00> : vector<16x8xf32>
    %10 = tpu.matmul %8, %9, %cst_8 {dimension_numbers = #tpu.dot_dimension_numbers<[1], [0], [0], [1], [0, 0, 1, 1], [], []>} : vector<16x4096xbf16>, vector<4096x8xbf16>, vector<16x8xf32> -> vector<16x8xf32>
    %c0_9 = arith.constant 0 : index
    %c0_10 = arith.constant 0 : index
    %11 = vector.load %arg5[%c0_9, %c0_10] : memref<8x128xf32, #tpu.memory_space<vmem>>, vector<8x128xf32>
    %cst_11 = arith.constant dense<0.000000e+00> : vector<16x128xf32>
    %12 = tpu.matmul %10, %11, %cst_11 {dimension_numbers = #tpu.dot_dimension_numbers<[1], [0], [0], [1], [0, 0, 1, 1], [], []>} : vector<16x8xf32>, vector<8x128xf32>, vector<16x128xf32> -> vector<16x128xf32>
    %c0_12 = arith.constant 0 : index
    %c0_13 = arith.constant 0 : index
    %13 = vector.load %arg6[%c0_12, %c0_13] : memref<1x128xf32, #tpu.memory_space<vmem>>, vector<1x128xf32>
    %14 = vector.broadcast %13 : vector<1x128xf32> to vector<16x128xf32>
    %15 = arith.addf %12, %14 : vector<16x128xf32>
    %c0_14 = arith.constant 0 : index
    %c0_15 = arith.constant 0 : index
    %16 = vector.load %arg7[%c0_14, %c0_15] : memref<128x128xf32, #tpu.memory_space<vmem>>, vector<128x128xf32>
    %cst_16 = arith.constant dense<0.000000e+00> : vector<16x128xf32>
    %17 = tpu.matmul %15, %16, %cst_16 {dimension_numbers = #tpu.dot_dimension_numbers<[1], [0], [0], [1], [0, 0, 1, 1], [], []>} : vector<16x128xf32>, vector<128x128xf32>, vector<16x128xf32> -> vector<16x128xf32>
    %c0_17 = arith.constant 0 : index
    %c0_18 = arith.constant 0 : index
    %18 = vector.load %arg8[%c0_17, %c0_18] : memref<1x128xf32, #tpu.memory_space<vmem>>, vector<1x128xf32>
    %19 = vector.broadcast %18 : vector<1x128xf32> to vector<16x128xf32>
    %20 = arith.addf %17, %19 : vector<16x128xf32>
    %c0_19 = arith.constant 0 : index
    %c0_20 = arith.constant 0 : index
    %21 = vector.load %arg9[%c0_19, %c0_20] : memref<128x128xf32, #tpu.memory_space<vmem>>, vector<128x128xf32>
    %22 = tpu.iota {dimensions = array<i32: 1>} : vector<2x128xi32>
    %c64_i32 = arith.constant 64 : i32
    %23 = vector.broadcast %c64_i32 : i32 to vector<2x128xi32>
    %24 = arith.cmpi sge, %22, %23 : vector<2x128xi32>
    %c96_i32 = arith.constant 96 : i32
    %25 = vector.broadcast %c96_i32 : i32 to vector<2x128xi32>
    %26 = arith.cmpi slt, %22, %25 : vector<2x128xi32>
    %27 = arith.andi %24, %26 : vector<2x128xi1>
    %cst_21 = arith.constant 0.000000e+00 : f32
    %28 = vector.broadcast %cst_21 : f32 to vector<2x128xf32>
    %cst_22 = arith.constant 0.000000e+00 : f32
    %29 = vector.broadcast %cst_22 : f32 to vector<2x128xf32>
    %30 = vector.extract_strided_slice %20 {offsets = [0, 0], sizes = [2, 128], strides = [1, 1]} : vector<16x128xf32> to vector<2x128xf32>
    %cst_23 = arith.constant dense<0.000000e+00> : vector<2x128xf32>
    %31 = tpu.matmul %28, %21, %cst_23 {dimension_numbers = #tpu.dot_dimension_numbers<[1], [0], [0], [1], [0, 0, 1, 1], [], []>} : vector<2x128xf32>, vector<128x128xf32>, vector<2x128xf32> -> vector<2x128xf32>
    %32 = arith.addf %30, %31 : vector<2x128xf32>
    %33 = math.tanh %32 : vector<2x128xf32>
    %34 = arith.negf %32 : vector<2x128xf32>
    %35 = math.exp %34 : vector<2x128xf32>
    %cst_24 = arith.constant 1.000000e+00 : f32
    %36 = vector.broadcast %cst_24 : f32 to vector<2x128xf32>
    %37 = arith.addf %36, %35 : vector<2x128xf32>
    %38 = arith.divf %36, %37 : vector<2x128xf32>
    %39 = arith.select %27, %33, %38 : vector<2x128xi1>, vector<2x128xf32>
    %c96_i32_25 = arith.constant 96 : i32
    %40 = tpu.dynamic_rotate %39 by %c96_i32_25 dim 1 : vector<2x128xf32>, i32 -> vector<2x128xf32>
    %c64_i32_26 = arith.constant 64 : i32
    %41 = tpu.dynamic_rotate %39 by %c64_i32_26 dim 1 : vector<2x128xf32>, i32 -> vector<2x128xf32>
    %c32_i32 = arith.constant 32 : i32
    %42 = tpu.dynamic_rotate %39 by %c32_i32 dim 1 : vector<2x128xf32>, i32 -> vector<2x128xf32>
    %43 = arith.mulf %40, %29 : vector<2x128xf32>
    %44 = arith.mulf %39, %41 : vector<2x128xf32>
    %45 = arith.addf %43, %44 : vector<2x128xf32>
    %46 = math.tanh %45 : vector<2x128xf32>
    %47 = arith.mulf %42, %46 : vector<2x128xf32>
    %48 = vector.extract_strided_slice %20 {offsets = [2, 0], sizes = [2, 128], strides = [1, 1]} : vector<16x128xf32> to vector<2x128xf32>
    %cst_27 = arith.constant dense<0.000000e+00> : vector<2x128xf32>
    %49 = tpu.matmul %47, %21, %cst_27 {dimension_numbers = #tpu.dot_dimension_numbers<[1], [0], [0], [1], [0, 0, 1, 1], [], []>} : vector<2x128xf32>, vector<128x128xf32>, vector<2x128xf32> -> vector<2x128xf32>
    %50 = arith.addf %48, %49 : vector<2x128xf32>
    %51 = math.tanh %50 : vector<2x128xf32>
    %52 = arith.negf %50 : vector<2x128xf32>
    %53 = math.exp %52 : vector<2x128xf32>
    %cst_28 = arith.constant 1.000000e+00 : f32
    %54 = vector.broadcast %cst_28 : f32 to vector<2x128xf32>
    %55 = arith.addf %54, %53 : vector<2x128xf32>
    %56 = arith.divf %54, %55 : vector<2x128xf32>
    %57 = arith.select %27, %51, %56 : vector<2x128xi1>, vector<2x128xf32>
    %c96_i32_29 = arith.constant 96 : i32
    %58 = tpu.dynamic_rotate %57 by %c96_i32_29 dim 1 : vector<2x128xf32>, i32 -> vector<2x128xf32>
    %c64_i32_30 = arith.constant 64 : i32
    %59 = tpu.dynamic_rotate %57 by %c64_i32_30 dim 1 : vector<2x128xf32>, i32 -> vector<2x128xf32>
    %c32_i32_31 = arith.constant 32 : i32
    %60 = tpu.dynamic_rotate %57 by %c32_i32_31 dim 1 : vector<2x128xf32>, i32 -> vector<2x128xf32>
    %61 = arith.mulf %58, %45 : vector<2x128xf32>
    %62 = arith.mulf %57, %59 : vector<2x128xf32>
    %63 = arith.addf %61, %62 : vector<2x128xf32>
    %64 = math.tanh %63 : vector<2x128xf32>
    %65 = arith.mulf %60, %64 : vector<2x128xf32>
    %66 = vector.extract_strided_slice %20 {offsets = [4, 0], sizes = [2, 128], strides = [1, 1]} : vector<16x128xf32> to vector<2x128xf32>
    %cst_32 = arith.constant dense<0.000000e+00> : vector<2x128xf32>
    %67 = tpu.matmul %65, %21, %cst_32 {dimension_numbers = #tpu.dot_dimension_numbers<[1], [0], [0], [1], [0, 0, 1, 1], [], []>} : vector<2x128xf32>, vector<128x128xf32>, vector<2x128xf32> -> vector<2x128xf32>
    %68 = arith.addf %66, %67 : vector<2x128xf32>
    %69 = math.tanh %68 : vector<2x128xf32>
    %70 = arith.negf %68 : vector<2x128xf32>
    %71 = math.exp %70 : vector<2x128xf32>
    %cst_33 = arith.constant 1.000000e+00 : f32
    %72 = vector.broadcast %cst_33 : f32 to vector<2x128xf32>
    %73 = arith.addf %72, %71 : vector<2x128xf32>
    %74 = arith.divf %72, %73 : vector<2x128xf32>
    %75 = arith.select %27, %69, %74 : vector<2x128xi1>, vector<2x128xf32>
    %c96_i32_34 = arith.constant 96 : i32
    %76 = tpu.dynamic_rotate %75 by %c96_i32_34 dim 1 : vector<2x128xf32>, i32 -> vector<2x128xf32>
    %c64_i32_35 = arith.constant 64 : i32
    %77 = tpu.dynamic_rotate %75 by %c64_i32_35 dim 1 : vector<2x128xf32>, i32 -> vector<2x128xf32>
    %c32_i32_36 = arith.constant 32 : i32
    %78 = tpu.dynamic_rotate %75 by %c32_i32_36 dim 1 : vector<2x128xf32>, i32 -> vector<2x128xf32>
    %79 = arith.mulf %76, %63 : vector<2x128xf32>
    %80 = arith.mulf %75, %77 : vector<2x128xf32>
    %81 = arith.addf %79, %80 : vector<2x128xf32>
    %82 = math.tanh %81 : vector<2x128xf32>
    %83 = arith.mulf %78, %82 : vector<2x128xf32>
    %84 = vector.extract_strided_slice %20 {offsets = [6, 0], sizes = [2, 128], strides = [1, 1]} : vector<16x128xf32> to vector<2x128xf32>
    %cst_37 = arith.constant dense<0.000000e+00> : vector<2x128xf32>
    %85 = tpu.matmul %83, %21, %cst_37 {dimension_numbers = #tpu.dot_dimension_numbers<[1], [0], [0], [1], [0, 0, 1, 1], [], []>} : vector<2x128xf32>, vector<128x128xf32>, vector<2x128xf32> -> vector<2x128xf32>
    %86 = arith.addf %84, %85 : vector<2x128xf32>
    %87 = math.tanh %86 : vector<2x128xf32>
    %88 = arith.negf %86 : vector<2x128xf32>
    %89 = math.exp %88 : vector<2x128xf32>
    %cst_38 = arith.constant 1.000000e+00 : f32
    %90 = vector.broadcast %cst_38 : f32 to vector<2x128xf32>
    %91 = arith.addf %90, %89 : vector<2x128xf32>
    %92 = arith.divf %90, %91 : vector<2x128xf32>
    %93 = arith.select %27, %87, %92 : vector<2x128xi1>, vector<2x128xf32>
    %c96_i32_39 = arith.constant 96 : i32
    %94 = tpu.dynamic_rotate %93 by %c96_i32_39 dim 1 : vector<2x128xf32>, i32 -> vector<2x128xf32>
    %c64_i32_40 = arith.constant 64 : i32
    %95 = tpu.dynamic_rotate %93 by %c64_i32_40 dim 1 : vector<2x128xf32>, i32 -> vector<2x128xf32>
    %c32_i32_41 = arith.constant 32 : i32
    %96 = tpu.dynamic_rotate %93 by %c32_i32_41 dim 1 : vector<2x128xf32>, i32 -> vector<2x128xf32>
    %97 = arith.mulf %94, %81 : vector<2x128xf32>
    %98 = arith.mulf %93, %95 : vector<2x128xf32>
    %99 = arith.addf %97, %98 : vector<2x128xf32>
    %100 = math.tanh %99 : vector<2x128xf32>
    %101 = arith.mulf %96, %100 : vector<2x128xf32>
    %102 = vector.extract_strided_slice %20 {offsets = [8, 0], sizes = [2, 128], strides = [1, 1]} : vector<16x128xf32> to vector<2x128xf32>
    %cst_42 = arith.constant dense<0.000000e+00> : vector<2x128xf32>
    %103 = tpu.matmul %101, %21, %cst_42 {dimension_numbers = #tpu.dot_dimension_numbers<[1], [0], [0], [1], [0, 0, 1, 1], [], []>} : vector<2x128xf32>, vector<128x128xf32>, vector<2x128xf32> -> vector<2x128xf32>
    %104 = arith.addf %102, %103 : vector<2x128xf32>
    %105 = math.tanh %104 : vector<2x128xf32>
    %106 = arith.negf %104 : vector<2x128xf32>
    %107 = math.exp %106 : vector<2x128xf32>
    %cst_43 = arith.constant 1.000000e+00 : f32
    %108 = vector.broadcast %cst_43 : f32 to vector<2x128xf32>
    %109 = arith.addf %108, %107 : vector<2x128xf32>
    %110 = arith.divf %108, %109 : vector<2x128xf32>
    %111 = arith.select %27, %105, %110 : vector<2x128xi1>, vector<2x128xf32>
    %c96_i32_44 = arith.constant 96 : i32
    %112 = tpu.dynamic_rotate %111 by %c96_i32_44 dim 1 : vector<2x128xf32>, i32 -> vector<2x128xf32>
    %c64_i32_45 = arith.constant 64 : i32
    %113 = tpu.dynamic_rotate %111 by %c64_i32_45 dim 1 : vector<2x128xf32>, i32 -> vector<2x128xf32>
    %c32_i32_46 = arith.constant 32 : i32
    %114 = tpu.dynamic_rotate %111 by %c32_i32_46 dim 1 : vector<2x128xf32>, i32 -> vector<2x128xf32>
    %115 = arith.mulf %112, %99 : vector<2x128xf32>
    %116 = arith.mulf %111, %113 : vector<2x128xf32>
    %117 = arith.addf %115, %116 : vector<2x128xf32>
    %118 = math.tanh %117 : vector<2x128xf32>
    %119 = arith.mulf %114, %118 : vector<2x128xf32>
    %120 = vector.extract_strided_slice %20 {offsets = [10, 0], sizes = [2, 128], strides = [1, 1]} : vector<16x128xf32> to vector<2x128xf32>
    %cst_47 = arith.constant dense<0.000000e+00> : vector<2x128xf32>
    %121 = tpu.matmul %119, %21, %cst_47 {dimension_numbers = #tpu.dot_dimension_numbers<[1], [0], [0], [1], [0, 0, 1, 1], [], []>} : vector<2x128xf32>, vector<128x128xf32>, vector<2x128xf32> -> vector<2x128xf32>
    %122 = arith.addf %120, %121 : vector<2x128xf32>
    %123 = math.tanh %122 : vector<2x128xf32>
    %124 = arith.negf %122 : vector<2x128xf32>
    %125 = math.exp %124 : vector<2x128xf32>
    %cst_48 = arith.constant 1.000000e+00 : f32
    %126 = vector.broadcast %cst_48 : f32 to vector<2x128xf32>
    %127 = arith.addf %126, %125 : vector<2x128xf32>
    %128 = arith.divf %126, %127 : vector<2x128xf32>
    %129 = arith.select %27, %123, %128 : vector<2x128xi1>, vector<2x128xf32>
    %c96_i32_49 = arith.constant 96 : i32
    %130 = tpu.dynamic_rotate %129 by %c96_i32_49 dim 1 : vector<2x128xf32>, i32 -> vector<2x128xf32>
    %c64_i32_50 = arith.constant 64 : i32
    %131 = tpu.dynamic_rotate %129 by %c64_i32_50 dim 1 : vector<2x128xf32>, i32 -> vector<2x128xf32>
    %c32_i32_51 = arith.constant 32 : i32
    %132 = tpu.dynamic_rotate %129 by %c32_i32_51 dim 1 : vector<2x128xf32>, i32 -> vector<2x128xf32>
    %133 = arith.mulf %130, %117 : vector<2x128xf32>
    %134 = arith.mulf %129, %131 : vector<2x128xf32>
    %135 = arith.addf %133, %134 : vector<2x128xf32>
    %136 = math.tanh %135 : vector<2x128xf32>
    %137 = arith.mulf %132, %136 : vector<2x128xf32>
    %138 = vector.extract_strided_slice %20 {offsets = [12, 0], sizes = [2, 128], strides = [1, 1]} : vector<16x128xf32> to vector<2x128xf32>
    %cst_52 = arith.constant dense<0.000000e+00> : vector<2x128xf32>
    %139 = tpu.matmul %137, %21, %cst_52 {dimension_numbers = #tpu.dot_dimension_numbers<[1], [0], [0], [1], [0, 0, 1, 1], [], []>} : vector<2x128xf32>, vector<128x128xf32>, vector<2x128xf32> -> vector<2x128xf32>
    %140 = arith.addf %138, %139 : vector<2x128xf32>
    %141 = math.tanh %140 : vector<2x128xf32>
    %142 = arith.negf %140 : vector<2x128xf32>
    %143 = math.exp %142 : vector<2x128xf32>
    %cst_53 = arith.constant 1.000000e+00 : f32
    %144 = vector.broadcast %cst_53 : f32 to vector<2x128xf32>
    %145 = arith.addf %144, %143 : vector<2x128xf32>
    %146 = arith.divf %144, %145 : vector<2x128xf32>
    %147 = arith.select %27, %141, %146 : vector<2x128xi1>, vector<2x128xf32>
    %c96_i32_54 = arith.constant 96 : i32
    %148 = tpu.dynamic_rotate %147 by %c96_i32_54 dim 1 : vector<2x128xf32>, i32 -> vector<2x128xf32>
    %c64_i32_55 = arith.constant 64 : i32
    %149 = tpu.dynamic_rotate %147 by %c64_i32_55 dim 1 : vector<2x128xf32>, i32 -> vector<2x128xf32>
    %c32_i32_56 = arith.constant 32 : i32
    %150 = tpu.dynamic_rotate %147 by %c32_i32_56 dim 1 : vector<2x128xf32>, i32 -> vector<2x128xf32>
    %151 = arith.mulf %148, %135 : vector<2x128xf32>
    %152 = arith.mulf %147, %149 : vector<2x128xf32>
    %153 = arith.addf %151, %152 : vector<2x128xf32>
    %154 = math.tanh %153 : vector<2x128xf32>
    %155 = arith.mulf %150, %154 : vector<2x128xf32>
    %156 = vector.extract_strided_slice %20 {offsets = [14, 0], sizes = [2, 128], strides = [1, 1]} : vector<16x128xf32> to vector<2x128xf32>
    %cst_57 = arith.constant dense<0.000000e+00> : vector<2x128xf32>
    %157 = tpu.matmul %155, %21, %cst_57 {dimension_numbers = #tpu.dot_dimension_numbers<[1], [0], [0], [1], [0, 0, 1, 1], [], []>} : vector<2x128xf32>, vector<128x128xf32>, vector<2x128xf32> -> vector<2x128xf32>
    %158 = arith.addf %156, %157 : vector<2x128xf32>
    %159 = math.tanh %158 : vector<2x128xf32>
    %160 = arith.negf %158 : vector<2x128xf32>
    %161 = math.exp %160 : vector<2x128xf32>
    %cst_58 = arith.constant 1.000000e+00 : f32
    %162 = vector.broadcast %cst_58 : f32 to vector<2x128xf32>
    %163 = arith.addf %162, %161 : vector<2x128xf32>
    %164 = arith.divf %162, %163 : vector<2x128xf32>
    %165 = arith.select %27, %159, %164 : vector<2x128xi1>, vector<2x128xf32>
    %c96_i32_59 = arith.constant 96 : i32
    %166 = tpu.dynamic_rotate %165 by %c96_i32_59 dim 1 : vector<2x128xf32>, i32 -> vector<2x128xf32>
    %c64_i32_60 = arith.constant 64 : i32
    %167 = tpu.dynamic_rotate %165 by %c64_i32_60 dim 1 : vector<2x128xf32>, i32 -> vector<2x128xf32>
    %c32_i32_61 = arith.constant 32 : i32
    %168 = tpu.dynamic_rotate %165 by %c32_i32_61 dim 1 : vector<2x128xf32>, i32 -> vector<2x128xf32>
    %169 = arith.mulf %166, %153 : vector<2x128xf32>
    %170 = arith.mulf %165, %167 : vector<2x128xf32>
    %171 = arith.addf %169, %170 : vector<2x128xf32>
    %172 = math.tanh %171 : vector<2x128xf32>
    %173 = arith.mulf %168, %172 : vector<2x128xf32>
    %c0_62 = arith.constant 0 : index
    %c0_63 = arith.constant 0 : index
    %174 = vector.load %arg10[%c0_62, %c0_63] : memref<128x10xf32, #tpu.memory_space<vmem>>, vector<128x10xf32>
    %cst_64 = arith.constant dense<0.000000e+00> : vector<2x10xf32>
    %175 = tpu.matmul %173, %174, %cst_64 {dimension_numbers = #tpu.dot_dimension_numbers<[1], [0], [0], [1], [0, 0, 1, 1], [], []>} : vector<2x128xf32>, vector<128x10xf32>, vector<2x10xf32> -> vector<2x10xf32>
    %c0_65 = arith.constant 0 : index
    %c0_66 = arith.constant 0 : index
    %176 = vector.load %arg11[%c0_65, %c0_66] : memref<1x10xf32, #tpu.memory_space<vmem>>, vector<1x10xf32>
    %177 = vector.broadcast %176 : vector<1x10xf32> to vector<2x10xf32>
    %178 = arith.addf %175, %177 : vector<2x10xf32>
    %c0_67 = arith.constant 0 : index
    %c0_68 = arith.constant 0 : index
    %179 = vector.load %arg12[%c0_67, %c0_68] : memref<2x10xf32, #tpu.memory_space<vmem>>, vector<2x10xf32>
    tpu.vector_store %arg12[%c0_67, %c0_68], %178 {strides = array<i32>} : memref<2x10xf32, #tpu.memory_space<vmem>>, vector<2x10xf32>,
    return
  }
  func.func @transform_0(%arg0: i32) -> (i32, i32) {
    %c0_i32 = arith.constant 0 : i32
    %c0_i32_0 = arith.constant 0 : i32
    %c0_i32_1 = arith.constant 0 : i32
    return %c0_i32, %c0_i32_0 : i32, i32
  }
  func.func @transform_1(%arg0: i32) -> (i32, i32) {
    %c0_i32 = arith.constant 0 : i32
    %c0_i32_0 = arith.constant 0 : i32
    %c0_i32_1 = arith.constant 0 : i32
    return %c0_i32, %c0_i32_0 : i32, i32
  }
  func.func @transform_2(%arg0: i32) -> (i32, i32) {
    %c0_i32 = arith.constant 0 : i32
    %c0_i32_0 = arith.constant 0 : i32
    %c0_i32_1 = arith.constant 0 : i32
    return %c0_i32, %c0_i32_0 : i32, i32
  }
  func.func @transform_3(%arg0: i32) -> (i32, i32) {
    %c0_i32 = arith.constant 0 : i32
    %c0_i32_0 = arith.constant 0 : i32
    %c0_i32_1 = arith.constant 0 : i32
    return %c0_i32, %c0_i32_0 : i32, i32
  }
  func.func @transform_4(%arg0: i32) -> (i32, i32) {
    %c0_i32 = arith.constant 0 : i32
    %c0_i32_0 = arith.constant 0 : i32
    %c0_i32_1 = arith.constant 0 : i32
    return %c0_i32, %c0_i32_0 : i32, i32
  }
  func.func @transform_5(%arg0: i32) -> (i32, i32) {
    %c0_i32 = arith.constant 0 : i32
    %c0_i32_0 = arith.constant 0 : i32
    %c0_i32_1 = arith.constant 0 : i32
    return %c0_i32, %c0_i32_0 : i32, i32
  }
  func.func @transform_6(%arg0: i32) -> (i32, i32) {
    %c0_i32 = arith.constant 0 : i32
    %c0_i32_0 = arith.constant 0 : i32
    %c0_i32_1 = arith.constant 0 : i32
    return %c0_i32, %c0_i32_0 : i32, i32
  }
  func.func @transform_7(%arg0: i32) -> (i32, i32) {
    %c0_i32 = arith.constant 0 : i32
    %c0_i32_0 = arith.constant 0 : i32
    %c0_i32_1 = arith.constant 0 : i32
    return %c0_i32, %c0_i32_0 : i32, i32
  }
  func.func @transform_8(%arg0: i32) -> (i32, i32) {
    %c0_i32 = arith.constant 0 : i32
    %c0_i32_0 = arith.constant 0 : i32
    %c0_i32_1 = arith.constant 0 : i32
    return %c0_i32, %c0_i32_0 : i32, i32
  }
  func.func @transform_9(%arg0: i32) -> (i32, i32) {
    %c0_i32 = arith.constant 0 : i32
    %c0_i32_0 = arith.constant 0 : i32
    %c0_i32_1 = arith.constant 0 : i32
    return %c0_i32, %c0_i32_0 : i32, i32
  }
  func.func @transform_10(%arg0: i32) -> (i32, i32) {
    %c0_i32 = arith.constant 0 : i32
    %c0_i32_0 = arith.constant 0 : i32
    %c0_i32_1 = arith.constant 0 : i32
    return %c0_i32, %c0_i32_0 : i32, i32
  }
  func.func @transform_11(%arg0: i32) -> (i32, i32) {
    %c0_i32 = arith.constant 0 : i32
    %c0_i32_0 = arith.constant 0 : i32
    %c0_i32_1 = arith.constant 0 : i32
    return %c0_i32, %c0_i32_0 : i32, i32
  }
}

</mosaic_0001>

<bundles_post_ra>
// kernel: cnn_lstm_forward.1
= control target key start
LH: loop header
LB: loop body
LE: loop exit
PB: predicated region body
PF: predicated region fallthrough
CT: control target
= control target key end

     0   :  { %vm1859_vm0 = vcmask 293888   ;;  %vm2628_vm1 = vcmask 1041408   ;;  %s12977_s0 = inlined_call_operand.vmem [shape: bf16[4096,36], index: 0, kind: input, shape index: {}]   ;;  %s12978_s1 = inlined_call_operand.vmem [shape: bf16[36,8], index: 1, kind: input, shape index: {}]   ;;  %s12979_s2 = inlined_call_operand.vmem [shape: f32[1,8], index: 2, kind: input, shape index: {}]   ;;  %s12980_s3 = inlined_call_operand.vmem [shape: bf16[16,4096], index: 3, kind: input, shape index: {}]   ;;  %s12981_s4 = inlined_call_operand.vmem [shape: f32[8,128], index: 4, kind: input, shape index: {}]   ;;  %s12982_s5 = inlined_call_operand.vmem [shape: f32[1,128], index: 5, kind: input, shape index: {}]   ;;  %s12983_s6 = inlined_call_operand.vmem [shape: f32[128,128], index: 6, kind: input, shape index: {}]   ;;  %s12984_s7 = inlined_call_operand.vmem [shape: f32[1,128], index: 7, kind: input, shape index: {}]   ;;  %s12985_s8 = inlined_call_operand.vmem [shape: f32[128,128], index: 8, kind: input, shape index: {}]   ;;  %s12986_s9 = inlined_call_operand.vmem [shape: f32[128,10], index: 9, kind: input, shape index: {}]   ;;  %s12987_s10 = inlined_call_operand.vmem [shape: f32[1,10], index: 10, kind: input, shape index: {}]   ;;  %s12988_s11 = inlined_call_operand.hbm [shape: f32[2,10], index: 11, kind: output, shape index: {}]  }
   0x1   :  { %v9921_v0 = vld [vmem:[%s12978_s1] sm:$0xff]   ;;  %v9922_v1 = vld [vmem:[%s12978_s1 + $0x8] sm:$0xff]   ;;  %v9923_v2 = vld [vmem:[%s12978_s1 + $0x10] ss:$0 sps:$4 sm:$0x33]  }
   0x2   :  { %8785 = vmatprep.subr.bf16.mxu0 %v9921_v0  ;;  %v9924_v3 = vld [vmem:[%s12977_s0] sm:$0xff]   ;;  %9906 = vmatprep.subr.bf16.mxu1 %v9921_v0  ;;  %v2630_v4 = vsel %vm2628_vm1, %v9923_v2, 0  ;;  %v9925_v5 = vld [vmem:[%s12977_s0 + $0x8] sm:$0xff]   ;;  %v9926_v6 = vld [vmem:[%s12977_s0 + $0x10] sm:$0xff]  }
   0x3   :  { %8786 = vmatpush3.bf16.msra.mxu0 %v9921_v0  ;;  %9909 = vmatpush3.bf16.msra.mxu1 %v9921_v0  ;;  %v9927_v7 = vld [vmem:[%s12977_s0 + $0x18] sm:$0xff]   ;;  %v9928_v8 = vld [vmem:[%s12977_s0 + $0x20] sm:$0xff]   ;;  %v9929_v9 = vld [vmem:[%s12977_s0 + $0x28] sm:$0xff]  }
   0x4   :  { %8787 = vmatprep.subr.bf16.mxu0 %v9922_v1  ;;  %8791 = vmatprep.mubr.msk.bf16.mxu0 %vm1859_vm0, %v9924_v3  ;;  %v9930_v10 = vld [vmem:[%s12977_s0 + $0x30] sm:$0xff]   ;;  %v9931_v11 = vld [vmem:[%s12977_s0 + $0x38] sm:$0xff]   ;;  %v9932_v12 = vld [vmem:[%s12977_s0 + $0x40] sm:$0xff]  }
   0x5   :  { %9907 = vmatprep.subr.bf16.mxu1 %v9922_v1  ;;  %v9933_v13 = vld [vmem:[%s12977_s0 + $0x48] sm:$0xff]   ;;  %v9934_v14 = vld [vmem:[%s12977_s0 + $0x50] sm:$0xff]   ;;  %v9935_v15 = vld [vmem:[%s12977_s0 + $0x58] sm:$0xff]  }
   0x6   :  { %v9936_v16 = vld [vmem:[%s12977_s0 + $0x60] sm:$0xff]   ;;  %v9937_v17 = vld [vmem:[%s12977_s0 + $0x68] sm:$0xff]   ;;  %v9938_v18 = vld [vmem:[%s12977_s0 + $0x70] sm:$0xff]  }
   0x7   :  { %8788 = vmatpush3.bf16.msra.mxu0 %v9922_v1  ;;  %9910 = vmatpush3.bf16.msra.mxu1 %v9922_v1  ;;  %v9939_v19 = vld [vmem:[%s12977_s0 + $0x78] sm:$0xff]   ;;  %v9940_v20 = vld [vmem:[%s12977_s0 + $0x80] sm:$0xff]   ;;  %v9941_v21 = vld [vmem:[%s12977_s0 + $0x88] sm:$0xff]  }
   0x8   :  { %9912 = vmatprep.subr.msk.bf16.mxu0 %vm2628_vm1, %v9923_v2  ;;  %9913 = vmatprep.subr.msk.bf16.mxu1 %vm2628_vm1, %v9923_v2  ;;  %v9942_v22 = vld [vmem:[%s12977_s0 + $0x90] sm:$0xff]   ;;  %v9943_v23 = vld [vmem:[%s12977_s0 + $0x98] sm:$0xff]   ;;  %v9944_v24 = vld [vmem:[%s12977_s0 + $0xa0] sm:$0xff]  }
   0x9   :  { %v9945_v25 = vld [vmem:[%s12977_s0 + $0xa8] sm:$0xff]   ;;  %v9946_v26 = vld [vmem:[%s12977_s0 + $0xb0] sm:$0xff]   ;;  %v9947_v27 = vld [vmem:[%s12977_s0 + $0xb8] sm:$0xff]  }
   0xa   :  { %v9978_v28 = vld [vmem:[%s12977_s0 + $0x730] sm:$0xff]   ;;  %v9979_v29 = vld [vmem:[%s12977_s0 + $0x738] sm:$0xff]   ;;  %v9948_v30 = vld [vmem:[%s12977_s0 + $0xc0] sm:$0xff]  }
   0xb   :  { %8790 = vmatpush3.bf16.msra.mxu0 %v2630_v4  ;;  %9911 = vmatpush3.bf16.msra.mxu1 %v2630_v4  ;;  %v9949_v31 = vld [vmem:[%s12977_s0 + $0xc8] sm:$0xff]   ;;  %v9982_v32 = vld [vmem:[%s12977_s0 + $0x740] sm:$0xff]   ;;  %v9950_v34 = vld [vmem:[%s12977_s0 + $0xd0] sm:$0xff]  }
   0xc   :  { %9251 = vmatprep.mubr.msk.bf16.mxu1 %vm1859_vm0, %v9978_v28  ;;  %v9983_v33 = vld [vmem:[%s12977_s0 + $0x748] sm:$0xff]   ;;  %v9951_v35 = vld [vmem:[%s12977_s0 + $0xd8] sm:$0xff]   ;;  %v9986_v36 = vld [vmem:[%s12977_s0 + $0x750] sm:$0xff]  }
   0xd   :  { %v9987_v37 = vld [vmem:[%s12977_s0 + $0x758] sm:$0xff]   ;;  %v9952_v38 = vld [vmem:[%s12977_s0 + $0xe0] sm:$0xff]   ;;  %v9953_v39 = vld [vmem:[%s12977_s0 + $0xe8] sm:$0xff]  }
   0xe   :  { %8792 = vmatmul.mubr.msk.bf16.vlgmr.msra.gmra.mrb[0].mxu0 %vm1859_vm0, %v9925_v5  ;;  %9252 = vmatmul.mubr.msk.bf16.vlgmr.msra.gmra.mrb[0].mxu1 %vm1859_vm0, %v9979_v29  ;;  %v9990_v40 = vld [vmem:[%s12977_s0 + $0x760] sm:$0xff]   ;;  %v9991_v41 = vld [vmem:[%s12977_s0 + $0x768] sm:$0xff]   ;;  %v9954_v42 = vld [vmem:[%s12977_s0 + $0xf0] sm:$0xff]  }
   0xf   :  { %8795 = vmatprep.mubr.msk.bf16.mxu0 %vm1859_vm0, %v9926_v6  ;;  %9255 = vmatprep.mubr.msk.bf16.mxu1 %vm1859_vm0, %v9982_v32  ;;  %v9955_v43 = vld [vmem:[%s12977_s0 + $0xf8] sm:$0xff]   ;;  %v9994_v44 = vld [vmem:[%s12977_s0 + $0x770] sm:$0xff]   ;;  %v9956_v46 = vld [vmem:[%s12977_s0 + $0x100] sm:$0xff]  }
  0x10   :  { %v9995_v45 = vld [vmem:[%s12977_s0 + $0x778] sm:$0xff]   ;;  %v9957_v47 = vld [vmem:[%s12977_s0 + $0x108] sm:$0xff]   ;;  %v9998_v48 = vld [vmem:[%s12977_s0 + $0x780] sm:$0xff]  }
  0x11   :  { %v9999_v49 = vld [vmem:[%s12977_s0 + $0x788] sm:$0xff]   ;;  %v9958_v50 = vld [vmem:[%s12977_s0 + $0x110] sm:$0xff]   ;;  %v9959_v51 = vld [vmem:[%s12977_s0 + $0x118] sm:$0xff]  }
  0x12   :  { %v10002_v52 = vld [vmem:[%s12977_s0 + $0x790] sm:$0xff]   ;;  %v10003_v53 = vld [vmem:[%s12977_s0 + $0x798] sm:$0xff]   ;;  %v9960_v54 = vld [vmem:[%s12977_s0 + $0x120] sm:$0xff]  }
  0x13   :  { %v9961_v55 = vld [vmem:[%s12977_s0 + $0x128] sm:$0xff]   ;;  %v10006_v56 = vld [vmem:[%s12977_s0 + $0x7a0] sm:$0xff]   ;;  %v9962_v58 = vld [vmem:[%s12977_s0 + $0x130] sm:$0xff]  }
  0x14   :  { %v10007_v57 = vld [vmem:[%s12977_s0 + $0x7a8] sm:$0xff]   ;;  %v9963_v59 = vld [vmem:[%s12977_s0 + $0x138] sm:$0xff]   ;;  %v10010_v60 = vld [vmem:[%s12977_s0 + $0x7b0] sm:$0xff]  }
  0x15   :  { %v10011_v61 = vld [vmem:[%s12977_s0 + $0x7b8] sm:$0xff]   ;;  %v9964_v62 = vld [vmem:[%s12977_s0 + $0x140] sm:$0xff]   ;;  %v9965_v63 = vld [vmem:[%s12977_s0 + $0x148] sm:$0xff]  }
  0x16   :  { %8796 = vmatmul.mubr.msk.bf16.gmra.mrb[4].mxu0 %vm1859_vm0, %v9927_v7  ;;  %9256 = vmatmul.mubr.msk.bf16.gmra.mrb[4].mxu1 %vm1859_vm0, %v9983_v33  ;;  %v10014_v0 = vld [vmem:[%s12977_s0 + $0x7c0] sm:$0xff]   ;;  %v10015_v1 = vld [vmem:[%s12977_s0 + $0x7c8] sm:$0xff]   ;;  %v9966_v2 = vld [vmem:[%s12977_s0 + $0x150] sm:$0xff]  }
  0x17   :  { %8799 = vmatprep.mubr.msk.bf16.mxu0 %vm1859_vm0, %v9928_v8  ;;  %9259 = vmatprep.mubr.msk.bf16.mxu1 %vm1859_vm0, %v9986_v36  ;;  %v9967_v3 = vld [vmem:[%s12977_s0 + $0x158] sm:$0xff]   ;;  %v10018_v4 = vld [vmem:[%s12977_s0 + $0x7d0] sm:$0xff]   ;;  %v9968_v6 = vld [vmem:[%s12977_s0 + $0x160] sm:$0xff]  }
  0x18   :  { %v10019_v5 = vld [vmem:[%s12977_s0 + $0x7d8] sm:$0xff]   ;;  %v9969_v7 = vld [vmem:[%s12977_s0 + $0x168] sm:$0xff]   ;;  %v10022_v8 = vld [vmem:[%s12977_s0 + $0x7e0] sm:$0xff]  }
  0x1e   :  { %8800 = vmatmul.mubr.msk.bf16.gmra.mrb[8].mxu0 %vm1859_vm0, %v9929_v9  ;;  %9260 = vmatmul.mubr.msk.bf16.gmra.mrb[8].mxu1 %vm1859_vm0, %v9987_v37  ;;  %v10023_v9 = vld [vmem:[%s12977_s0 + $0x7e8] sm:$0xff]  }
  0x1f   :  { %8803 = vmatprep.mubr.msk.bf16.mxu0 %vm1859_vm0, %v9930_v10  ;;  %9263 = vmatprep.mubr.msk.bf16.mxu1 %vm1859_vm0, %v9990_v40  ;;  %v9970_v10 = vld [vmem:[%s12977_s0 + $0x170] sm:$0xff]  }
  0x26   :  { %8804 = vmatmul.mubr.msk.bf16.gmra.mrb[12].mxu0 %vm1859_vm0, %v9931_v11  ;;  %9264 = vmatmul.mubr.msk.bf16.gmra.mrb[12].mxu1 %vm1859_vm0, %v9991_v41  ;;  %v9971_v11 = vld [vmem:[%s12977_s0 + $0x178] sm:$0xff]  }
  0x27   :  { %8807 = vmatprep.mubr.msk.bf16.mxu0 %vm1859_vm0, %v9932_v12  ;;  %9267 = vmatprep.mubr.msk.bf16.mxu1 %vm1859_vm0, %v9994_v44  ;;  %v10026_v12 = vld [vmem:[%s12977_s0 + $0x7f0] sm:$0xff]  }
  0x2e   :  { %8808 = vmatmul.mubr.msk.bf16.gmra.mrb[16].mxu0 %vm1859_vm0, %v9933_v13  ;;  %9268 = vmatmul.mubr.msk.bf16.gmra.mrb[16].mxu1 %vm1859_vm0, %v9995_v45  ;;  %v10027_v13 = vld [vmem:[%s12977_s0 + $0x7f8] sm:$0xff]  }
  0x2f   :  { %8811 = vmatprep.mubr.msk.bf16.mxu0 %vm1859_vm0, %v9934_v14  ;;  %9271 = vmatprep.mubr.msk.bf16.mxu1 %vm1859_vm0, %v9998_v48  ;;  %v9972_v14 = vld [vmem:[%s12977_s0 + $0x180] sm:$0xff]  }
  0x36   :  { %8812 = vmatmul.mubr.msk.bf16.gmra.mrb[20].mxu0 %vm1859_vm0, %v9935_v15  ;;  %9272 = vmatmul.mubr.msk.bf16.gmra.mrb[20].mxu1 %vm1859_vm0, %v9999_v49  ;;  %v9973_v15 = vld [vmem:[%s12977_s0 + $0x188] sm:$0xff]  }
  0x37   :  { %8815 = vmatprep.mubr.msk.bf16.mxu0 %vm1859_vm0, %v9936_v16  ;;  %9275 = vmatprep.mubr.msk.bf16.mxu1 %vm1859_vm0, %v10002_v52  ;;  %v10654_v16 = vld [vmem:[%s12980_s3] sm:$0xff] }
  0x3e   :  { %8816 = vmatmul.mubr.msk.bf16.gmra.mrb[24].mxu0 %vm1859_vm0, %v9937_v17  ;;  %9276 = vmatmul.mubr.msk.bf16.gmra.mrb[24].mxu1 %vm1859_vm0, %v10003_v53  ;;  %v10659_v17 = vld [vmem:[%s12980_s3 + $0x80] sm:$0xff] }
  0x3f   :  { %8819 = vmatprep.mubr.msk.bf16.mxu0 %vm1859_vm0, %v9938_v18  ;;  %9279 = vmatprep.mubr.msk.bf16.mxu1 %vm1859_vm0, %v10006_v56  ;;  %v7956_v18 = vcombine.high %v10654_v16, %v10659_v17 }
  0x46   :  { %8820 = vmatmul.mubr.msk.bf16.gmra.mrb[28].mxu0 %vm1859_vm0, %v9939_v19  ;;  %9280 = vmatmul.mubr.msk.bf16.gmra.mrb[28].mxu1 %vm1859_vm0, %v10007_v57  ;;  %v7955_v19 = vcombine.low %v10654_v16, %v10659_v17 }
  0x47   :  { %8823 = vmatprep.mubr.msk.bf16.mxu0 %vm1859_vm0, %v9940_v20  ;;  %9283 = vmatprep.mubr.msk.bf16.mxu1 %vm1859_vm0, %v10010_v60  ;;  %v9974_v20 = vld [vmem:[%s12977_s0 + $0x190] sm:$0xff]  }
  0x4e   :  { %8824 = vmatmul.mubr.msk.bf16.gmra.mrb[32].mxu0 %vm1859_vm0, %v9941_v21  ;;  %9284 = vmatmul.mubr.msk.bf16.gmra.mrb[32].mxu1 %vm1859_vm0, %v10011_v61  ;;  %v9975_v21 = vld [vmem:[%s12977_s0 + $0x198] sm:$0xff]  }
  0x4f   :  { %8827 = vmatprep.mubr.msk.bf16.mxu0 %vm1859_vm0, %v9942_v22  ;;  %9287 = vmatprep.mubr.msk.bf16.mxu1 %vm1859_vm0, %v10014_v0 }
  0x56   :  { %8828 = vmatmul.mubr.msk.bf16.gmra.mrb[36].mxu0 %vm1859_vm0, %v9943_v23  ;;  %9288 = vmatmul.mubr.msk.bf16.gmra.mrb[36].mxu1 %vm1859_vm0, %v10015_v1 }
  0x57   :  { %8831 = vmatprep.mubr.msk.bf16.mxu0 %vm1859_vm0, %v9944_v24  ;;  %9291 = vmatprep.mubr.msk.bf16.mxu1 %vm1859_vm0, %v10018_v4 }
  0x5e   :  { %8832 = vmatmul.mubr.msk.bf16.gmra.mrb[40].mxu0 %vm1859_vm0, %v9945_v25  ;;  %9292 = vmatmul.mubr.msk.bf16.gmra.mrb[40].mxu1 %vm1859_vm0, %v10019_v5 }
  0x5f   :  { %8835 = vmatprep.mubr.msk.bf16.mxu0 %vm1859_vm0, %v9946_v26  ;;  %9295 = vmatprep.mubr.msk.bf16.mxu1 %vm1859_vm0, %v10022_v8 }
  0x66   :  { %8836 = vmatmul.mubr.msk.bf16.gmra.mrb[44].mxu0 %vm1859_vm0, %v9947_v27  ;;  %9296 = vmatmul.mubr.msk.bf16.gmra.mrb[44].mxu1 %vm1859_vm0, %v10023_v9 }
  0x67   :  { %8839 = vmatprep.mubr.msk.bf16.mxu0 %vm1859_vm0, %v9948_v30  ;;  %9299 = vmatprep.mubr.msk.bf16.mxu1 %vm1859_vm0, %v10026_v12 }
  0x6e   :  { %8840 = vmatmul.mubr.msk.bf16.gmra.mrb[48].mxu0 %vm1859_vm0, %v9949_v31  ;;  %9300 = vmatmul.mubr.msk.bf16.gmra.mrb[48].mxu1 %vm1859_vm0, %v10027_v13 }
  0x6f   :  { %8843 = vmatprep.mubr.msk.bf16.mxu0 %vm1859_vm0, %v9950_v34  ;;  %5705 = vmatprep.mubr.bf16.mxu1 %v7956_v18 }
  0x76   :  { %8844 = vmatmul.mubr.msk.bf16.gmra.mrb[52].mxu0 %vm1859_vm0, %v9951_v35 }
  0x77   :  { %8847 = vmatprep.mubr.msk.bf16.mxu0 %vm1859_vm0, %v9952_v38 }
  0x7e   :  { %8848 = vmatmul.mubr.msk.bf16.gmra.mrb[56].mxu0 %vm1859_vm0, %v9953_v39 }
  0x7f   :  { %8851 = vmatprep.mubr.msk.bf16.mxu0 %vm1859_vm0, %v9954_v42 }
  0x86   :  { %8852 = vmatmul.mubr.msk.bf16.gmra.mrb[60].mxu0 %vm1859_vm0, %v9955_v43 }
  0x87   :  { %8855 = vmatprep.mubr.msk.bf16.mxu0 %vm1859_vm0, %v9956_v46 }
  0x8e   :  { %8856 = vmatmul.mubr.msk.bf16.gmra.mrb[64].mxu0 %vm1859_vm0, %v9957_v47 }
  0x8f   :  { %8859 = vmatprep.mubr.msk.bf16.mxu0 %vm1859_vm0, %v9958_v50 }
  0x96   :  { %8860 = vmatmul.mubr.msk.bf16.gmra.mrb[68].mxu0 %vm1859_vm0, %v9959_v51 }
  0x97   :  { %8863 = vmatprep.mubr.msk.bf16.mxu0 %vm1859_vm0, %v9960_v54 }
  0x9e   :  { %8864 = vmatmul.mubr.msk.bf16.gmra.mrb[72].mxu0 %vm1859_vm0, %v9961_v55 }
  0x9f   :  { %8867 = vmatprep.mubr.msk.bf16.mxu0 %vm1859_vm0, %v9962_v58 }
  0xa6   :  { %8868 = vmatmul.mubr.msk.bf16.gmra.mrb[76].mxu0 %vm1859_vm0, %v9963_v59 }
  0xa7   :  { %8871 = vmatprep.mubr.msk.bf16.mxu0 %vm1859_vm0, %v9964_v62 }
  0xae   :  { %8872 = vmatmul.mubr.msk.bf16.gmra.mrb[80].mxu0 %vm1859_vm0, %v9965_v63 }
  0xaf   :  { %8875 = vmatprep.mubr.msk.bf16.mxu0 %vm1859_vm0, %v9966_v2 }
  0xb6   :  { %8876 = vmatmul.mubr.msk.bf16.gmra.mrb[84].mxu0 %vm1859_vm0, %v9967_v3 }
  0xb7   :  { %8879 = vmatprep.mubr.msk.bf16.mxu0 %vm1859_vm0, %v9968_v6 }
  0xbe   :  { %8880 = vmatmul.mubr.msk.bf16.gmra.mrb[88].mxu0 %vm1859_vm0, %v9969_v7 }
  0xbf   :  { %8883 = vmatprep.mubr.msk.bf16.mxu0 %vm1859_vm0, %v9970_v10 }
  0xc6   :  { %8884 = vmatmul.mubr.msk.bf16.gmra.mrb[92].mxu0 %vm1859_vm0, %v9971_v11 }
  0xc7   :  { %8887 = vmatprep.mubr.msk.bf16.mxu0 %vm1859_vm0, %v9972_v14 }
  0xce   :  { %8888 = vmatmul.mubr.msk.bf16.gmra.mrb[96].mxu0 %vm1859_vm0, %v9973_v15 }
  0xcf   :  { %8891 = vmatprep.mubr.msk.bf16.mxu0 %vm1859_vm0, %v9974_v20 }
  0xd0   :  { %16 = vsyncpa [#allocation3], 0  ;;  %v9976_v22 = vld [vmem:[%s12977_s0 + $0x1a0] sm:$0xff]   ;;  %v9977_v23 = vld [vmem:[%s12977_s0 + $0x1a8] sm:$0xff]   ;;  %vm6337_vm2 = vcmask 64512   ;;  %vm10273_vm3 = vmmov 0  }
  0xd1   :  { %v9980_v24 = vld [vmem:[%s12977_s0 + $0x1b0] sm:$0xff]   ;;  %v10688_v25 = vld [vmem:[%s12979_s2] ss:$0 sm:$0xff]  ;;  %v9981_v29 = vld [vmem:[%s12977_s0 + $0x1b8] sm:$0xff]   ;;  %s10277_s21 = smov 64   ;;  %vm7423_vm7 = vcmask 74752  }
  0xd2   :  { %v9984_v32 = vld [vmem:[%s12977_s0 + $0x1c0] sm:$0xff]   ;;  %v9985_v45 = vld [vmem:[%s12977_s0 + $0x1c8] sm:$0xff]   ;;  %v9988_v48 = vld [vmem:[%s12977_s0 + $0x1d0] sm:$0xff]  }
  0xd3   :  { %v9989_v61 = vld [vmem:[%s12977_s0 + $0x1d8] sm:$0xff]   ;;  %v9992_v0 = vld [vmem:[%s12977_s0 + $0x1e0] sm:$0xff]   ;;  %v9993_v13 = vld [vmem:[%s12977_s0 + $0x1e8] sm:$0xff]  }
  0xd4   :  { %v9996_v18 = vld [vmem:[%s12977_s0 + $0x1f0] sm:$0xff]  }
  0xd6   :  { %8892 = vmatmul.mubr.msk.bf16.gmra.mrb[100].mxu0 %vm1859_vm0, %v9975_v21 }
  0xd7   :  { %8895 = vmatprep.mubr.msk.bf16.mxu0 %vm1859_vm0, %v9976_v22 }
  0xde   :  { %8896 = vmatmul.mubr.msk.bf16.gmra.mrb[104].mxu0 %vm1859_vm0, %v9977_v23 }
  0xdf   :  { %8899 = vmatprep.mubr.msk.bf16.mxu0 %vm1859_vm0, %v9980_v24 }
  0xe1   :  { %v8793_v26 = vpop.f32.mrb[0].mxu0 }
  0xe2   :  { %v2675_v27 = vadd.f32 %v8793_v26, %v10688_v25  ;;  %v2666_v28 = vpop.f32.mrb[1].mxu0 }
  0xe3   :  { %v2667_v30 = vadd.f32 %v10688_v25, %v2666_v28  ;;  %v8794_v31 = vpop.f32.mrb[2].mxu0 }
  0xe4   :  { %v2678_v33 = vadd.f32 %v8794_v31, %v10688_v25  ;;  %v2669_v34 = vpop.f32.mrb[3].mxu0  ;;  %v4715_v36 = vmax.f32 %v2675_v27, 0.0 }
  0xe5   :  { %v2670_v35 = vadd.f32 %v10688_v25, %v2669_v34  ;;  %v4713_v38 = vmax.f32 %v2667_v30, 0.0 }
  0xe6   :  { %v4716_v37 = vmax.f32 %v2678_v33, 0.0  ;;  %8900 = vmatmul.mubr.msk.bf16.gmra.mrb[108].mxu0 %vm1859_vm0, %v9981_v29  ;;  %v9997_v33 = vld [vmem:[%s12977_s0 + $0x1f8] sm:$0xff]  }
  0xe7   :  { %v4714_v39 = vmax.f32 %v2670_v35, 0.0  ;;  %8903 = vmatprep.mubr.msk.bf16.mxu0 %vm1859_vm0, %v9984_v32 }
  0xe8   :  { %v10703_v40 = vpack.c.bf16 %v4716_v37, %v4715_v36  ;;  %v10000_v36 = vld [vmem:[%s12977_s0 + $0x200] sm:$0xff]  }
  0xe9   :  { %v10705_v41 = vpack.c.bf16 %v4714_v39, %v4713_v38  ;;  %v8797_v42 = vpop.f32.mrb[4].mxu0 }
  0xea   :  { %v2691_v43 = vadd.f32 %v8797_v42, %v10688_v25  ;;  %v2682_v44 = vpop.f32.mrb[5].mxu0 }
  0xeb   :  { %v2683_v46 = vadd.f32 %v10688_v25, %v2682_v44  ;;  %v8798_v47 = vpop.f32.mrb[6].mxu0 }
  0xec   :  { %v2694_v49 = vadd.f32 %v8798_v47, %v10688_v25  ;;  %v2685_v50 = vpop.f32.mrb[7].mxu0  ;;  %v4719_v52 = vmax.f32 %v2691_v43, 0.0 }
  0xed   :  { %v2686_v51 = vadd.f32 %v10688_v25, %v2685_v50  ;;  %v4717_v54 = vmax.f32 %v2683_v46, 0.0 }
  0xee   :  { %v4720_v53 = vmax.f32 %v2694_v49, 0.0  ;;  %8904 = vmatmul.mubr.msk.bf16.gmra.mrb[112].mxu0 %vm1859_vm0, %v9985_v45 }
  0xef   :  { %v4718_v55 = vmax.f32 %v2686_v51, 0.0  ;;  %8907 = vmatprep.mubr.msk.bf16.mxu0 %vm1859_vm0, %v9988_v48  ;;  %v10001_v51 = vld [vmem:[%s12977_s0 + $0x208] sm:$0xff]  }
  0xf0   :  { %v10719_v56 = vpack.c.bf16 %v4720_v53, %v4719_v52 }
  0xf1   :  { %v10721_v57 = vpack.c.bf16 %v4718_v55, %v4717_v54  ;;  %v8801_v58 = vpop.f32.mrb[8].mxu0  ;;  %v10004_v54 = vld [vmem:[%s12977_s0 + $0x210] sm:$0xff]  }
  0xf2   :  { %v2707_v59 = vadd.f32 %v8801_v58, %v10688_v25  ;;  %v2698_v60 = vpop.f32.mrb[9].mxu0 }
  0xf3   :  { %v2699_v62 = vadd.f32 %v10688_v25, %v2698_v60  ;;  %v8802_v63 = vpop.f32.mrb[10].mxu0 }
  0xf4   :  { %v2710_v1 = vadd.f32 %v8802_v63, %v10688_v25  ;;  %v2701_v2 = vpop.f32.mrb[11].mxu0  ;;  %v4723_v4 = vmax.f32 %v2707_v59, 0.0 }
  0xf5   :  { %v2702_v3 = vadd.f32 %v10688_v25, %v2701_v2  ;;  %v4721_v6 = vmax.f32 %v2699_v62, 0.0 }
  0xf6   :  { %v4724_v5 = vmax.f32 %v2710_v1, 0.0  ;;  %8908 = vmatmul.mubr.msk.bf16.gmra.mrb[116].mxu0 %vm1859_vm0, %v9989_v61 }
  0xf7   :  { %v4722_v7 = vmax.f32 %v2702_v3, 0.0  ;;  %8911 = vmatprep.mubr.msk.bf16.mxu0 %vm1859_vm0, %v9992_v0 }
  0xf8   :  { %v10735_v8 = vpack.c.bf16 %v4724_v5, %v4723_v4 }
  0xf9   :  { %v10737_v9 = vpack.c.bf16 %v4722_v7, %v4721_v6  ;;  %v8805_v10 = vpop.f32.mrb[12].mxu0  ;;  %v10008_v7 = vld [vmem:[%s12977_s0 + $0x220] sm:$0xff]  }
  0xfa   :  { %v2723_v11 = vadd.f32 %v8805_v10, %v10688_v25  ;;  %v2714_v12 = vpop.f32.mrb[13].mxu0 }
  0xfb   :  { %v2715_v14 = vadd.f32 %v10688_v25, %v2714_v12  ;;  %v8806_v15 = vpop.f32.mrb[14].mxu0 }
  0xfc   :  { %v2726_v20 = vadd.f32 %v8806_v15, %v10688_v25  ;;  %v2717_v21 = vpop.f32.mrb[15].mxu0  ;;  %v4727_v23 = vmax.f32 %v2723_v11, 0.0 }
  0xfd   :  { %v2718_v22 = vadd.f32 %v10688_v25, %v2717_v21  ;;  %v4725_v26 = vmax.f32 %v2715_v14, 0.0 }
  0xfe   :  { %v4728_v24 = vmax.f32 %v2726_v20, 0.0  ;;  %8912 = vmatmul.mubr.msk.bf16.gmra.mrb[120].mxu0 %vm1859_vm0, %v9993_v13 }
  0xff   :  { %v4726_v27 = vmax.f32 %v2718_v22, 0.0  ;;  %8915 = vmatprep.mubr.msk.bf16.mxu0 %vm1859_vm0, %v9996_v18 }
 0x100   :  { %v10751_v28 = vpack.c.bf16 %v4728_v24, %v4727_v23 }
 0x101   :  { %v10753_v29 = vpack.c.bf16 %v4726_v27, %v4725_v26  ;;  %v8809_v30 = vpop.f32.mrb[16].mxu0  ;;  %v10012_v27 = vld [vmem:[%s12977_s0 + $0x230] sm:$0xff]  }
 0x102   :  { %v2739_v31 = vadd.f32 %v8809_v30, %v10688_v25  ;;  %v2730_v32 = vpop.f32.mrb[17].mxu0 }
 0x103   :  { %v2731_v34 = vadd.f32 %v10688_v25, %v2730_v32  ;;  %v8810_v35 = vpop.f32.mrb[18].mxu0 }
 0x104   :  { %v2742_v37 = vadd.f32 %v8810_v35, %v10688_v25  ;;  %v2733_v38 = vpop.f32.mrb[19].mxu0  ;;  %v4731_v42 = vmax.f32 %v2739_v31, 0.0 }
 0x105   :  { %v2734_v39 = vadd.f32 %v10688_v25, %v2733_v38  ;;  %v4729_v44 = vmax.f32 %v2731_v34, 0.0 }
 0x106   :  { %v4732_v43 = vmax.f32 %v2742_v37, 0.0  ;;  %8916 = vmatmul.mubr.msk.bf16.gmra.mrb[124].mxu0 %vm1859_vm0, %v9997_v33 }
 0x107   :  { %v4730_v45 = vmax.f32 %v2734_v39, 0.0  ;;  %8919 = vmatprep.mubr.msk.bf16.mxu0 %vm1859_vm0, %v10000_v36 }
 0x108   :  { %v5266_v46 = vpack.c.bf16 %v4732_v43, %v4731_v42 }
 0x109   :  { %v8813_v47 = vpop.f32.mrb[20].mxu0  ;;  %v5265_v48 = vpack.c.bf16 %v4730_v45, %v4729_v44  ;;  %v10016_v45 = vld [vmem:[%s12977_s0 + $0x240] sm:$0xff]  }
 0x10a   :  { %v2755_v49 = vadd.f32 %v8813_v47, %v10688_v25  ;;  %v2746_v50 = vpop.f32.mrb[21].mxu0 }
 0x10b   :  { %v2747_v52 = vadd.f32 %v10688_v25, %v2746_v50  ;;  %v8814_v53 = vpop.f32.mrb[22].mxu0  ;;  %8259 = vmatprep.subr.bf16.mxu1 %v5265_v48  ;;  %v10823_v48 = vld [vmem:[%s12980_s3 + $0x8] sm:$0xff] }
 0x10c   :  { %v2758_v55 = vadd.f32 %v8814_v53, %v10688_v25  ;;  %v2749_v58 = vpop.f32.mrb[23].mxu0  ;;  %8260 = vmatpush3.bf16.msra.mxu1 %v10705_v41  ;;  %v4735_v60 = vmax.f32 %v2755_v49, 0.0  ;;  %v10005_v41 = vld [vmem:[%s12977_s0 + $0x218] sm:$0xff]   ;;  %v10828_v49 = vld [vmem:[%s12980_s3 + $0x88] sm:$0xff] }
 0x10d   :  { %v2750_v59 = vadd.f32 %v10688_v25, %v2749_v58  ;;  %8261 = vmatprep.subr.bf16.mxu1 %v5266_v46  ;;  %v4733_v62 = vmax.f32 %v2747_v52, 0.0 }
 0x10e   :  { %v4736_v61 = vmax.f32 %v2758_v55, 0.0  ;;  %8920 = vmatmul.mubr.msk.bf16.gmra.mrb[128].mxu0 %vm1859_vm0, %v10001_v51 }
 0x10f   :  { %v4734_v63 = vmax.f32 %v2750_v59, 0.0  ;;  %8923 = vmatprep.mubr.msk.bf16.mxu0 %vm1859_vm0, %v10004_v54  ;;  %v7958_v54 = vcombine.high %v10823_v48, %v10828_v49 }
 0x110   :  { %8262 = vmatpush3.bf16.msra.mxu1 %v10703_v40  ;;  %v5268_v0 = vpack.c.bf16 %v4736_v61, %v4735_v60  ;;  %v10017_v61 = vld [vmem:[%s12977_s0 + $0x248] sm:$0xff]  }
 0x111   :  { %v8817_v1 = vpop.f32.mrb[24].mxu0  ;;  %v5267_v2 = vpack.c.bf16 %v4734_v63, %v4733_v62 }
 0x112   :  { %v2771_v3 = vadd.f32 %v8817_v1, %v10688_v25  ;;  %v2762_v4 = vpop.f32.mrb[25].mxu0 }
 0x113   :  { %v2763_v5 = vadd.f32 %v10688_v25, %v2762_v4  ;;  %v8818_v6 = vpop.f32.mrb[26].mxu0  ;;  %8263 = vmatprep.subr.bf16.mxu1 %v5267_v2 }
 0x114   :  { %v2774_v40 = vadd.f32 %v8818_v6, %v10688_v25  ;;  %v2765_v10 = vpop.f32.mrb[27].mxu0  ;;  %8264 = vmatpush3.bf16.msra.mxu1 %v10721_v57  ;;  %v4739_v12 = vmax.f32 %v2771_v3, 0.0  ;;  %v10009_v57 = vld [vmem:[%s12977_s0 + $0x228] sm:$0xff]  }
 0x115   :  { %v2766_v11 = vadd.f32 %v10688_v25, %v2765_v10  ;;  %8265 = vmatprep.subr.bf16.mxu1 %v5268_v0  ;;  %v4737_v14 = vmax.f32 %v2763_v5, 0.0 }
 0x116   :  { %v4740_v13 = vmax.f32 %v2774_v40, 0.0  ;;  %8924 = vmatmul.mubr.msk.bf16.gmra.mrb[132].mxu0 %vm1859_vm0, %v10005_v41  ;;  %v10021_v40 = vld [vmem:[%s12977_s0 + $0x258] sm:$0xff]  }
 0x117   :  { %v4738_v15 = vmax.f32 %v2766_v11, 0.0  ;;  %8927 = vmatprep.mubr.msk.bf16.mxu0 %vm1859_vm0, %v10008_v7 }
 0x118   :  { %8266 = vmatpush3.bf16.msra.mxu1 %v10719_v56  ;;  %v5270_v18 = vpack.c.bf16 %v4740_v13, %v4739_v12  ;;  %v10024_v12 = vld [vmem:[%s12977_s0 + $0x260] sm:$0xff]  }
 0x119   :  { %v8821_v20 = vpop.f32.mrb[28].mxu0  ;;  %v5269_v21 = vpack.c.bf16 %v4738_v15, %v4737_v14 }
 0x11a   :  { %v2787_v22 = vadd.f32 %v8821_v20, %v10688_v25  ;;  %v2778_v23 = vpop.f32.mrb[29].mxu0 }
 0x11b   :  { %v2779_v24 = vadd.f32 %v10688_v25, %v2778_v23  ;;  %v8822_v26 = vpop.f32.mrb[30].mxu0  ;;  %8267 = vmatprep.subr.bf16.mxu1 %v5269_v21 }
 0x11c   :  { %v2790_v56 = vadd.f32 %v8822_v26, %v10688_v25  ;;  %v2781_v30 = vpop.f32.mrb[31].mxu0  ;;  %8268 = vmatpush3.bf16.msra.mxu1 %v10737_v9  ;;  %v4743_v32 = vmax.f32 %v2787_v22, 0.0  ;;  %v10013_v9 = vld [vmem:[%s12977_s0 + $0x238] sm:$0xff]  }
 0x11d   :  { %v2782_v31 = vadd.f32 %v10688_v25, %v2781_v30  ;;  %8269 = vmatprep.subr.bf16.mxu1 %v5270_v18  ;;  %v4741_v34 = vmax.f32 %v2779_v24, 0.0 }
 0x11e   :  { %v4744_v33 = vmax.f32 %v2790_v56, 0.0  ;;  %8928 = vmatmul.mubr.msk.bf16.gmra.mrb[136].mxu0 %vm1859_vm0, %v10009_v57  ;;  %v10025_v56 = vld [vmem:[%s12977_s0 + $0x268] sm:$0xff]  }
 0x11f   :  { %v4742_v35 = vmax.f32 %v2782_v31, 0.0  ;;  %8931 = vmatprep.mubr.msk.bf16.mxu0 %vm1859_vm0, %v10012_v27 }
 0x120   :  { %8270 = vmatpush3.bf16.msra.mxu1 %v10735_v8  ;;  %v5272_v36 = vpack.c.bf16 %v4744_v33, %v4743_v32  ;;  %v10028_v32 = vld [vmem:[%s12977_s0 + $0x270] sm:$0xff]  }
 0x121   :  { %v8825_v37 = vpop.f32.mrb[32].mxu0  ;;  %v5271_v38 = vpack.c.bf16 %v4742_v35, %v4741_v34 }
 0x122   :  { %v2803_v39 = vadd.f32 %v8825_v37, %v10688_v25  ;;  %v2794_v42 = vpop.f32.mrb[33].mxu0 }
 0x123   :  { %v2795_v43 = vadd.f32 %v10688_v25, %v2794_v42  ;;  %v8826_v44 = vpop.f32.mrb[34].mxu0  ;;  %8271 = vmatprep.subr.bf16.mxu1 %v5271_v38 }
 0x124   :  { %v2806_v8 = vadd.f32 %v8826_v44, %v10688_v25  ;;  %v2797_v46 = vpop.f32.mrb[35].mxu0  ;;  %8272 = vmatpush3.bf16.msra.mxu1 %v10753_v29  ;;  %v4747_v50 = vmax.f32 %v2803_v39, 0.0 }
 0x125   :  { %v2798_v47 = vadd.f32 %v10688_v25, %v2797_v46  ;;  %8273 = vmatprep.subr.bf16.mxu1 %v5272_v36  ;;  %v4745_v52 = vmax.f32 %v2795_v43, 0.0 }
 0x126   :  { %v4748_v51 = vmax.f32 %v2806_v8, 0.0  ;;  %8932 = vmatmul.mubr.msk.bf16.gmra.mrb[140].mxu0 %vm1859_vm0, %v10013_v9  ;;  %v10029_v8 = vld [vmem:[%s12977_s0 + $0x278] sm:$0xff]  }
 0x127   :  { %v4746_v53 = vmax.f32 %v2798_v47, 0.0  ;;  %8935 = vmatprep.mubr.msk.bf16.mxu0 %vm1859_vm0, %v10016_v45 }
 0x128   :  { %v10832_v29 = vpack.c.bf16 %v4748_v51, %v4747_v50  ;;  %8274 = vmatpush3.bf16.msra.mxu1 %v10751_v28  ;;  %v10020_v28 = vld [vmem:[%s12977_s0 + $0x250] sm:$0xff]   ;;  %v10030_v50 = vld [vmem:[%s12977_s0 + $0x280] sm:$0xff]  }
 0x129   :  { %v10837_v55 = vpack.c.bf16 %v4746_v53, %v4745_v52  ;;  %v8829_v58 = vpop.f32.mrb[36].mxu0 }
 0x12a   :  { %v2819_v59 = vadd.f32 %v8829_v58, %v10688_v25  ;;  %v2810_v60 = vpop.f32.mrb[37].mxu0 }
 0x12b   :  { %v2811_v62 = vadd.f32 %v10688_v25, %v2810_v60  ;;  %v8830_v63 = vpop.f32.mrb[38].mxu0  ;;  %5706 = vmatmul.mubr.bf16.vlgmr.msra.gmra.mrb[52].mxu1 %v7955_v19 }
 0x12c   :  { %v2822_v0 = vadd.f32 %v8830_v63, %v10688_v25  ;;  %v2813_v1 = vpop.f32.mrb[39].mxu0  ;;  %5746 = vmatprep.mubr.bf16.mxu1 %v7958_v54  ;;  %v4751_v3 = vmax.f32 %v2819_v59, 0.0 }
 0x12d   :  { %v2814_v2 = vadd.f32 %v10688_v25, %v2813_v1  ;;  %v4749_v41 = vmax.f32 %v2811_v62, 0.0  ;;  %v10031_v1 = vld [vmem:[%s12977_s0 + $0x288] sm:$0xff]  }
 0x12e   :  { %v4752_v4 = vmax.f32 %v2822_v0, 0.0  ;;  %8936 = vmatmul.mubr.msk.bf16.gmra.mrb[144].mxu0 %vm1859_vm0, %v10017_v61 }
 0x12f   :  { %v4750_v5 = vmax.f32 %v2814_v2, 0.0  ;;  %8939 = vmatprep.mubr.msk.bf16.mxu0 %vm1859_vm0, %v10020_v28 }
 0x130   :  { %v10854_v6 = vpack.c.bf16 %v4752_v4, %v4751_v3  ;;  %v10032_v4 = vld [vmem:[%s12977_s0 + $0x290] sm:$0xff]  }
 0x131   :  { %v10856_v7 = vpack.c.bf16 %v4750_v5, %v4749_v41  ;;  %v8833_v16 = vpop.f32.mrb[40].mxu0 }
 0x132   :  { %v2835_v17 = vadd.f32 %v8833_v16, %v10688_v25  ;;  %v2826_v19 = vpop.f32.mrb[41].mxu0 }
 0x133   :  { %v2827_v10 = vadd.f32 %v10688_v25, %v2826_v19  ;;  %v8834_v11 = vpop.f32.mrb[42].mxu0 }
 0x134   :  { %v2838_v13 = vadd.f32 %v8834_v11, %v10688_v25  ;;  %v2829_v14 = vpop.f32.mrb[43].mxu0  ;;  %v4755_v18 = vmax.f32 %v2835_v17, 0.0 }
 0x135   :  { %v2830_v15 = vadd.f32 %v10688_v25, %v2829_v14  ;;  %v4753_v21 = vmax.f32 %v2827_v10, 0.0 }
 0x136   :  { %v4756_v20 = vmax.f32 %v2838_v13, 0.0  ;;  %8940 = vmatmul.mubr.msk.bf16.gmra.mrb[148].mxu0 %vm1859_vm0, %v10021_v40 }
 0x137   :  { %v4754_v22 = vmax.f32 %v2830_v15, 0.0  ;;  %8943 = vmatprep.mubr.msk.bf16.mxu0 %vm1859_vm0, %v10024_v12 }
 0x138   :  { %v10870_v23 = vpack.c.bf16 %v4756_v20, %v4755_v18 }
 0x139   :  { %v10872_v57 = vpack.c.bf16 %v4754_v22, %v4753_v21  ;;  %v8837_v24 = vpop.f32.mrb[44].mxu0  ;;  %v10034_v21 = vld [vmem:[%s12977_s0 + $0x2a0] sm:$0xff]  }
 0x13a   :  { %v2851_v26 = vadd.f32 %v8837_v24, %v10688_v25  ;;  %v2842_v27 = vpop.f32.mrb[45].mxu0 }
 0x13b   :  { %v2843_v30 = vadd.f32 %v10688_v25, %v2842_v27  ;;  %v8838_v31 = vpop.f32.mrb[46].mxu0 }
 0x13c   :  { %v2854_v33 = vadd.f32 %v8838_v31, %v10688_v25  ;;  %v2845_v34 = vpop.f32.mrb[47].mxu0  ;;  %v4759_v36 = vmax.f32 %v2851_v26, 0.0 }
 0x13d   :  { %v2846_v35 = vadd.f32 %v10688_v25, %v2845_v34  ;;  %v4757_v38 = vmax.f32 %v2843_v30, 0.0 }
 0x13e   :  { %v4760_v37 = vmax.f32 %v2854_v33, 0.0  ;;  %8944 = vmatmul.mubr.msk.bf16.gmra.mrb[152].mxu0 %vm1859_vm0, %v10025_v56 }
 0x13f   :  { %v4758_v39 = vmax.f32 %v2846_v35, 0.0  ;;  %8947 = vmatprep.mubr.msk.bf16.mxu0 %vm1859_vm0, %v10028_v32 }
 0x140   :  { %v10886_v42 = vpack.c.bf16 %v4760_v37, %v4759_v36 }
 0x141   :  { %v10888_v9 = vpack.c.bf16 %v4758_v39, %v4757_v38  ;;  %v8841_v43 = vpop.f32.mrb[48].mxu0  ;;  %v10036_v38 = vld [vmem:[%s12977_s0 + $0x2b0] sm:$0xff]  }
 0x142   :  { %v2867_v44 = vadd.f32 %v8841_v43, %v10688_v25  ;;  %v2858_v45 = vpop.f32.mrb[49].mxu0 }
 0x143   :  { %v2859_v46 = vadd.f32 %v10688_v25, %v2858_v45  ;;  %v8842_v47 = vpop.f32.mrb[50].mxu0 }
 0x144   :  { %v2870_v51 = vadd.f32 %v8842_v47, %v10688_v25  ;;  %v2861_v52 = vpop.f32.mrb[51].mxu0  ;;  %v4763_v54 = vmax.f32 %v2867_v44, 0.0 }
 0x145   :  { %v2862_v53 = vadd.f32 %v10688_v25, %v2861_v52  ;;  %v4761_v59 = vmax.f32 %v2859_v46, 0.0 }
 0x146   :  { %v4764_v58 = vmax.f32 %v2870_v51, 0.0  ;;  %8948 = vmatmul.mubr.msk.bf16.gmra.mrb[156].mxu0 %vm1859_vm0, %v10029_v8 }
 0x147   :  { %v4762_v60 = vmax.f32 %v2862_v53, 0.0  ;;  %8951 = vmatprep.mubr.msk.bf16.mxu0 %vm1859_vm0, %v10030_v50 }
 0x148   :  { %v5282_v61 = vpack.c.bf16 %v4764_v58, %v4763_v54 }
 0x149   :  { %v8845_v62 = vpop.f32.mrb[52].mxu0  ;;  %v5281_v63 = vpack.c.bf16 %v4762_v60, %v4761_v59  ;;  %v10038_v59 = vld [vmem:[%s12977_s0 + $0x2c0] sm:$0xff]  }
 0x14a   :  { %v2883_v28 = vadd.f32 %v8845_v62, %v10688_v25  ;;  %v2874_v0 = vpop.f32.mrb[53].mxu0  ;;  %v10958_v62 = vld [vmem:[%s12980_s3 + $0x10] sm:$0xff] }
 0x14b   :  { %v2875_v2 = vadd.f32 %v10688_v25, %v2874_v0  ;;  %v8846_v3 = vpop.f32.mrb[54].mxu0  ;;  %8281 = vmatprep.subr.bf16.mxu1 %v5281_v63  ;;  %v10963_v63 = vld [vmem:[%s12980_s3 + $0x90] sm:$0xff] }
 0x14c   :  { %v2886_v41 = vadd.f32 %v8846_v3, %v10688_v25  ;;  %v2877_v5 = vpop.f32.mrb[55].mxu0  ;;  %8282 = vmatpush3.bf16.msra.mxu1 %v10837_v55  ;;  %v4767_v17 = vmax.f32 %v2883_v28, 0.0  ;;  %v10033_v55 = vld [vmem:[%s12977_s0 + $0x298] sm:$0xff]  }
 0x14d   :  { %v2878_v16 = vadd.f32 %v10688_v25, %v2877_v5  ;;  %8283 = vmatprep.subr.bf16.mxu1 %v5282_v61  ;;  %v4765_v40 = vmax.f32 %v2875_v2, 0.0 }
 0x14e   :  { %v4768_v19 = vmax.f32 %v2886_v41, 0.0  ;;  %8952 = vmatmul.mubr.msk.bf16.gmra.mrb[160].mxu0 %vm1859_vm0, %v10031_v1 }
 0x14f   :  { %v4766_v10 = vmax.f32 %v2878_v16, 0.0  ;;  %8955 = vmatprep.mubr.msk.bf16.mxu0 %vm1859_vm0, %v10032_v4  ;;  %v7960_v4 = vcombine.high %v10958_v62, %v10963_v63 }
 0x150   :  { %8284 = vmatpush3.bf16.msra.mxu1 %v10832_v29  ;;  %v5284_v11 = vpack.c.bf16 %v4768_v19, %v4767_v17  ;;  %v10039_v19 = vld [vmem:[%s12977_s0 + $0x2c8] sm:$0xff]  }
 0x151   :  { %v8849_v12 = vpop.f32.mrb[56].mxu0  ;;  %v5283_v13 = vpack.c.bf16 %v4766_v10, %v4765_v40 }
 0x152   :  { %v2899_v14 = vadd.f32 %v8849_v12, %v10688_v25  ;;  %v2890_v15 = vpop.f32.mrb[57].mxu0 }
 0x153   :  { %v2891_v18 = vadd.f32 %v10688_v25, %v2890_v15  ;;  %v8850_v20 = vpop.f32.mrb[58].mxu0  ;;  %8285 = vmatprep.subr.bf16.mxu1 %v5283_v13 }
 0x154   :  { %v2902_v29 = vadd.f32 %v8850_v20, %v10688_v25  ;;  %v2893_v22 = vpop.f32.mrb[59].mxu0  ;;  %8286 = vmatpush3.bf16.msra.mxu1 %v10856_v7  ;;  %v4771_v26 = vmax.f32 %v2899_v14, 0.0  ;;  %v10035_v7 = vld [vmem:[%s12977_s0 + $0x2a8] sm:$0xff]  }
 0x155   :  { %v2894_v24 = vadd.f32 %v10688_v25, %v2893_v22  ;;  %8287 = vmatprep.subr.bf16.mxu1 %v5284_v11  ;;  %v4769_v56 = vmax.f32 %v2891_v18, 0.0  ;;  %v10041_v22 = vld [vmem:[%s12977_s0 + $0x2d8] sm:$0xff]  }
 0x156   :  { %v4772_v27 = vmax.f32 %v2902_v29, 0.0  ;;  %8956 = vmatmul.mubr.msk.bf16.gmra.mrb[164].mxu0 %vm1859_vm0, %v10033_v55 }
 0x157   :  { %v4770_v30 = vmax.f32 %v2894_v24, 0.0  ;;  %8959 = vmatprep.mubr.msk.bf16.mxu0 %vm1859_vm0, %v10034_v21 }
 0x158   :  { %8288 = vmatpush3.bf16.msra.mxu1 %v10854_v6  ;;  %v5286_v31 = vpack.c.bf16 %v4772_v27, %v4771_v26  ;;  %v10042_v27 = vld [vmem:[%s12977_s0 + $0x2e0] sm:$0xff]  }
 0x159   :  { %v8853_v32 = vpop.f32.mrb[60].mxu0  ;;  %v5285_v33 = vpack.c.bf16 %v4770_v30, %v4769_v56 }
 0x15a   :  { %v2915_v34 = vadd.f32 %v8853_v32, %v10688_v25  ;;  %v2906_v35 = vpop.f32.mrb[61].mxu0 }
 0x15b   :  { %v2907_v36 = vadd.f32 %v10688_v25, %v2906_v35  ;;  %v8854_v37 = vpop.f32.mrb[62].mxu0  ;;  %8289 = vmatprep.subr.bf16.mxu1 %v5285_v33 }
 0x15c   :  { %v2918_v6 = vadd.f32 %v8854_v37, %v10688_v25  ;;  %v2909_v39 = vpop.f32.mrb[63].mxu0  ;;  %8290 = vmatpush3.bf16.msra.mxu1 %v10872_v57  ;;  %v4775_v44 = vmax.f32 %v2915_v34, 0.0  ;;  %v10037_v57 = vld [vmem:[%s12977_s0 + $0x2b8] sm:$0xff]  }
 0x15d   :  { %v2910_v43 = vadd.f32 %v10688_v25, %v2909_v39  ;;  %8291 = vmatprep.subr.bf16.mxu1 %v5286_v31  ;;  %v4773_v8 = vmax.f32 %v2907_v36, 0.0  ;;  %v10043_v39 = vld [vmem:[%s12977_s0 + $0x2e8] sm:$0xff]  }
 0x15e   :  { %v4776_v45 = vmax.f32 %v2918_v6, 0.0  ;;  %8960 = vmatmul.mubr.msk.bf16.gmra.mrb[168].mxu0 %vm1859_vm0, %v10035_v7 }
 0x15f   :  { %v4774_v46 = vmax.f32 %v2910_v43, 0.0  ;;  %8963 = vmatprep.mubr.msk.bf16.mxu0 %vm1859_vm0, %v10036_v38 }
 0x160   :  { %8292 = vmatpush3.bf16.msra.mxu1 %v10870_v23  ;;  %v5288_v47 = vpack.c.bf16 %v4776_v45, %v4775_v44  ;;  %v10044_v45 = vld [vmem:[%s12977_s0 + $0x2f0] sm:$0xff]  }
 0x161   :  { %v8857_v50 = vpop.f32.mrb[64].mxu0  ;;  %v5287_v51 = vpack.c.bf16 %v4774_v46, %v4773_v8 }
 0x162   :  { %v2931_v52 = vadd.f32 %v8857_v50, %v10688_v25  ;;  %v2922_v53 = vpop.f32.mrb[65].mxu0 }
 0x163   :  { %v2923_v54 = vadd.f32 %v10688_v25, %v2922_v53  ;;  %v8858_v58 = vpop.f32.mrb[66].mxu0  ;;  %8293 = vmatprep.subr.bf16.mxu1 %v5287_v51 }
 0x164   :  { %v2934_v23 = vadd.f32 %v8858_v58, %v10688_v25  ;;  %v2925_v60 = vpop.f32.mrb[67].mxu0  ;;  %8294 = vmatpush3.bf16.msra.mxu1 %v10888_v9  ;;  %v4779_v28 = vmax.f32 %v2931_v52, 0.0  ;;  %v7957_v9 = vcombine.low %v10823_v48, %v10828_v49  ;;  %v10040_v49 = vld [vmem:[%s12977_s0 + $0x2d0] sm:$0xff]  }
 0x165   :  { %v2926_v61 = vadd.f32 %v10688_v25, %v2925_v60  ;;  %8295 = vmatprep.subr.bf16.mxu1 %v5288_v47  ;;  %v4777_v1 = vmax.f32 %v2923_v54, 0.0  ;;  %v10045_v60 = vld [vmem:[%s12977_s0 + $0x2f8] sm:$0xff]  }
 0x166   :  { %v4780_v0 = vmax.f32 %v2934_v23, 0.0  ;;  %8964 = vmatmul.mubr.msk.bf16.gmra.mrb[172].mxu0 %vm1859_vm0, %v10037_v57 }
 0x167   :  { %v4778_v2 = vmax.f32 %v2926_v61, 0.0  ;;  %8967 = vmatprep.mubr.msk.bf16.mxu0 %vm1859_vm0, %v10038_v59 }
 0x168   :  { %v10969_v3 = vpack.c.bf16 %v4780_v0, %v4779_v28  ;;  %8296 = vmatpush3.bf16.msra.mxu1 %v10886_v42  ;;  %v10046_v0 = vld [vmem:[%s12977_s0 + $0x300] sm:$0xff]  }
 0x169   :  { %v10974_v41 = vpack.c.bf16 %v4778_v2, %v4777_v1  ;;  %v8861_v5 = vpop.f32.mrb[68].mxu0 }
 0x16a   :  { %v2947_v16 = vadd.f32 %v8861_v5, %v10688_v25  ;;  %v2938_v17 = vpop.f32.mrb[69].mxu0 }
 0x16b   :  { %v2939_v40 = vadd.f32 %v10688_v25, %v2938_v17  ;;  %v8862_v48 = vpop.f32.mrb[70].mxu0  ;;  %5747 = vmatmul.mubr.bf16.vlgmr.msra.gmra.mrb[56].mxu1 %v7957_v9 }
 0x16c   :  { %v2950_v42 = vadd.f32 %v8862_v48, %v10688_v25  ;;  %v2941_v10 = vpop.f32.mrb[71].mxu0  ;;  %5787 = vmatprep.mubr.bf16.mxu1 %v7960_v4  ;;  %v4783_v12 = vmax.f32 %v2947_v16, 0.0 }
 0x16d   :  { %v2942_v11 = vadd.f32 %v10688_v25, %v2941_v10  ;;  %v4781_v14 = vmax.f32 %v2939_v40, 0.0  ;;  %v10047_v10 = vld [vmem:[%s12977_s0 + $0x308] sm:$0xff]  }
 0x16e   :  { %v4784_v13 = vmax.f32 %v2950_v42, 0.0  ;;  %8968 = vmatmul.mubr.msk.bf16.gmra.mrb[176].mxu0 %vm1859_vm0, %v10039_v19 }
 0x16f   :  { %v4782_v15 = vmax.f32 %v2942_v11, 0.0  ;;  %8971 = vmatprep.mubr.msk.bf16.mxu0 %vm1859_vm0, %v10040_v49 }
 0x170   :  { %v10988_v55 = vpack.c.bf16 %v4784_v13, %v4783_v12  ;;  %v10048_v13 = vld [vmem:[%s12977_s0 + $0x310] sm:$0xff]  }
 0x171   :  { %v10990_v18 = vpack.c.bf16 %v4782_v15, %v4781_v14  ;;  %v8865_v20 = vpop.f32.mrb[72].mxu0 }
 0x172   :  { %v2963_v21 = vadd.f32 %v8865_v20, %v10688_v25  ;;  %v2954_v29 = vpop.f32.mrb[73].mxu0 }
 0x173   :  { %v2955_v24 = vadd.f32 %v10688_v25, %v2954_v29  ;;  %v8866_v26 = vpop.f32.mrb[74].mxu0 }
 0x174   :  { %v2966_v56 = vadd.f32 %v8866_v26, %v10688_v25  ;;  %v2957_v30 = vpop.f32.mrb[75].mxu0  ;;  %v4787_v32 = vmax.f32 %v2963_v21, 0.0 }
 0x175   :  { %v2958_v31 = vadd.f32 %v10688_v25, %v2957_v30  ;;  %v4785_v34 = vmax.f32 %v2955_v24, 0.0 }
 0x176   :  { %v4788_v33 = vmax.f32 %v2966_v56, 0.0  ;;  %8972 = vmatmul.mubr.msk.bf16.gmra.mrb[180].mxu0 %vm1859_vm0, %v10041_v22 }
 0x177   :  { %v4786_v35 = vmax.f32 %v2958_v31, 0.0  ;;  %8975 = vmatprep.mubr.msk.bf16.mxu0 %vm1859_vm0, %v10042_v27 }
 0x178   :  { %v11004_v7 = vpack.c.bf16 %v4788_v33, %v4787_v32 }
 0x179   :  { %v11006_v36 = vpack.c.bf16 %v4786_v35, %v4785_v34  ;;  %v8869_v37 = vpop.f32.mrb[76].mxu0  ;;  %v10050_v34 = vld [vmem:[%s12977_s0 + $0x320] sm:$0xff]  }
 0x17a   :  { %v2979_v38 = vadd.f32 %v8869_v37, %v10688_v25  ;;  %v2970_v6 = vpop.f32.mrb[77].mxu0 }
 0x17b   :  { %v2971_v43 = vadd.f32 %v10688_v25, %v2970_v6  ;;  %v8870_v44 = vpop.f32.mrb[78].mxu0 }
 0x17c   :  { %v2982_v8 = vadd.f32 %v8870_v44, %v10688_v25  ;;  %v2973_v46 = vpop.f32.mrb[79].mxu0  ;;  %v4791_v50 = vmax.f32 %v2979_v38, 0.0 }
 0x17d   :  { %v2974_v47 = vadd.f32 %v10688_v25, %v2973_v46  ;;  %v4789_v52 = vmax.f32 %v2971_v43, 0.0 }
 0x17e   :  { %v4792_v51 = vmax.f32 %v2982_v8, 0.0  ;;  %8976 = vmatmul.mubr.msk.bf16.gmra.mrb[184].mxu0 %vm1859_vm0, %v10043_v39 }
 0x17f   :  { %v4790_v53 = vmax.f32 %v2974_v47, 0.0  ;;  %8979 = vmatprep.mubr.msk.bf16.mxu0 %vm1859_vm0, %v10044_v45 }
 0x180   :  { %v11020_v57 = vpack.c.bf16 %v4792_v51, %v4791_v50 }
 0x181   :  { %v11022_v54 = vpack.c.bf16 %v4790_v53, %v4789_v52  ;;  %v8873_v58 = vpop.f32.mrb[80].mxu0  ;;  %v10052_v52 = vld [vmem:[%s12977_s0 + $0x330] sm:$0xff]  }
 0x182   :  { %v2995_v59 = vadd.f32 %v8873_v58, %v10688_v25  ;;  %v2986_v23 = vpop.f32.mrb[81].mxu0 }
 0x183   :  { %v2987_v61 = vadd.f32 %v10688_v25, %v2986_v23  ;;  %v8874_v28 = vpop.f32.mrb[82].mxu0 }
 0x184   :  { %v2998_v1 = vadd.f32 %v8874_v28, %v10688_v25  ;;  %v2989_v2 = vpop.f32.mrb[83].mxu0  ;;  %v4795_v4 = vmax.f32 %v2995_v59, 0.0 }
 0x185   :  { %v2990_v9 = vadd.f32 %v10688_v25, %v2989_v2  ;;  %v4793_v16 = vmax.f32 %v2987_v61, 0.0 }
 0x186   :  { %v4796_v5 = vmax.f32 %v2998_v1, 0.0  ;;  %8980 = vmatmul.mubr.msk.bf16.gmra.mrb[188].mxu0 %vm1859_vm0, %v10045_v60 }
 0x187   :  { %v4794_v17 = vmax.f32 %v2990_v9, 0.0  ;;  %8983 = vmatprep.mubr.msk.bf16.mxu0 %vm1859_vm0, %v10046_v0 }
 0x188   :  { %v5298_v19 = vpack.c.bf16 %v4796_v5, %v4795_v4 }
 0x189   :  { %v8877_v40 = vpop.f32.mrb[84].mxu0  ;;  %v5297_v48 = vpack.c.bf16 %v4794_v17, %v4793_v16  ;;  %v10054_v16 = vld [vmem:[%s12977_s0 + $0x340] sm:$0xff]  }
 0x18a   :  { %v3011_v49 = vadd.f32 %v8877_v40, %v10688_v25  ;;  %v3002_v42 = vpop.f32.mrb[85].mxu0  ;;  %v11092_v40 = vld [vmem:[%s12980_s3 + $0x18] sm:$0xff] }
 0x18b   :  { %v3003_v11 = vadd.f32 %v10688_v25, %v3002_v42  ;;  %v8878_v12 = vpop.f32.mrb[86].mxu0  ;;  %8303 = vmatprep.subr.bf16.mxu1 %v5297_v48  ;;  %v11097_v48 = vld [vmem:[%s12980_s3 + $0x98] sm:$0xff] }
 0x18c   :  { %v3014_v14 = vadd.f32 %v8878_v12, %v10688_v25  ;;  %v3005_v15 = vpop.f32.mrb[87].mxu0  ;;  %8304 = vmatpush3.bf16.msra.mxu1 %v10974_v41  ;;  %v4799_v21 = vmax.f32 %v3011_v49, 0.0  ;;  %v10049_v41 = vld [vmem:[%s12977_s0 + $0x318] sm:$0xff]   ;;  %v7962_v12 = vcombine.high %v11092_v40, %v11097_v48 }
 0x18d   :  { %v3006_v20 = vadd.f32 %v10688_v25, %v3005_v15  ;;  %8305 = vmatprep.subr.bf16.mxu1 %v5298_v19  ;;  %v4797_v22 = vmax.f32 %v3003_v11, 0.0  ;;  %v11113_v15 = vld [vmem:[%s12979_s2] ss:$0 sm:$0xff] }
 0x18e   :  { %v4800_v29 = vmax.f32 %v3014_v14, 0.0  ;;  %8984 = vmatmul.mubr.msk.bf16.gmra.mrb[192].mxu0 %vm1859_vm0, %v10047_v10 }
 0x18f   :  { %v4798_v24 = vmax.f32 %v3006_v20, 0.0  ;;  %8987 = vmatprep.mubr.msk.bf16.mxu0 %vm1859_vm0, %v10048_v13 }
 0x190   :  { %8306 = vmatpush3.bf16.msra.mxu1 %v10969_v3  ;;  %v5300_v26 = vpack.c.bf16 %v4800_v29, %v4799_v21  ;;  %v10056_v29 = vld [vmem:[%s12977_s0 + $0x350] sm:$0xff]  }
 0x191   :  { %v8881_v27 = vpop.f32.mrb[88].mxu0  ;;  %v5299_v56 = vpack.c.bf16 %v4798_v24, %v4797_v22 }
 0x192   :  { %v3027_v30 = vadd.f32 %v8881_v27, %v10688_v25  ;;  %v3018_v31 = vpop.f32.mrb[89].mxu0 }
 0x193   :  { %v3019_v32 = vadd.f32 %v10688_v25, %v3018_v31  ;;  %v8882_v33 = vpop.f32.mrb[90].mxu0  ;;  %8307 = vmatprep.subr.bf16.mxu1 %v5299_v56 }
 0x194   :  { %v3030_v3 = vadd.f32 %v8882_v33, %v10688_v25  ;;  %v3021_v35 = vpop.f32.mrb[91].mxu0  ;;  %8308 = vmatpush3.bf16.msra.mxu1 %v10990_v18  ;;  %v4803_v38 = vmax.f32 %v3027_v30, 0.0  ;;  %v10051_v18 = vld [vmem:[%s12977_s0 + $0x328] sm:$0xff]  }
 0x195   :  { %v3022_v37 = vadd.f32 %v10688_v25, %v3021_v35  ;;  %8309 = vmatprep.subr.bf16.mxu1 %v5300_v26  ;;  %v4801_v39 = vmax.f32 %v3019_v32, 0.0  ;;  %v10057_v35 = vld [vmem:[%s12977_s0 + $0x358] sm:$0xff]  }
 0x196   :  { %v4804_v6 = vmax.f32 %v3030_v3, 0.0  ;;  %8988 = vmatmul.mubr.msk.bf16.gmra.mrb[196].mxu0 %vm1859_vm0, %v10049_v41 }
 0x197   :  { %v4802_v43 = vmax.f32 %v3022_v37, 0.0  ;;  %8991 = vmatprep.mubr.msk.bf16.mxu0 %vm1859_vm0, %v10050_v34 }
 0x198   :  { %8310 = vmatpush3.bf16.msra.mxu1 %v10988_v55  ;;  %v5302_v44 = vpack.c.bf16 %v4804_v6, %v4803_v38  ;;  %v10058_v6 = vld [vmem:[%s12977_s0 + $0x360] sm:$0xff]  }
 0x199   :  { %v8885_v45 = vpop.f32.mrb[92].mxu0  ;;  %v5301_v8 = vpack.c.bf16 %v4802_v43, %v4801_v39 }
 0x19a   :  { %v3043_v46 = vadd.f32 %v8885_v45, %v10688_v25  ;;  %v3034_v47 = vpop.f32.mrb[93].mxu0 }
 0x19b   :  { %v3035_v50 = vadd.f32 %v10688_v25, %v3034_v47  ;;  %v8886_v51 = vpop.f32.mrb[94].mxu0  ;;  %8311 = vmatprep.subr.bf16.mxu1 %v5301_v8 }
 0x19c   :  { %v3046_v55 = vadd.f32 %v8886_v51, %v10688_v25  ;;  %v3037_v53 = vpop.f32.mrb[95].mxu0  ;;  %8312 = vmatpush3.bf16.msra.mxu1 %v11006_v36  ;;  %v4807_v59 = vmax.f32 %v3043_v46, 0.0  ;;  %v10053_v36 = vld [vmem:[%s12977_s0 + $0x338] sm:$0xff]  }
 0x19d   :  { %v3038_v58 = vadd.f32 %v10688_v25, %v3037_v53  ;;  %8313 = vmatprep.subr.bf16.mxu1 %v5302_v44  ;;  %v4805_v60 = vmax.f32 %v3035_v50, 0.0  ;;  %v10059_v53 = vld [vmem:[%s12977_s0 + $0x368] sm:$0xff]  }
 0x19e   :  { %v4808_v23 = vmax.f32 %v3046_v55, 0.0  ;;  %8992 = vmatmul.mubr.msk.bf16.gmra.mrb[200].mxu0 %vm1859_vm0, %v10051_v18 }
 0x19f   :  { %v4806_v61 = vmax.f32 %v3038_v58, 0.0  ;;  %8995 = vmatprep.mubr.msk.bf16.mxu0 %vm1859_vm0, %v10052_v52 }
 0x1a0   :  { %8314 = vmatpush3.bf16.msra.mxu1 %v11004_v7  ;;  %v5304_v28 = vpack.c.bf16 %v4808_v23, %v4807_v59  ;;  %v10060_v23 = vld [vmem:[%s12977_s0 + $0x370] sm:$0xff]  }
 0x1a1   :  { %v8889_v0 = vpop.f32.mrb[96].mxu0  ;;  %v5303_v1 = vpack.c.bf16 %v4806_v61, %v4805_v60 }
 0x1a2   :  { %v3059_v2 = vadd.f32 %v8889_v0, %v10688_v25  ;;  %v3050_v9 = vpop.f32.mrb[97].mxu0 }
 0x1a3   :  { %v3051_v4 = vadd.f32 %v10688_v25, %v3050_v9  ;;  %v8890_v5 = vpop.f32.mrb[98].mxu0  ;;  %8315 = vmatprep.subr.bf16.mxu1 %v5303_v1 }
 0x1a4   :  { %v3062_v7 = vadd.f32 %v8890_v5, %v10688_v25  ;;  %v3053_v17 = vpop.f32.mrb[99].mxu0  ;;  %8316 = vmatpush3.bf16.msra.mxu1 %v11022_v54  ;;  %v4811_v49 = vmax.f32 %v3059_v2, 0.0 }
 0x1a5   :  { %v3054_v19 = vadd.f32 %v10688_v25, %v3053_v17  ;;  %8317 = vmatprep.subr.bf16.mxu1 %v5304_v28  ;;  %v4809_v10 = vmax.f32 %v3051_v4, 0.0  ;;  %v7959_v25 = vcombine.low %v10958_v62, %v10963_v63  ;;  %v10055_v62 = vld [vmem:[%s12977_s0 + $0x348] sm:$0xff]   ;;  %v10061_v17 = vld [vmem:[%s12977_s0 + $0x378] sm:$0xff]  }
 0x1a6   :  { %v4812_v42 = vmax.f32 %v3062_v7, 0.0  ;;  %8996 = vmatmul.mubr.msk.bf16.gmra.mrb[204].mxu0 %vm1859_vm0, %v10053_v36 }
 0x1a7   :  { %v4810_v11 = vmax.f32 %v3054_v19, 0.0  ;;  %8999 = vmatprep.mubr.msk.bf16.mxu0 %vm1859_vm0, %v10054_v16 }
 0x1a8   :  { %v11103_v54 = vpack.c.bf16 %v4812_v42, %v4811_v49  ;;  %8318 = vmatpush3.bf16.msra.mxu1 %v11020_v57  ;;  %v10062_v42 = vld [vmem:[%s12977_s0 + $0x380] sm:$0xff]  }
 0x1a9   :  { %v11108_v13 = vpack.c.bf16 %v4810_v11, %v4809_v10  ;;  %v8893_v14 = vpop.f32.mrb[100].mxu0 }
 0x1aa   :  { %v3075_v20 = vadd.f32 %v11113_v15, %v8893_v14  ;;  %v3066_v21 = vpop.f32.mrb[101].mxu0 }
 0x1ab   :  { %v3067_v63 = vadd.f32 %v11113_v15, %v3066_v21  ;;  %v8894_v57 = vpop.f32.mrb[102].mxu0  ;;  %5788 = vmatmul.mubr.bf16.vlgmr.msra.gmra.mrb[60].mxu1 %v7959_v25 }
 0x1ac   :  { %v3078_v22 = vadd.f32 %v11113_v15, %v8894_v57  ;;  %v3069_v24 = vpop.f32.mrb[103].mxu0  ;;  %5828 = vmatprep.mubr.bf16.mxu1 %v7962_v12  ;;  %v4815_v27 = vmax.f32 %v3075_v20, 0.0 }
 0x1ad   :  { %v3070_v26 = vadd.f32 %v11113_v15, %v3069_v24  ;;  %v4813_v30 = vmax.f32 %v3067_v63, 0.0  ;;  %v10063_v24 = vld [vmem:[%s12977_s0 + $0x388] sm:$0xff]  }
 0x1ae   :  { %v4816_v56 = vmax.f32 %v3078_v22, 0.0  ;;  %9000 = vmatmul.mubr.msk.bf16.gmra.mrb[208].mxu0 %vm1859_vm0, %v10055_v62 }
 0x1af   :  { %v4814_v31 = vmax.f32 %v3070_v26, 0.0  ;;  %9003 = vmatprep.mubr.msk.bf16.mxu0 %vm1859_vm0, %v10056_v29 }
 0x1b0   :  { %v11127_v41 = vpack.c.bf16 %v4816_v56, %v4815_v27  ;;  %v10064_v56 = vld [vmem:[%s12977_s0 + $0x390] sm:$0xff]  }
 0x1b1   :  { %v11129_v32 = vpack.c.bf16 %v4814_v31, %v4813_v30  ;;  %v8897_v33 = vpop.f32.mrb[104].mxu0 }
 0x1b2   :  { %v3091_v34 = vadd.f32 %v11113_v15, %v8897_v33  ;;  %v3082_v3 = vpop.f32.mrb[105].mxu0 }
 0x1b3   :  { %v3083_v37 = vadd.f32 %v11113_v15, %v3082_v3  ;;  %v8898_v38 = vpop.f32.mrb[106].mxu0 }
 0x1b4   :  { %v3094_v39 = vadd.f32 %v11113_v15, %v8898_v38  ;;  %v3085_v43 = vpop.f32.mrb[107].mxu0  ;;  %v4819_v45 = vmax.f32 %v3091_v34, 0.0 }
 0x1b5   :  { %v3086_v44 = vadd.f32 %v11113_v15, %v3085_v43  ;;  %v4817_v46 = vmax.f32 %v3083_v37, 0.0 }
 0x1b6   :  { %v4820_v8 = vmax.f32 %v3094_v39, 0.0  ;;  %9004 = vmatmul.mubr.msk.bf16.gmra.mrb[212].mxu0 %vm1859_vm0, %v10057_v35 }
 0x1b7   :  { %v4818_v47 = vmax.f32 %v3086_v44, 0.0  ;;  %9007 = vmatprep.mubr.msk.bf16.mxu0 %vm1859_vm0, %v10058_v6 }
 0x1b8   :  { %v11143_v18 = vpack.c.bf16 %v4820_v8, %v4819_v45 }
 0x1b9   :  { %v11145_v50 = vpack.c.bf16 %v4818_v47, %v4817_v46  ;;  %v8901_v51 = vpop.f32.mrb[108].mxu0  ;;  %v10066_v46 = vld [vmem:[%s12977_s0 + $0x3a0] sm:$0xff]  }
 0x1ba   :  { %v3107_v52 = vadd.f32 %v11113_v15, %v8901_v51  ;;  %v3098_v55 = vpop.f32.mrb[109].mxu0 }
 0x1bb   :  { %v3099_v58 = vadd.f32 %v11113_v15, %v3098_v55  ;;  %v8902_v59 = vpop.f32.mrb[110].mxu0 }
 0x1bc   :  { %v3110_v60 = vadd.f32 %v11113_v15, %v8902_v59  ;;  %v3101_v61 = vpop.f32.mrb[111].mxu0  ;;  %v4823_v0 = vmax.f32 %v3107_v52, 0.0 }
 0x1bd   :  { %v3102_v28 = vadd.f32 %v11113_v15, %v3101_v61  ;;  %v4821_v2 = vmax.f32 %v3099_v58, 0.0 }
 0x1be   :  { %v4824_v1 = vmax.f32 %v3110_v60, 0.0  ;;  %9008 = vmatmul.mubr.msk.bf16.gmra.mrb[216].mxu0 %vm1859_vm0, %v10059_v53 }
 0x1bf   :  { %v4822_v9 = vmax.f32 %v3102_v28, 0.0  ;;  %9011 = vmatprep.mubr.msk.bf16.mxu0 %vm1859_vm0, %v10060_v23 }
 0x1c0   :  { %v11159_v36 = vpack.c.bf16 %v4824_v1, %v4823_v0 }
 0x1c1   :  { %v11161_v4 = vpack.c.bf16 %v4822_v9, %v4821_v2  ;;  %v8905_v5 = vpop.f32.mrb[112].mxu0  ;;  %v10068_v2 = vld [vmem:[%s12977_s0 + $0x3b0] sm:$0xff]  }
 0x1c2   :  { %v3123_v16 = vadd.f32 %v11113_v15, %v8905_v5  ;;  %v3114_v7 = vpop.f32.mrb[113].mxu0 }
 0x1c3   :  { %v3115_v19 = vadd.f32 %v11113_v15, %v3114_v7  ;;  %v8906_v49 = vpop.f32.mrb[114].mxu0 }
 0x1c4   :  { %v3126_v10 = vadd.f32 %v11113_v15, %v8906_v49  ;;  %v3117_v11 = vpop.f32.mrb[115].mxu0  ;;  %v4827_v12 = vmax.f32 %v3123_v16, 0.0 }
 0x1c5   :  { %v3118_v25 = vadd.f32 %v11113_v15, %v3117_v11  ;;  %v4825_v20 = vmax.f32 %v3115_v19, 0.0 }
 0x1c6   :  { %v4828_v14 = vmax.f32 %v3126_v10, 0.0  ;;  %9012 = vmatmul.mubr.msk.bf16.gmra.mrb[220].mxu0 %vm1859_vm0, %v10061_v17 }
 0x1c7   :  { %v4826_v21 = vmax.f32 %v3118_v25, 0.0  ;;  %9015 = vmatprep.mubr.msk.bf16.mxu0 %vm1859_vm0, %v10062_v42 }
 0x1c8   :  { %v5314_v62 = vpack.c.bf16 %v4828_v14, %v4827_v12 }
 0x1c9   :  { %v8909_v63 = vpop.f32.mrb[116].mxu0  ;;  %v5313_v57 = vpack.c.bf16 %v4826_v21, %v4825_v20  ;;  %v10070_v20 = vld [vmem:[%s12977_s0 + $0x3c0] sm:$0xff]  }
 0x1ca   :  { %v3139_v29 = vadd.f32 %v11113_v15, %v8909_v63  ;;  %v3130_v22 = vpop.f32.mrb[117].mxu0  ;;  %v11231_v63 = vld [vmem:[%s12980_s3 + $0x20] sm:$0xff] }
 0x1cb   :  { %v3131_v26 = vadd.f32 %v11113_v15, %v3130_v22  ;;  %v8910_v27 = vpop.f32.mrb[118].mxu0  ;;  %8325 = vmatprep.subr.bf16.mxu1 %v5313_v57  ;;  %v11236_v57 = vld [vmem:[%s12980_s3 + $0xa0] sm:$0xff] }
 0x1cc   :  { %v3142_v30 = vadd.f32 %v11113_v15, %v8910_v27  ;;  %v3133_v31 = vpop.f32.mrb[119].mxu0  ;;  %8326 = vmatpush3.bf16.msra.mxu1 %v11108_v13  ;;  %v4831_v34 = vmax.f32 %v3139_v29, 0.0  ;;  %v10065_v13 = vld [vmem:[%s12977_s0 + $0x398] sm:$0xff]  }
 0x1cd   :  { %v3134_v33 = vadd.f32 %v11113_v15, %v3133_v31  ;;  %8327 = vmatprep.subr.bf16.mxu1 %v5314_v62  ;;  %v4829_v35 = vmax.f32 %v3131_v26, 0.0 }
 0x1ce   :  { %v4832_v3 = vmax.f32 %v3142_v30, 0.0  ;;  %9016 = vmatmul.mubr.msk.bf16.gmra.mrb[224].mxu0 %vm1859_vm0, %v10063_v24 }
 0x1cf   :  { %v4830_v37 = vmax.f32 %v3134_v33, 0.0  ;;  %9019 = vmatprep.mubr.msk.bf16.mxu0 %vm1859_vm0, %v10064_v56  ;;  %v7964_v56 = vcombine.high %v11231_v63, %v11236_v57 }
 0x1d0   :  { %8328 = vmatpush3.bf16.msra.mxu1 %v11103_v54  ;;  %v5316_v38 = vpack.c.bf16 %v4832_v3, %v4831_v34  ;;  %v10071_v3 = vld [vmem:[%s12977_s0 + $0x3c8] sm:$0xff]  }
 0x1d1   :  { %v8913_v6 = vpop.f32.mrb[120].mxu0  ;;  %v5315_v39 = vpack.c.bf16 %v4830_v37, %v4829_v35 }
 0x1d2   :  { %v3155_v43 = vadd.f32 %v11113_v15, %v8913_v6  ;;  %v3146_v44 = vpop.f32.mrb[121].mxu0 }
 0x1d3   :  { %v3147_v45 = vadd.f32 %v11113_v15, %v3146_v44  ;;  %v8914_v8 = vpop.f32.mrb[122].mxu0  ;;  %8329 = vmatprep.subr.bf16.mxu1 %v5315_v39 }
 0x1d4   :  { %v3158_v54 = vadd.f32 %v11113_v15, %v8914_v8  ;;  %v3149_v47 = vpop.f32.mrb[123].mxu0  ;;  %8330 = vmatpush3.bf16.msra.mxu1 %v11129_v32  ;;  %v4835_v52 = vmax.f32 %v3155_v43, 0.0  ;;  %v10067_v32 = vld [vmem:[%s12977_s0 + $0x3a8] sm:$0xff]  }
 0x1d5   :  { %v3150_v51 = vadd.f32 %v11113_v15, %v3149_v47  ;;  %8331 = vmatprep.subr.bf16.mxu1 %v5316_v38  ;;  %v4833_v53 = vmax.f32 %v3147_v45, 0.0  ;;  %v10073_v47 = vld [vmem:[%s12977_s0 + $0x3d8] sm:$0xff]  }
 0x1d6   :  { %v4836_v55 = vmax.f32 %v3158_v54, 0.0  ;;  %9020 = vmatmul.mubr.msk.bf16.gmra.mrb[228].mxu0 %vm1859_vm0, %v10065_v13 }
 0x1d7   :  { %v4834_v58 = vmax.f32 %v3150_v51, 0.0  ;;  %9023 = vmatprep.mubr.msk.bf16.mxu0 %vm1859_vm0, %v10066_v46 }
 0x1d8   :  { %8332 = vmatpush3.bf16.msra.mxu1 %v11127_v41  ;;  %v5318_v59 = vpack.c.bf16 %v4836_v55, %v4835_v52  ;;  %v10074_v55 = vld [vmem:[%s12977_s0 + $0x3e0] sm:$0xff]  }
 0x1d9   :  { %v8917_v23 = vpop.f32.mrb[124].mxu0  ;;  %v5317_v60 = vpack.c.bf16 %v4834_v58, %v4833_v53 }
 0x1da   :  { %v3171_v61 = vadd.f32 %v11113_v15, %v8917_v23  ;;  %v3162_v28 = vpop.f32.mrb[125].mxu0 }
 0x1db   :  { %v3163_v0 = vadd.f32 %v11113_v15, %v3162_v28  ;;  %v8918_v1 = vpop.f32.mrb[126].mxu0  ;;  %8333 = vmatprep.subr.bf16.mxu1 %v5317_v60 }
 0x1dc   :  { %v3174_v41 = vadd.f32 %v11113_v15, %v8918_v1  ;;  %v3165_v9 = vpop.f32.mrb[127].mxu0  ;;  %8334 = vmatpush3.bf16.msra.mxu1 %v11145_v50  ;;  %v4839_v16 = vmax.f32 %v3171_v61, 0.0  ;;  %v10069_v50 = vld [vmem:[%s12977_s0 + $0x3b8] sm:$0xff]  }
 0x1dd   :  { %v3166_v5 = vadd.f32 %v11113_v15, %v3165_v9  ;;  %8335 = vmatprep.subr.bf16.mxu1 %v5318_v59  ;;  %v4837_v17 = vmax.f32 %v3163_v0, 0.0  ;;  %v10075_v9 = vld [vmem:[%s12977_s0 + $0x3e8] sm:$0xff]  }
 0x1de   :  { %v4840_v7 = vmax.f32 %v3174_v41, 0.0  ;;  %9024 = vmatmul.mubr.msk.bf16.gmra.mrb[232].mxu0 %vm1859_vm0, %v10067_v32 }
 0x1df   :  { %v4838_v19 = vmax.f32 %v3166_v5, 0.0  ;;  %9027 = vmatprep.mubr.msk.bf16.mxu0 %vm1859_vm0, %v10068_v2 }
 0x1e0   :  { %8336 = vmatpush3.bf16.msra.mxu1 %v11143_v18  ;;  %v5320_v49 = vpack.c.bf16 %v4840_v7, %v4839_v16  ;;  %v10076_v7 = vld [vmem:[%s12977_s0 + $0x3f0] sm:$0xff]  }
 0x1e1   :  { %v8921_v42 = vpop.f32.mrb[128].mxu0  ;;  %v5319_v10 = vpack.c.bf16 %v4838_v19, %v4837_v17 }
 0x1e2   :  { %v3187_v11 = vadd.f32 %v11113_v15, %v8921_v42  ;;  %v3178_v25 = vpop.f32.mrb[129].mxu0 }
 0x1e3   :  { %v3179_v12 = vadd.f32 %v11113_v15, %v3178_v25  ;;  %v8922_v14 = vpop.f32.mrb[130].mxu0  ;;  %8337 = vmatprep.subr.bf16.mxu1 %v5319_v10 }
 0x1e4   :  { %v3190_v18 = vadd.f32 %v11113_v15, %v8922_v14  ;;  %v3181_v21 = vpop.f32.mrb[131].mxu0  ;;  %8338 = vmatpush3.bf16.msra.mxu1 %v11161_v4  ;;  %v4843_v29 = vmax.f32 %v3187_v11, 0.0  ;;  %v7961_v4 = vcombine.low %v11092_v40, %v11097_v48  ;;  %v10072_v48 = vld [vmem:[%s12977_s0 + $0x3d0] sm:$0xff]  }
 0x1e5   :  { %v3182_v62 = vadd.f32 %v11113_v15, %v3181_v21  ;;  %8339 = vmatprep.subr.bf16.mxu1 %v5320_v49  ;;  %v4841_v24 = vmax.f32 %v3179_v12, 0.0  ;;  %v10077_v21 = vld [vmem:[%s12977_s0 + $0x3f8] sm:$0xff]  }
 0x1e6   :  { %v4844_v22 = vmax.f32 %v3190_v18, 0.0  ;;  %9028 = vmatmul.mubr.msk.bf16.gmra.mrb[236].mxu0 %vm1859_vm0, %v10069_v50 }
 0x1e7   :  { %v4842_v26 = vmax.f32 %v3182_v62, 0.0  ;;  %9031 = vmatprep.mubr.msk.bf16.mxu0 %vm1859_vm0, %v10070_v20 }
 0x1e8   :  { %v11242_v27 = vpack.c.bf16 %v4844_v22, %v4843_v29  ;;  %8340 = vmatpush3.bf16.msra.mxu1 %v11159_v36  ;;  %v10078_v22 = vld [vmem:[%s12977_s0 + $0x400] sm:$0xff]  }
 0x1e9   :  { %v11247_v30 = vpack.c.bf16 %v4842_v26, %v4841_v24  ;;  %v8925_v31 = vpop.f32.mrb[132].mxu0 }
 0x1ea   :  { %v3203_v33 = vadd.f32 %v11113_v15, %v8925_v31  ;;  %v3194_v34 = vpop.f32.mrb[133].mxu0 }
 0x1eb   :  { %v3195_v35 = vadd.f32 %v11113_v15, %v3194_v34  ;;  %v8926_v40 = vpop.f32.mrb[134].mxu0  ;;  %5829 = vmatmul.mubr.bf16.vlgmr.msra.gmra.mrb[64].mxu1 %v7961_v4 }
 0x1ec   :  { %v3206_v36 = vadd.f32 %v11113_v15, %v8926_v40  ;;  %v3197_v37 = vpop.f32.mrb[135].mxu0  ;;  %5869 = vmatprep.mubr.bf16.mxu1 %v7964_v56  ;;  %v4847_v6 = vmax.f32 %v3203_v33, 0.0 }
 0x1ed   :  { %v3198_v38 = vadd.f32 %v11113_v15, %v3197_v37  ;;  %v4845_v43 = vmax.f32 %v3195_v35, 0.0  ;;  %v10079_v37 = vld [vmem:[%s12977_s0 + $0x408] sm:$0xff]  }
 0x1ee   :  { %v4848_v39 = vmax.f32 %v3206_v36, 0.0  ;;  %9032 = vmatmul.mubr.msk.bf16.gmra.mrb[240].mxu0 %vm1859_vm0, %v10071_v3 }
 0x1ef   :  { %v4846_v44 = vmax.f32 %v3198_v38, 0.0  ;;  %9035 = vmatprep.mubr.msk.bf16.mxu0 %vm1859_vm0, %v10072_v48 }
 0x1f0   :  { %v11261_v13 = vpack.c.bf16 %v4848_v39, %v4847_v6  ;;  %v10080_v39 = vld [vmem:[%s12977_s0 + $0x410] sm:$0xff]  }
 0x1f1   :  { %v11263_v45 = vpack.c.bf16 %v4846_v44, %v4845_v43  ;;  %v8929_v8 = vpop.f32.mrb[136].mxu0 }
 0x1f2   :  { %v3219_v46 = vadd.f32 %v11113_v15, %v8929_v8  ;;  %v3210_v54 = vpop.f32.mrb[137].mxu0 }
 0x1f3   :  { %v3211_v51 = vadd.f32 %v11113_v15, %v3210_v54  ;;  %v8930_v52 = vpop.f32.mrb[138].mxu0 }
 0x1f4   :  { %v3222_v53 = vadd.f32 %v11113_v15, %v8930_v52  ;;  %v3213_v58 = vpop.f32.mrb[139].mxu0  ;;  %v4851_v23 = vmax.f32 %v3219_v46, 0.0 }
 0x1f5   :  { %v3214_v59 = vadd.f32 %v11113_v15, %v3213_v58  ;;  %v4849_v61 = vmax.f32 %v3211_v51, 0.0 }
 0x1f6   :  { %v4852_v60 = vmax.f32 %v3222_v53, 0.0  ;;  %9036 = vmatmul.mubr.msk.bf16.gmra.mrb[244].mxu0 %vm1859_vm0, %v10073_v47 }
 0x1f7   :  { %v4850_v28 = vmax.f32 %v3214_v59, 0.0  ;;  %9039 = vmatprep.mubr.msk.bf16.mxu0 %vm1859_vm0, %v10074_v55 }
 0x1f8   :  { %v11277_v32 = vpack.c.bf16 %v4852_v60, %v4851_v23 }
 0x1f9   :  { %v11279_v0 = vpack.c.bf16 %v4850_v28, %v4849_v61  ;;  %v8933_v1 = vpop.f32.mrb[140].mxu0  ;;  %v10082_v61 = vld [vmem:[%s12977_s0 + $0x420] sm:$0xff]  }
 0x1fa   :  { %v3235_v2 = vadd.f32 %v11113_v15, %v8933_v1  ;;  %v3226_v41 = vpop.f32.mrb[141].mxu0 }
 0x1fb   :  { %v3227_v5 = vadd.f32 %v11113_v15, %v3226_v41  ;;  %v8934_v16 = vpop.f32.mrb[142].mxu0 }
 0x1fc   :  { %v3238_v17 = vadd.f32 %v11113_v15, %v8934_v16  ;;  %v3229_v19 = vpop.f32.mrb[143].mxu0  ;;  %v4855_v42 = vmax.f32 %v3235_v2, 0.0 }
 0x1fd   :  { %v3230_v49 = vadd.f32 %v11113_v15, %v3229_v19  ;;  %v4853_v11 = vmax.f32 %v3227_v5, 0.0 }
 0x1fe   :  { %v4856_v10 = vmax.f32 %v3238_v17, 0.0  ;;  %9040 = vmatmul.mubr.msk.bf16.gmra.mrb[248].mxu0 %vm1859_vm0, %v10075_v9 }
 0x1ff   :  { %v4854_v25 = vmax.f32 %v3230_v49, 0.0  ;;  %9043 = vmatprep.mubr.msk.bf16.mxu0 %vm1859_vm0, %v10076_v7 }
 0x200   :  { %v11293_v50 = vpack.c.bf16 %v4856_v10, %v4855_v42 }
 0x201   :  { %v11295_v12 = vpack.c.bf16 %v4854_v25, %v4853_v11  ;;  %v8937_v14 = vpop.f32.mrb[144].mxu0  ;;  %v10084_v11 = vld [vmem:[%s12977_s0 + $0x430] sm:$0xff]  }
 0x202   :  { %v3251_v20 = vadd.f32 %v11113_v15, %v8937_v14  ;;  %v3242_v18 = vpop.f32.mrb[145].mxu0 }
 0x203   :  { %v3243_v62 = vadd.f32 %v11113_v15, %v3242_v18  ;;  %v8938_v29 = vpop.f32.mrb[146].mxu0 }
 0x204   :  { %v3254_v24 = vadd.f32 %v11113_v15, %v8938_v29  ;;  %v3245_v26 = vpop.f32.mrb[147].mxu0  ;;  %v4859_v56 = vmax.f32 %v3251_v20, 0.0 }
 0x205   :  { %v3246_v4 = vadd.f32 %v11113_v15, %v3245_v26  ;;  %v4857_v33 = vmax.f32 %v3243_v62, 0.0 }
 0x206   :  { %v4860_v31 = vmax.f32 %v3254_v24, 0.0  ;;  %9044 = vmatmul.mubr.msk.bf16.gmra.mrb[252].mxu0 %vm1859_vm0, %v10077_v21 }
 0x207   :  { %v4858_v34 = vmax.f32 %v3246_v4, 0.0  ;;  %9047 = vmatprep.mubr.msk.bf16.mxu0 %vm1859_vm0, %v10078_v22 }
 0x208   :  { %v5330_v3 = vpack.c.bf16 %v4860_v31, %v4859_v56 }
 0x209   :  { %v8941_v35 = vpop.f32.mrb[148].mxu0  ;;  %v5329_v40 = vpack.c.bf16 %v4858_v34, %v4857_v33  ;;  %v10086_v33 = vld [vmem:[%s12977_s0 + $0x440] sm:$0xff]  }
 0x20a   :  { %v3267_v48 = vadd.f32 %v11113_v15, %v8941_v35  ;;  %v3258_v36 = vpop.f32.mrb[149].mxu0  ;;  %v11365_v35 = vld [vmem:[%s12980_s3 + $0x28] sm:$0xff] }
 0x20b   :  { %v3259_v38 = vadd.f32 %v11113_v15, %v3258_v36  ;;  %v8942_v6 = vpop.f32.mrb[150].mxu0  ;;  %8347 = vmatprep.subr.bf16.mxu1 %v5329_v40  ;;  %v11370_v40 = vld [vmem:[%s12980_s3 + $0xa8] sm:$0xff] }
 0x20c   :  { %v3270_v43 = vadd.f32 %v11113_v15, %v8942_v6  ;;  %v3261_v44 = vpop.f32.mrb[151].mxu0  ;;  %8348 = vmatpush3.bf16.msra.mxu1 %v11247_v30  ;;  %v4863_v46 = vmax.f32 %v3267_v48, 0.0  ;;  %v10081_v30 = vld [vmem:[%s12977_s0 + $0x418] sm:$0xff]  }
 0x20d   :  { %v3262_v8 = vadd.f32 %v11113_v15, %v3261_v44  ;;  %8349 = vmatprep.subr.bf16.mxu1 %v5330_v3  ;;  %v4861_v47 = vmax.f32 %v3259_v38, 0.0 }
 0x20e   :  { %v4864_v54 = vmax.f32 %v3270_v43, 0.0  ;;  %9048 = vmatmul.mubr.msk.bf16.gmra.mrb[0].mxu0 %vm1859_vm0, %v10079_v37 }
 0x20f   :  { %v4862_v51 = vmax.f32 %v3262_v8, 0.0  ;;  %9051 = vmatprep.mubr.msk.bf16.mxu0 %vm1859_vm0, %v10080_v39  ;;  %v7966_v39 = vcombine.high %v11365_v35, %v11370_v40 }
 0x210   :  { %8350 = vmatpush3.bf16.msra.mxu1 %v11242_v27  ;;  %v5332_v52 = vpack.c.bf16 %v4864_v54, %v4863_v46  ;;  %v10087_v54 = vld [vmem:[%s12977_s0 + $0x448] sm:$0xff]  }
 0x211   :  { %v8945_v55 = vpop.f32.mrb[152].mxu0  ;;  %v5331_v53 = vpack.c.bf16 %v4862_v51, %v4861_v47 }
 0x212   :  { %v3283_v58 = vadd.f32 %v11113_v15, %v8945_v55  ;;  %v3274_v59 = vpop.f32.mrb[153].mxu0 }
 0x213   :  { %v3275_v23 = vadd.f32 %v11113_v15, %v3274_v59  ;;  %v8946_v60 = vpop.f32.mrb[154].mxu0  ;;  %8351 = vmatprep.subr.bf16.mxu1 %v5331_v53 }
 0x214   :  { %v3286_v27 = vadd.f32 %v11113_v15, %v8946_v60  ;;  %v3277_v28 = vpop.f32.mrb[155].mxu0  ;;  %8352 = vmatpush3.bf16.msra.mxu1 %v11263_v45  ;;  %v4867_v2 = vmax.f32 %v3283_v58, 0.0  ;;  %v10083_v45 = vld [vmem:[%s12977_s0 + $0x428] sm:$0xff]  }
 0x215   :  { %v3278_v1 = vadd.f32 %v11113_v15, %v3277_v28  ;;  %8353 = vmatprep.subr.bf16.mxu1 %v5332_v52  ;;  %v4865_v9 = vmax.f32 %v3275_v23, 0.0  ;;  %v10089_v28 = vld [vmem:[%s12977_s0 + $0x458] sm:$0xff]  }
 0x216   :  { %v4868_v41 = vmax.f32 %v3286_v27, 0.0  ;;  %9052 = vmatmul.mubr.msk.bf16.gmra.mrb[4].mxu0 %vm1859_vm0, %v10081_v30 }
 0x217   :  { %v4866_v5 = vmax.f32 %v3278_v1, 0.0  ;;  %9055 = vmatprep.mubr.msk.bf16.mxu0 %vm1859_vm0, %v10082_v61 }
 0x218   :  { %8354 = vmatpush3.bf16.msra.mxu1 %v11261_v13  ;;  %v5334_v16 = vpack.c.bf16 %v4868_v41, %v4867_v2  ;;  %v10090_v41 = vld [vmem:[%s12977_s0 + $0x460] sm:$0xff]  }
 0x219   :  { %v8949_v7 = vpop.f32.mrb[156].mxu0  ;;  %v5333_v17 = vpack.c.bf16 %v4866_v5, %v4865_v9 }
 0x21a   :  { %v3299_v19 = vadd.f32 %v11113_v15, %v8949_v7  ;;  %v3290_v49 = vpop.f32.mrb[157].mxu0 }
 0x21b   :  { %v3291_v42 = vadd.f32 %v11113_v15, %v3290_v49  ;;  %v8950_v10 = vpop.f32.mrb[158].mxu0  ;;  %8355 = vmatprep.subr.bf16.mxu1 %v5333_v17 }
 0x21c   :  { %v3302_v13 = vadd.f32 %v11113_v15, %v8950_v10  ;;  %v3293_v25 = vpop.f32.mrb[159].mxu0  ;;  %8356 = vmatpush3.bf16.msra.mxu1 %v11279_v0  ;;  %v4871_v20 = vmax.f32 %v3299_v19, 0.0  ;;  %v10085_v0 = vld [vmem:[%s12977_s0 + $0x438] sm:$0xff]  }
 0x21d   :  { %v3294_v14 = vadd.f32 %v11113_v15, %v3293_v25  ;;  %8357 = vmatprep.subr.bf16.mxu1 %v5334_v16  ;;  %v4869_v21 = vmax.f32 %v3291_v42, 0.0  ;;  %v10091_v25 = vld [vmem:[%s12977_s0 + $0x468] sm:$0xff]  }
 0x21e   :  { %v4872_v18 = vmax.f32 %v3302_v13, 0.0  ;;  %9056 = vmatmul.mubr.msk.bf16.gmra.mrb[8].mxu0 %vm1859_vm0, %v10083_v45 }
 0x21f   :  { %v4870_v62 = vmax.f32 %v3294_v14, 0.0  ;;  %9059 = vmatprep.mubr.msk.bf16.mxu0 %vm1859_vm0, %v10084_v11 }
 0x220   :  { %8358 = vmatpush3.bf16.msra.mxu1 %v11277_v32  ;;  %v5336_v29 = vpack.c.bf16 %v4872_v18, %v4871_v20  ;;  %v10092_v18 = vld [vmem:[%s12977_s0 + $0x470] sm:$0xff]  }
 0x221   :  { %v8953_v22 = vpop.f32.mrb[160].mxu0  ;;  %v5335_v24 = vpack.c.bf16 %v4870_v62, %v4869_v21 }
 0x222   :  { %v3315_v26 = vadd.f32 %v11113_v15, %v8953_v22  ;;  %v3306_v4 = vpop.f32.mrb[161].mxu0 }
 0x223   :  { %v3307_v56 = vadd.f32 %v11113_v15, %v3306_v4  ;;  %v8954_v31 = vpop.f32.mrb[162].mxu0  ;;  %8359 = vmatprep.subr.bf16.mxu1 %v5335_v24 }
 0x224   :  { %v3318_v32 = vadd.f32 %v11113_v15, %v8954_v31  ;;  %v3309_v34 = vpop.f32.mrb[163].mxu0  ;;  %8360 = vmatpush3.bf16.msra.mxu1 %v11295_v12  ;;  %v4875_v48 = vmax.f32 %v3315_v26, 0.0  ;;  %v7963_v12 = vcombine.low %v11231_v63, %v11236_v57  ;;  %v10088_v57 = vld [vmem:[%s12977_s0 + $0x450] sm:$0xff]  }
 0x225   :  { %v3310_v3 = vadd.f32 %v11113_v15, %v3309_v34  ;;  %8361 = vmatprep.subr.bf16.mxu1 %v5336_v29  ;;  %v4873_v37 = vmax.f32 %v3307_v56, 0.0  ;;  %v10093_v34 = vld [vmem:[%s12977_s0 + $0x478] sm:$0xff]  }
 0x226   :  { %v4876_v36 = vmax.f32 %v3318_v32, 0.0  ;;  %9060 = vmatmul.mubr.msk.bf16.gmra.mrb[12].mxu0 %vm1859_vm0, %v10085_v0 }
 0x227   :  { %v4874_v38 = vmax.f32 %v3310_v3, 0.0  ;;  %9063 = vmatprep.mubr.msk.bf16.mxu0 %vm1859_vm0, %v10086_v33 }
 0x228   :  { %v11376_v6 = vpack.c.bf16 %v4876_v36, %v4875_v48  ;;  %8362 = vmatpush3.bf16.msra.mxu1 %v11293_v50  ;;  %v10094_v36 = vld [vmem:[%s12977_s0 + $0x480] sm:$0xff]  }
 0x229   :  { %v11381_v43 = vpack.c.bf16 %v4874_v38, %v4873_v37  ;;  %v8957_v44 = vpop.f32.mrb[164].mxu0 }
 0x22a   :  { %v3331_v8 = vadd.f32 %v11113_v15, %v8957_v44  ;;  %v3322_v46 = vpop.f32.mrb[165].mxu0 }
 0x22b   :  { %v3323_v47 = vadd.f32 %v11113_v15, %v3322_v46  ;;  %v8958_v63 = vpop.f32.mrb[166].mxu0  ;;  %5870 = vmatmul.mubr.bf16.vlgmr.msra.gmra.mrb[68].mxu1 %v7963_v12 }
 0x22c   :  { %v3334_v50 = vadd.f32 %v11113_v15, %v8958_v63  ;;  %v3325_v51 = vpop.f32.mrb[167].mxu0  ;;  %5910 = vmatprep.mubr.bf16.mxu1 %v7966_v39  ;;  %v4879_v55 = vmax.f32 %v3331_v8, 0.0 }
 0x22d   :  { %v3326_v52 = vadd.f32 %v11113_v15, %v3325_v51  ;;  %v4877_v58 = vmax.f32 %v3323_v47, 0.0  ;;  %v10095_v51 = vld [vmem:[%s12977_s0 + $0x488] sm:$0xff]  }
 0x22e   :  { %v4880_v53 = vmax.f32 %v3334_v50, 0.0  ;;  %9064 = vmatmul.mubr.msk.bf16.gmra.mrb[16].mxu0 %vm1859_vm0, %v10087_v54 }
 0x22f   :  { %v4878_v59 = vmax.f32 %v3326_v52, 0.0  ;;  %9067 = vmatprep.mubr.msk.bf16.mxu0 %vm1859_vm0, %v10088_v57 }
 0x230   :  { %v11395_v30 = vpack.c.bf16 %v4880_v53, %v4879_v55  ;;  %v10096_v53 = vld [vmem:[%s12977_s0 + $0x490] sm:$0xff]  }
 0x231   :  { %v11397_v23 = vpack.c.bf16 %v4878_v59, %v4877_v58  ;;  %v8961_v60 = vpop.f32.mrb[168].mxu0 }
 0x232   :  { %v3347_v61 = vadd.f32 %v11113_v15, %v8961_v60  ;;  %v3338_v27 = vpop.f32.mrb[169].mxu0 }
 0x233   :  { %v3339_v1 = vadd.f32 %v11113_v15, %v3338_v27  ;;  %v8962_v2 = vpop.f32.mrb[170].mxu0 }
 0x234   :  { %v3350_v9 = vadd.f32 %v11113_v15, %v8962_v2  ;;  %v3341_v5 = vpop.f32.mrb[171].mxu0  ;;  %v4883_v7 = vmax.f32 %v3347_v61, 0.0 }
 0x235   :  { %v3342_v16 = vadd.f32 %v11113_v15, %v3341_v5  ;;  %v4881_v19 = vmax.f32 %v3339_v1, 0.0 }
 0x236   :  { %v4884_v17 = vmax.f32 %v3350_v9, 0.0  ;;  %9068 = vmatmul.mubr.msk.bf16.gmra.mrb[20].mxu0 %vm1859_vm0, %v10089_v28 }
 0x237   :  { %v4882_v49 = vmax.f32 %v3342_v16, 0.0  ;;  %9071 = vmatprep.mubr.msk.bf16.mxu0 %vm1859_vm0, %v10090_v41 }
 0x238   :  { %v11411_v45 = vpack.c.bf16 %v4884_v17, %v4883_v7 }
 0x239   :  { %v11413_v42 = vpack.c.bf16 %v4882_v49, %v4881_v19  ;;  %v8965_v10 = vpop.f32.mrb[172].mxu0  ;;  %v10098_v19 = vld [vmem:[%s12977_s0 + $0x4a0] sm:$0xff]  }
 0x23a   :  { %v3363_v11 = vadd.f32 %v11113_v15, %v8965_v10  ;;  %v3354_v13 = vpop.f32.mrb[173].mxu0 }
 0x23b   :  { %v3355_v14 = vadd.f32 %v11113_v15, %v3354_v13  ;;  %v8966_v20 = vpop.f32.mrb[174].mxu0 }
 0x23c   :  { %v3366_v21 = vadd.f32 %v11113_v15, %v8966_v20  ;;  %v3357_v62 = vpop.f32.mrb[175].mxu0  ;;  %v4887_v22 = vmax.f32 %v3363_v11, 0.0 }
 0x23d   :  { %v3358_v29 = vadd.f32 %v11113_v15, %v3357_v62  ;;  %v4885_v26 = vmax.f32 %v3355_v14, 0.0 }
 0x23e   :  { %v4888_v24 = vmax.f32 %v3366_v21, 0.0  ;;  %9072 = vmatmul.mubr.msk.bf16.gmra.mrb[24].mxu0 %vm1859_vm0, %v10091_v25 }
 0x23f   :  { %v4886_v4 = vmax.f32 %v3358_v29, 0.0  ;;  %9075 = vmatprep.mubr.msk.bf16.mxu0 %vm1859_vm0, %v10092_v18 }
 0x240   :  { %v11427_v0 = vpack.c.bf16 %v4888_v24, %v4887_v22 }
 0x241   :  { %v11429_v56 = vpack.c.bf16 %v4886_v4, %v4885_v26  ;;  %v8969_v31 = vpop.f32.mrb[176].mxu0  ;;  %v10100_v26 = vld [vmem:[%s12977_s0 + $0x4b0] sm:$0xff]  }
 0x242   :  { %v3379_v33 = vadd.f32 %v11113_v15, %v8969_v31  ;;  %v3370_v32 = vpop.f32.mrb[177].mxu0 }
 0x243   :  { %v3371_v3 = vadd.f32 %v11113_v15, %v3370_v32  ;;  %v8970_v48 = vpop.f32.mrb[178].mxu0 }
 0x244   :  { %v3382_v37 = vadd.f32 %v11113_v15, %v8970_v48  ;;  %v3373_v38 = vpop.f32.mrb[179].mxu0  ;;  %v4891_v39 = vmax.f32 %v3379_v33, 0.0 }
 0x245   :  { %v3374_v12 = vadd.f32 %v11113_v15, %v3373_v38  ;;  %v4889_v8 = vmax.f32 %v3371_v3, 0.0 }
 0x246   :  { %v4892_v44 = vmax.f32 %v3382_v37, 0.0  ;;  %9076 = vmatmul.mubr.msk.bf16.gmra.mrb[28].mxu0 %vm1859_vm0, %v10093_v34 }
 0x247   :  { %v4890_v46 = vmax.f32 %v3374_v12, 0.0  ;;  %9079 = vmatprep.mubr.msk.bf16.mxu0 %vm1859_vm0, %v10094_v36 }
 0x248   :  { %v5346_v54 = vpack.c.bf16 %v4892_v44, %v4891_v39 }
 0x249   :  { %v8973_v47 = vpop.f32.mrb[180].mxu0  ;;  %v5345_v63 = vpack.c.bf16 %v4890_v46, %v4889_v8  ;;  %v10102_v8 = vld [vmem:[%s12977_s0 + $0x4c0] sm:$0xff]  }
 0x24a   :  { %v3395_v57 = vadd.f32 %v11113_v15, %v8973_v47  ;;  %v3386_v50 = vpop.f32.mrb[181].mxu0  ;;  %v11499_v47 = vld [vmem:[%s12980_s3 + $0x30] sm:$0xff] }
 0x24b   :  { %v3387_v52 = vadd.f32 %v11113_v15, %v3386_v50  ;;  %v8974_v55 = vpop.f32.mrb[182].mxu0  ;;  %8369 = vmatprep.subr.bf16.mxu1 %v5345_v63  ;;  %v11504_v63 = vld [vmem:[%s12980_s3 + $0xb0] sm:$0xff] }
 0x24c   :  { %v3398_v58 = vadd.f32 %v11113_v15, %v8974_v55  ;;  %v3389_v59 = vpop.f32.mrb[183].mxu0  ;;  %8370 = vmatpush3.bf16.msra.mxu1 %v11381_v43  ;;  %v4895_v61 = vmax.f32 %v3395_v57, 0.0  ;;  %v10097_v43 = vld [vmem:[%s12977_s0 + $0x498] sm:$0xff]  }
 0x24d   :  { %v3390_v60 = vadd.f32 %v11113_v15, %v3389_v59  ;;  %8371 = vmatprep.subr.bf16.mxu1 %v5346_v54  ;;  %v4893_v28 = vmax.f32 %v3387_v52, 0.0 }
 0x24e   :  { %v4896_v27 = vmax.f32 %v3398_v58, 0.0  ;;  %9080 = vmatmul.mubr.msk.bf16.gmra.mrb[32].mxu0 %vm1859_vm0, %v10095_v51 }
 0x24f   :  { %v4894_v1 = vmax.f32 %v3390_v60, 0.0  ;;  %9083 = vmatprep.mubr.msk.bf16.mxu0 %vm1859_vm0, %v10096_v53  ;;  %v7968_v53 = vcombine.high %v11499_v47, %v11504_v63 }
 0x250   :  { %8372 = vmatpush3.bf16.msra.mxu1 %v11376_v6  ;;  %v5348_v2 = vpack.c.bf16 %v4896_v27, %v4895_v61  ;;  %v10103_v27 = vld [vmem:[%s12977_s0 + $0x4c8] sm:$0xff]  }
 0x251   :  { %v8977_v41 = vpop.f32.mrb[184].mxu0  ;;  %v5347_v9 = vpack.c.bf16 %v4894_v1, %v4893_v28 }
 0x252   :  { %v3411_v5 = vadd.f32 %v11113_v15, %v8977_v41  ;;  %v3402_v16 = vpop.f32.mrb[185].mxu0 }
 0x253   :  { %v3403_v7 = vadd.f32 %v11113_v15, %v3402_v16  ;;  %v8978_v17 = vpop.f32.mrb[186].mxu0  ;;  %8373 = vmatprep.subr.bf16.mxu1 %v5347_v9 }
 0x254   :  { %v3414_v6 = vadd.f32 %v11113_v15, %v8978_v17  ;;  %v3405_v49 = vpop.f32.mrb[187].mxu0  ;;  %8374 = vmatpush3.bf16.msra.mxu1 %v11397_v23  ;;  %v4899_v11 = vmax.f32 %v3411_v5, 0.0  ;;  %v10099_v23 = vld [vmem:[%s12977_s0 + $0x4a8] sm:$0xff]  }
 0x255   :  { %v3406_v10 = vadd.f32 %v11113_v15, %v3405_v49  ;;  %8375 = vmatprep.subr.bf16.mxu1 %v5348_v2  ;;  %v4897_v25 = vmax.f32 %v3403_v7, 0.0  ;;  %v10105_v49 = vld [vmem:[%s12977_s0 + $0x4d8] sm:$0xff]  }
 0x256   :  { %v4900_v13 = vmax.f32 %v3414_v6, 0.0  ;;  %9084 = vmatmul.mubr.msk.bf16.gmra.mrb[36].mxu0 %vm1859_vm0, %v10097_v43 }
 0x257   :  { %v4898_v14 = vmax.f32 %v3406_v10, 0.0  ;;  %9087 = vmatprep.mubr.msk.bf16.mxu0 %vm1859_vm0, %v10098_v19  ;;  %v11536_v19 = vld [vmem:[%s12979_s2] ss:$0 sm:$0xff] }
 0x258   :  { %8376 = vmatpush3.bf16.msra.mxu1 %v11395_v30  ;;  %v5350_v20 = vpack.c.bf16 %v4900_v13, %v4899_v11  ;;  %v10106_v13 = vld [vmem:[%s12977_s0 + $0x4e0] sm:$0xff]  }
 0x259   :  { %v8981_v18 = vpop.f32.mrb[188].mxu0  ;;  %v5349_v21 = vpack.c.bf16 %v4898_v14, %v4897_v25 }
 0x25a   :  { %v3427_v62 = vadd.f32 %v11113_v15, %v8981_v18  ;;  %v3418_v29 = vpop.f32.mrb[189].mxu0 }
 0x25b   :  { %v3419_v22 = vadd.f32 %v11113_v15, %v3418_v29  ;;  %v8982_v24 = vpop.f32.mrb[190].mxu0  ;;  %8377 = vmatprep.subr.bf16.mxu1 %v5349_v21 }
 0x25c   :  { %v3430_v30 = vadd.f32 %v11113_v15, %v8982_v24  ;;  %v3421_v4 = vpop.f32.mrb[191].mxu0  ;;  %8378 = vmatpush3.bf16.msra.mxu1 %v11413_v42  ;;  %v4903_v33 = vmax.f32 %v3427_v62, 0.0  ;;  %v10101_v42 = vld [vmem:[%s12977_s0 + $0x4b8] sm:$0xff]  }
 0x25d   :  { %v3422_v31 = vadd.f32 %v11113_v15, %v3421_v4  ;;  %8379 = vmatprep.subr.bf16.mxu1 %v5350_v20  ;;  %v4901_v34 = vmax.f32 %v3419_v22, 0.0  ;;  %v10107_v4 = vld [vmem:[%s12977_s0 + $0x4e8] sm:$0xff]  }
 0x25e   :  { %v4904_v32 = vmax.f32 %v3430_v30, 0.0  ;;  %9088 = vmatmul.mubr.msk.bf16.gmra.mrb[40].mxu0 %vm1859_vm0, %v10099_v23 }
 0x25f   :  { %v4902_v3 = vmax.f32 %v3422_v31, 0.0  ;;  %9091 = vmatprep.mubr.msk.bf16.mxu0 %vm1859_vm0, %v10100_v26 }
 0x260   :  { %8380 = vmatpush3.bf16.msra.mxu1 %v11411_v45  ;;  %v5352_v48 = vpack.c.bf16 %v4904_v32, %v4903_v33  ;;  %v10108_v32 = vld [vmem:[%s12977_s0 + $0x4f0] sm:$0xff]  }
 0x261   :  { %v8985_v36 = vpop.f32.mrb[192].mxu0  ;;  %v5351_v37 = vpack.c.bf16 %v4902_v3, %v4901_v34 }
 0x262   :  { %v3443_v38 = vadd.f32 %v11113_v15, %v8985_v36  ;;  %v3434_v12 = vpop.f32.mrb[193].mxu0 }
 0x263   :  { %v3435_v39 = vadd.f32 %v11113_v15, %v3434_v12  ;;  %v8986_v44 = vpop.f32.mrb[194].mxu0  ;;  %8381 = vmatprep.subr.bf16.mxu1 %v5351_v37 }
 0x264   :  { %v3446_v45 = vadd.f32 %v11113_v15, %v8986_v44  ;;  %v3437_v46 = vpop.f32.mrb[195].mxu0  ;;  %8382 = vmatpush3.bf16.msra.mxu1 %v11429_v56  ;;  %v4907_v57 = vmax.f32 %v3443_v38, 0.0  ;;  %v7965_v56 = vcombine.low %v11365_v35, %v11370_v40  ;;  %v10104_v40 = vld [vmem:[%s12977_s0 + $0x4d0] sm:$0xff]  }
 0x265   :  { %v3438_v54 = vadd.f32 %v11113_v15, %v3437_v46  ;;  %8383 = vmatprep.subr.bf16.mxu1 %v5352_v48  ;;  %v4905_v51 = vmax.f32 %v3435_v39, 0.0  ;;  %v10109_v46 = vld [vmem:[%s12977_s0 + $0x4f8] sm:$0xff]  }
 0x266   :  { %v4908_v50 = vmax.f32 %v3446_v45, 0.0  ;;  %9092 = vmatmul.mubr.msk.bf16.gmra.mrb[44].mxu0 %vm1859_vm0, %v10101_v42 }
 0x267   :  { %v4906_v52 = vmax.f32 %v3438_v54, 0.0  ;;  %9095 = vmatprep.mubr.msk.bf16.mxu0 %vm1859_vm0, %v10102_v8 }
 0x268   :  { %v11510_v55 = vpack.c.bf16 %v4908_v50, %v4907_v57  ;;  %8384 = vmatpush3.bf16.msra.mxu1 %v11427_v0  ;;  %v10110_v50 = vld [vmem:[%s12977_s0 + $0x500] sm:$0xff]  }
 0x269   :  { %v11515_v58 = vpack.c.bf16 %v4906_v52, %v4905_v51  ;;  %v8989_v59 = vpop.f32.mrb[196].mxu0 }
 0x26a   :  { %v3459_v60 = vadd.f32 %v11113_v15, %v8989_v59  ;;  %v3450_v61 = vpop.f32.mrb[197].mxu0 }
 0x26b   :  { %v3451_v28 = vadd.f32 %v11113_v15, %v3450_v61  ;;  %v8990_v35 = vpop.f32.mrb[198].mxu0  ;;  %5911 = vmatmul.mubr.bf16.vlgmr.msra.gmra.mrb[72].mxu1 %v7965_v56 }
 0x26c   :  { %v3462_v0 = vadd.f32 %v11113_v15, %v8990_v35  ;;  %v3453_v1 = vpop.f32.mrb[199].mxu0  ;;  %5951 = vmatprep.mubr.bf16.mxu1 %v7968_v53  ;;  %v4911_v41 = vmax.f32 %v3459_v60, 0.0 }
 0x26d   :  { %v3454_v2 = vadd.f32 %v11113_v15, %v3453_v1  ;;  %v4909_v5 = vmax.f32 %v3451_v28, 0.0  ;;  %v10111_v1 = vld [vmem:[%s12977_s0 + $0x508] sm:$0xff]  }
 0x26e   :  { %v4912_v9 = vmax.f32 %v3462_v0, 0.0  ;;  %9096 = vmatmul.mubr.msk.bf16.gmra.mrb[48].mxu0 %vm1859_vm0, %v10103_v27 }
 0x26f   :  { %v4910_v16 = vmax.f32 %v3454_v2, 0.0  ;;  %9099 = vmatprep.mubr.msk.bf16.mxu0 %vm1859_vm0, %v10104_v40 }
 0x270   :  { %v11529_v43 = vpack.c.bf16 %v4912_v9, %v4911_v41  ;;  %v10112_v9 = vld [vmem:[%s12977_s0 + $0x510] sm:$0xff]  }
 0x271   :  { %v11531_v7 = vpack.c.bf16 %v4910_v16, %v4909_v5  ;;  %v8993_v17 = vpop.f32.mrb[200].mxu0 }
 0x272   :  { %v3475_v15 = vadd.f32 %v11536_v19, %v8993_v17  ;;  %v3466_v6 = vpop.f32.mrb[201].mxu0 }
 0x273   :  { %v3467_v10 = vadd.f32 %v11536_v19, %v3466_v6  ;;  %v8994_v11 = vpop.f32.mrb[202].mxu0 }
 0x274   :  { %v3478_v25 = vadd.f32 %v11536_v19, %v8994_v11  ;;  %v3469_v14 = vpop.f32.mrb[203].mxu0  ;;  %v4915_v18 = vmax.f32 %v3475_v15, 0.0 }
 0x275   :  { %v3470_v20 = vadd.f32 %v11536_v19, %v3469_v14  ;;  %v4913_v62 = vmax.f32 %v3467_v10, 0.0 }
 0x276   :  { %v4916_v21 = vmax.f32 %v3478_v25, 0.0  ;;  %9100 = vmatmul.mubr.msk.bf16.gmra.mrb[52].mxu0 %vm1859_vm0, %v10105_v49 }
 0x277   :  { %v4914_v29 = vmax.f32 %v3470_v20, 0.0  ;;  %9103 = vmatprep.mubr.msk.bf16.mxu0 %vm1859_vm0, %v10106_v13 }
 0x278   :  { %v11550_v23 = vpack.c.bf16 %v4916_v21, %v4915_v18 }
 0x279   :  { %v11552_v22 = vpack.c.bf16 %v4914_v29, %v4913_v62  ;;  %v8997_v24 = vpop.f32.mrb[204].mxu0  ;;  %v10114_v62 = vld [vmem:[%s12977_s0 + $0x520] sm:$0xff]  }
 0x27a   :  { %v3491_v26 = vadd.f32 %v11536_v19, %v8997_v24  ;;  %v3482_v30 = vpop.f32.mrb[205].mxu0 }
 0x27b   :  { %v3483_v31 = vadd.f32 %v11536_v19, %v3482_v30  ;;  %v8998_v33 = vpop.f32.mrb[206].mxu0 }
 0x27c   :  { %v3494_v34 = vadd.f32 %v11536_v19, %v8998_v33  ;;  %v3485_v3 = vpop.f32.mrb[207].mxu0  ;;  %v4919_v36 = vmax.f32 %v3491_v26, 0.0 }
 0x27d   :  { %v3486_v48 = vadd.f32 %v11536_v19, %v3485_v3  ;;  %v4917_v38 = vmax.f32 %v3483_v31, 0.0 }
 0x27e   :  { %v4920_v37 = vmax.f32 %v3494_v34, 0.0  ;;  %9104 = vmatmul.mubr.msk.bf16.gmra.mrb[56].mxu0 %vm1859_vm0, %v10107_v4 }
 0x27f   :  { %v4918_v12 = vmax.f32 %v3486_v48, 0.0  ;;  %9107 = vmatprep.mubr.msk.bf16.mxu0 %vm1859_vm0, %v10108_v32 }
 0x280   :  { %v11566_v42 = vpack.c.bf16 %v4920_v37, %v4919_v36 }
 0x281   :  { %v11568_v39 = vpack.c.bf16 %v4918_v12, %v4917_v38  ;;  %v9001_v44 = vpop.f32.mrb[208].mxu0  ;;  %v10116_v38 = vld [vmem:[%s12977_s0 + $0x530] sm:$0xff]  }
 0x282   :  { %v3507_v8 = vadd.f32 %v11536_v19, %v9001_v44  ;;  %v3498_v45 = vpop.f32.mrb[209].mxu0 }
 0x283   :  { %v3499_v54 = vadd.f32 %v11536_v19, %v3498_v45  ;;  %v9002_v57 = vpop.f32.mrb[210].mxu0 }
 0x284   :  { %v3510_v51 = vadd.f32 %v11536_v19, %v9002_v57  ;;  %v3501_v52 = vpop.f32.mrb[211].mxu0  ;;  %v4923_v53 = vmax.f32 %v3507_v8, 0.0 }
 0x285   :  { %v3502_v56 = vadd.f32 %v11536_v19, %v3501_v52  ;;  %v4921_v60 = vmax.f32 %v3499_v54, 0.0 }
 0x286   :  { %v4924_v59 = vmax.f32 %v3510_v51, 0.0  ;;  %9108 = vmatmul.mubr.msk.bf16.gmra.mrb[60].mxu0 %vm1859_vm0, %v10109_v46 }
 0x287   :  { %v4922_v61 = vmax.f32 %v3502_v56, 0.0  ;;  %9111 = vmatprep.mubr.msk.bf16.mxu0 %vm1859_vm0, %v10110_v50 }
 0x288   :  { %v5362_v27 = vpack.c.bf16 %v4924_v59, %v4923_v53 }
 0x289   :  { %v5361_v28 = vpack.c.bf16 %v4922_v61, %v4921_v60  ;;  %v9005_v35 = vpop.f32.mrb[212].mxu0  ;;  %v10118_v60 = vld [vmem:[%s12977_s0 + $0x540] sm:$0xff]  }
 0x28a   :  { %v3523_v40 = vadd.f32 %v11536_v19, %v9005_v35  ;;  %v3514_v0 = vpop.f32.mrb[213].mxu0  ;;  %v11643_v35 = vld [vmem:[%s12980_s3 + $0xb8] sm:$0xff] }
 0x28b   :  { %v3515_v2 = vadd.f32 %v11536_v19, %v3514_v0  ;;  %v9006_v41 = vpop.f32.mrb[214].mxu0  ;;  %8391 = vmatprep.subr.bf16.mxu1 %v5361_v28  ;;  %v11638_v28 = vld [vmem:[%s12980_s3 + $0x38] sm:$0xff] }
 0x28c   :  { %v3526_v5 = vadd.f32 %v11536_v19, %v9006_v41  ;;  %v3517_v16 = vpop.f32.mrb[215].mxu0  ;;  %8392 = vmatpush3.bf16.msra.mxu1 %v11515_v58  ;;  %v4927_v15 = vmax.f32 %v3523_v40, 0.0  ;;  %v10113_v58 = vld [vmem:[%s12977_s0 + $0x518] sm:$0xff]  }
 0x28d   :  { %v3518_v17 = vadd.f32 %v11536_v19, %v3517_v16  ;;  %8393 = vmatprep.subr.bf16.mxu1 %v5362_v27  ;;  %v4925_v49 = vmax.f32 %v3515_v2, 0.0 }
 0x28e   :  { %v4928_v6 = vmax.f32 %v3526_v5, 0.0  ;;  %9112 = vmatmul.mubr.msk.bf16.gmra.mrb[64].mxu0 %vm1859_vm0, %v10111_v1 }
 0x28f   :  { %v4926_v10 = vmax.f32 %v3518_v17, 0.0  ;;  %9115 = vmatprep.mubr.msk.bf16.mxu0 %vm1859_vm0, %v10112_v9  ;;  %v7970_v9 = vcombine.high %v11638_v28, %v11643_v35 }
 0x290   :  { %v5364_v11 = vpack.c.bf16 %v4928_v6, %v4927_v15  ;;  %8394 = vmatpush3.bf16.msra.mxu1 %v11510_v55  ;;  %v10119_v6 = vld [vmem:[%s12977_s0 + $0x548] sm:$0xff]  }
 0x291   :  { %v5363_v13 = vpack.c.bf16 %v4926_v10, %v4925_v49  ;;  %v9009_v25 = vpop.f32.mrb[216].mxu0 }
 0x292   :  { %v3539_v14 = vadd.f32 %v11536_v19, %v9009_v25  ;;  %v3530_v20 = vpop.f32.mrb[217].mxu0 }
 0x293   :  { %v3531_v18 = vadd.f32 %v11536_v19, %v3530_v20  ;;  %v9010_v21 = vpop.f32.mrb[218].mxu0  ;;  %8395 = vmatprep.subr.bf16.mxu1 %v5363_v13 }
 0x294   :  { %v3542_v29 = vadd.f32 %v11536_v19, %v9010_v21  ;;  %v3533_v55 = vpop.f32.mrb[219].mxu0  ;;  %8396 = vmatpush3.bf16.msra.mxu1 %v11531_v7  ;;  %v4931_v26 = vmax.f32 %v3539_v14, 0.0  ;;  %v10115_v7 = vld [vmem:[%s12977_s0 + $0x528] sm:$0xff]  }
 0x295   :  { %v3534_v24 = vadd.f32 %v11536_v19, %v3533_v55  ;;  %8397 = vmatprep.subr.bf16.mxu1 %v5364_v11  ;;  %v4929_v4 = vmax.f32 %v3531_v18, 0.0  ;;  %v10121_v55 = vld [vmem:[%s12977_s0 + $0x558] sm:$0xff]  }
 0x296   :  { %v4932_v30 = vmax.f32 %v3542_v29, 0.0  ;;  %9116 = vmatmul.mubr.msk.bf16.gmra.mrb[68].mxu0 %vm1859_vm0, %v10113_v58 }
 0x297   :  { %v4930_v31 = vmax.f32 %v3534_v24, 0.0  ;;  %9119 = vmatprep.mubr.msk.bf16.mxu0 %vm1859_vm0, %v10114_v62 }
 0x298   :  { %v5366_v33 = vpack.c.bf16 %v4932_v30, %v4931_v26  ;;  %8398 = vmatpush3.bf16.msra.mxu1 %v11529_v43  ;;  %v10122_v30 = vld [vmem:[%s12977_s0 + $0x560] sm:$0xff]  }
 0x299   :  { %v5365_v32 = vpack.c.bf16 %v4930_v31, %v4929_v4  ;;  %v9013_v34 = vpop.f32.mrb[220].mxu0 }
 0x29a   :  { %v3555_v3 = vadd.f32 %v11536_v19, %v9013_v34  ;;  %v3546_v48 = vpop.f32.mrb[221].mxu0 }
 0x29b   :  { %v3547_v36 = vadd.f32 %v11536_v19, %v3546_v48  ;;  %v9014_v37 = vpop.f32.mrb[222].mxu0  ;;  %8399 = vmatprep.subr.bf16.mxu1 %v5365_v32 }
 0x29c   :  { %v3558_v12 = vadd.f32 %v11536_v19, %v9014_v37  ;;  %v3549_v43 = vpop.f32.mrb[223].mxu0  ;;  %8400 = vmatpush3.bf16.msra.mxu1 %v11552_v22  ;;  %v4935_v8 = vmax.f32 %v3555_v3, 0.0  ;;  %v10117_v22 = vld [vmem:[%s12977_s0 + $0x538] sm:$0xff]  }
 0x29d   :  { %v3550_v44 = vadd.f32 %v11536_v19, %v3549_v43  ;;  %8401 = vmatprep.subr.bf16.mxu1 %v5366_v33  ;;  %v4933_v46 = vmax.f32 %v3547_v36, 0.0  ;;  %v9253_v33 = vpop.f32.mrb[0].mxu1 }
 0x29e   :  { %v4936_v45 = vmax.f32 %v3558_v12, 0.0  ;;  %9120 = vmatmul.mubr.msk.bf16.gmra.mrb[72].mxu0 %vm1859_vm0, %v10115_v7  ;;  %v4506_v34 = vpop.f32.mrb[1].mxu1  ;;  %v4515_v43 = vadd.f32 %v11536_v19, %v9253_v33 }
 0x29f   :  { %v4934_v54 = vmax.f32 %v3550_v44, 0.0  ;;  %9123 = vmatprep.mubr.msk.bf16.mxu0 %vm1859_vm0, %v10116_v38  ;;  %v9254_v7 = vpop.f32.mrb[2].mxu1  ;;  %v4507_v44 = vadd.f32 %v11536_v19, %v4506_v34 }
 0x2a0   :  { %v5368_v57 = vpack.c.bf16 %v4936_v45, %v4935_v8  ;;  %8402 = vmatpush3.bf16.msra.mxu1 %v11550_v23  ;;  %v4509_v38 = vpop.f32.mrb[3].mxu1  ;;  %v4518_v8 = vadd.f32 %v11536_v19, %v9254_v7 }
 0x2a1   :  { %v5367_v50 = vpack.c.bf16 %v4934_v54, %v4933_v46  ;;  %v9017_v51 = vpop.f32.mrb[224].mxu0  ;;  %v4510_v54 = vadd.f32 %v11536_v19, %v4509_v38 }
 0x2a2   :  { %v3571_v52 = vadd.f32 %v11536_v19, %v9017_v51  ;;  %v3562_v56 = vpop.f32.mrb[225].mxu0  ;;  %v10123_v51 = vld [vmem:[%s12977_s0 + $0x568] sm:$0xff]  }
 0x2a3   :  { %v3563_v53 = vadd.f32 %v11536_v19, %v3562_v56  ;;  %v9018_v59 = vpop.f32.mrb[226].mxu0  ;;  %8403 = vmatprep.subr.bf16.mxu1 %v5367_v50  ;;  %v5173_v56 = vmax.f32 %v4507_v44, 0.0 }
 0x2a4   :  { %v3574_v61 = vadd.f32 %v11536_v19, %v9018_v59  ;;  %v3565_v23 = vpop.f32.mrb[227].mxu0  ;;  %8404 = vmatpush3.bf16.msra.mxu1 %v11568_v39  ;;  %v4939_v40 = vmax.f32 %v3571_v52, 0.0  ;;  %v7967_v39 = vcombine.low %v11499_v47, %v11504_v63  ;;  %v10120_v63 = vld [vmem:[%s12977_s0 + $0x550] sm:$0xff]   ;;  %v5175_v52 = vmax.f32 %v4515_v43, 0.0 }
 0x2a5   :  { %v3566_v27 = vadd.f32 %v11536_v19, %v3565_v23  ;;  %8405 = vmatprep.subr.bf16.mxu1 %v5368_v57  ;;  %v4937_v1 = vmax.f32 %v3563_v53, 0.0 }
 0x2a6   :  { %v4940_v0 = vmax.f32 %v3574_v61, 0.0  ;;  %9124 = vmatmul.mubr.msk.bf16.gmra.mrb[76].mxu0 %vm1859_vm0, %v10117_v22  ;;  %v5176_v22 = vmax.f32 %v4518_v8, 0.0  ;;  %v5174_v61 = vmax.f32 %v4510_v54, 0.0 }
 0x2a7   :  { %v4938_v2 = vmax.f32 %v3566_v27, 0.0  ;;  %9127 = vmatprep.mubr.msk.bf16.mxu0 %vm1859_vm0, %v10118_v60  ;;  %v10124_v60 = vld [vmem:[%s12977_s0 + $0x570] sm:$0xff]  }
 0x2a8   :  { %v11649_v41 = vpack.c.bf16 %v4940_v0, %v4939_v40  ;;  %8406 = vmatpush3.bf16.msra.mxu1 %v11566_v42  ;;  %v11701_v40 = vpack.c.bf16 %v5176_v22, %v5175_v52  ;;  %v9257_v0 = vpop.f32.mrb[4].mxu1 }
 0x2a9   :  { %v11654_v5 = vpack.c.bf16 %v4938_v2, %v4937_v1  ;;  %v9021_v16 = vpop.f32.mrb[228].mxu0  ;;  %v11704_v2 = vpack.c.bf16 %v5174_v61, %v5173_v56 }
 0x2aa   :  { %v3587_v17 = vadd.f32 %v11536_v19, %v9021_v16  ;;  %v3578_v15 = vpop.f32.mrb[229].mxu0 }
 0x2ab   :  { %v3579_v49 = vadd.f32 %v11536_v19, %v3578_v15  ;;  %v9022_v47 = vpop.f32.mrb[230].mxu0  ;;  %5952 = vmatmul.mubr.bf16.vlgmr.msra.gmra.mrb[76].mxu1 %v7967_v39  ;;  %v4522_v39 = vpop.f32.mrb[5].mxu1 }
 0x2ac   :  { %v3590_v42 = vadd.f32 %v11536_v19, %v9022_v47  ;;  %v3581_v10 = vpop.f32.mrb[231].mxu0  ;;  %5992 = vmatprep.mubr.bf16.mxu1 %v7970_v9  ;;  %v4943_v13 = vmax.f32 %v3587_v17, 0.0  ;;  %v9258_v17 = vpop.f32.mrb[6].mxu1 }
 0x2ad   :  { %v3582_v11 = vadd.f32 %v11536_v19, %v3581_v10  ;;  %v4941_v14 = vmax.f32 %v3579_v49, 0.0  ;;  %v4525_v49 = vpop.f32.mrb[7].mxu1  ;;  %v4534_v10 = vadd.f32 %v11536_v19, %v9258_v17 }
 0x2ae   :  { %v4944_v25 = vmax.f32 %v3590_v42, 0.0  ;;  %9128 = vmatmul.mubr.msk.bf16.gmra.mrb[80].mxu0 %vm1859_vm0, %v10119_v6  ;;  %v4523_v42 = vadd.f32 %v11536_v19, %v4522_v39  ;;  %v9261_v34 = vpop.f32.mrb[8].mxu1 }
 0x2af   :  { %v4942_v20 = vmax.f32 %v3582_v11, 0.0  ;;  %9131 = vmatprep.mubr.msk.bf16.mxu0 %vm1859_vm0, %v10120_v63  ;;  %v4531_v63 = vadd.f32 %v11536_v19, %v9257_v0  ;;  %v4538_v7 = vpop.f32.mrb[9].mxu1  ;;  %v4547_v54 = vadd.f32 %v11536_v19, %v9261_v34 }
 0x2b0   :  { %v11668_v58 = vpack.c.bf16 %v4944_v25, %v4943_v13  ;;  %v4526_v25 = vadd.f32 %v11536_v19, %v4525_v49  ;;  %v9262_v38 = vpop.f32.mrb[10].mxu1 }
 0x2b1   :  { %v11670_v18 = vpack.c.bf16 %v4942_v20, %v4941_v14  ;;  %v9025_v21 = vpop.f32.mrb[232].mxu0  ;;  %v4541_v8 = vpop.f32.mrb[11].mxu1 }
 0x2b2   :  { %v3603_v62 = vadd.f32 %v11536_v19, %v9025_v21  ;;  %v3594_v29 = vpop.f32.mrb[233].mxu0  ;;  %v10125_v21 = vld [vmem:[%s12977_s0 + $0x578] sm:$0xff]   ;;  %v4542_v56 = vadd.f32 %v11536_v19, %v4541_v8 }
 0x2b3   :  { %v3595_v24 = vadd.f32 %v11536_v19, %v3594_v29  ;;  %v9026_v26 = vpop.f32.mrb[234].mxu0  ;;  %v5177_v29 = vmax.f32 %v4523_v42, 0.0 }
 0x2b4   :  { %v3606_v4 = vadd.f32 %v11536_v19, %v9026_v26  ;;  %v3597_v31 = vpop.f32.mrb[235].mxu0  ;;  %v4947_v3 = vmax.f32 %v3603_v62, 0.0  ;;  %v5179_v62 = vmax.f32 %v4531_v63, 0.0  ;;  %v5182_v39 = vmax.f32 %v4542_v56, 0.0 }
 0x2b5   :  { %v3598_v32 = vadd.f32 %v11536_v19, %v3597_v31  ;;  %v4945_v36 = vmax.f32 %v3595_v24, 0.0 }
 0x2b6   :  { %v4948_v48 = vmax.f32 %v3606_v4, 0.0  ;;  %9132 = vmatmul.mubr.msk.bf16.gmra.mrb[84].mxu0 %vm1859_vm0, %v10121_v55  ;;  %v5180_v55 = vmax.f32 %v4534_v10, 0.0  ;;  %v5178_v4 = vmax.f32 %v4526_v25, 0.0 }
 0x2b7   :  { %v4946_v37 = vmax.f32 %v3598_v32, 0.0  ;;  %9135 = vmatprep.mubr.msk.bf16.mxu0 %vm1859_vm0, %v10122_v30  ;;  %v10126_v30 = vld [vmem:[%s12977_s0 + $0x580] sm:$0xff]  }
 0x2b8   :  { %v11684_v12 = vpack.c.bf16 %v4948_v48, %v4947_v3  ;;  %v11725_v32 = vpack.c.bf16 %v5180_v55, %v5179_v62  ;;  %v11728_v48 = vpack.c.bf16 %v5178_v4, %v5177_v29 }
 0x2b9   :  { %v11689_v45 = vpack.c.bf16 %v4946_v37, %v4945_v36  ;;  %v9029_v46 = vpop.f32.mrb[236].mxu0 }
 0x2ba   :  { %v3619_v57 = vadd.f32 %v11536_v19, %v9029_v46  ;;  %v3610_v50 = vpop.f32.mrb[237].mxu0 }
 0x2bb   :  { %v3611_v53 = vadd.f32 %v11536_v19, %v3610_v50  ;;  %v9030_v59 = vpop.f32.mrb[238].mxu0  ;;  %v4550_v50 = vadd.f32 %v11536_v19, %v9262_v38 }
 0x2bc   :  { %v3622_v23 = vadd.f32 %v11536_v19, %v9030_v59  ;;  %v3613_v27 = vpop.f32.mrb[239].mxu0  ;;  %v4951_v9 = vmax.f32 %v3619_v57, 0.0  ;;  %v4539_v57 = vadd.f32 %v11536_v19, %v4538_v7  ;;  %v10127_v59 = vld [vmem:[%s12977_s0 + $0x588] sm:$0xff]  }
 0x2bd   :  { %v3614_v1 = vadd.f32 %v11536_v19, %v3613_v27  ;;  %v4949_v15 = vmax.f32 %v3611_v53, 0.0 }
 0x2be   :  { %v4952_v16 = vmax.f32 %v3622_v23, 0.0  ;;  %9136 = vmatmul.mubr.msk.bf16.gmra.mrb[88].mxu0 %vm1859_vm0, %v10123_v51  ;;  %v5181_v61 = vmax.f32 %v4539_v57, 0.0  ;;  %v5184_v23 = vmax.f32 %v4550_v50, 0.0 }
 0x2bf   :  { %v4950_v6 = vmax.f32 %v3614_v1, 0.0  ;;  %9139 = vmatprep.mubr.msk.bf16.mxu0 %vm1859_vm0, %v10124_v60  ;;  %v5183_v60 = vmax.f32 %v4547_v54, 0.0  ;;  %v10128_v1 = vld [vmem:[%s12977_s0 + $0x590] sm:$0xff]  }
 0x2c0   :  { %v11708_v47 = vpack.c.bf16 %v4952_v16, %v4951_v9  ;;  %v11749_v49 = vpack.c.bf16 %v5182_v39, %v5181_v61 }
 0x2c1   :  { %v11713_v11 = vpack.c.bf16 %v4950_v6, %v4949_v15  ;;  %v9033_v13 = vpop.f32.mrb[240].mxu0  ;;  %v11746_v17 = vpack.c.bf16 %v5184_v23, %v5183_v60  ;;  %v9265_v15 = vpop.f32.mrb[12].mxu1 }
 0x2c2   :  { %v3635_v14 = vadd.f32 %v11536_v19, %v9033_v13  ;;  %v3626_v20 = vpop.f32.mrb[241].mxu0  ;;  %v4554_v63 = vpop.f32.mrb[13].mxu1 }
 0x2c3   :  { %v3627_v24 = vadd.f32 %v11536_v19, %v3626_v20  ;;  %v9034_v26 = vpop.f32.mrb[242].mxu0  ;;  %v9266_v13 = vpop.f32.mrb[14].mxu1  ;;  %v4555_v62 = vadd.f32 %v11536_v19, %v4554_v63 }
 0x2c4   :  { %v3638_v31 = vadd.f32 %v11536_v19, %v9034_v26  ;;  %v3629_v33 = vpop.f32.mrb[243].mxu0  ;;  %v4955_v36 = vmax.f32 %v3635_v14, 0.0  ;;  %v4557_v20 = vpop.f32.mrb[15].mxu1  ;;  %v4566_v29 = vadd.f32 %v11536_v19, %v9266_v13 }
 0x2c5   :  { %v3630_v3 = vadd.f32 %v11536_v19, %v3629_v33  ;;  %v4953_v43 = vmax.f32 %v3627_v24, 0.0  ;;  %v4558_v26 = vadd.f32 %v11536_v19, %v4557_v20  ;;  %v5185_v34 = vmax.f32 %v4555_v62, 0.0  ;;  %v9269_v8 = vpop.f32.mrb[16].mxu1 }
 0x2c6   :  { %v4956_v37 = vmax.f32 %v3638_v31, 0.0  ;;  %9140 = vmatmul.mubr.msk.bf16.gmra.mrb[92].mxu0 %vm1859_vm0, %v10125_v21  ;;  %v4563_v21 = vadd.f32 %v11536_v19, %v9265_v15  ;;  %v10129_v31 = vld [vmem:[%s12977_s0 + $0x598] sm:$0xff]   ;;  %v4570_v57 = vpop.f32.mrb[17].mxu1 }
 0x2c7   :  { %v4954_v44 = vmax.f32 %v3630_v3, 0.0  ;;  %9143 = vmatprep.mubr.msk.bf16.mxu0 %vm1859_vm0, %v10126_v30  ;;  %v4571_v60 = vadd.f32 %v11536_v19, %v4570_v57 }
 0x2c8   :  { %v5378_v46 = vpack.c.bf16 %v4956_v37, %v4955_v36  ;;  %v5187_v33 = vmax.f32 %v4563_v21, 0.0  ;;  %v10130_v36 = vld [vmem:[%s12977_s0 + $0x5a0] sm:$0xff]   ;;  %v5186_v37 = vmax.f32 %v4558_v26, 0.0 }
 0x2c9   :  { %v5377_v51 = vpack.c.bf16 %v4954_v44, %v4953_v43  ;;  %v9037_v52 = vpop.f32.mrb[244].mxu0  ;;  %v5189_v15 = vmax.f32 %v4571_v60, 0.0 }
 0x2ca   :  { %v3651_v22 = vadd.f32 %v11536_v19, %v9037_v52  ;;  %v3642_v53 = vpop.f32.mrb[245].mxu0  ;;  %v11771_v54 = vpack.c.bf16 %v5186_v37, %v5185_v34  ;;  %v9270_v52 = vpop.f32.mrb[18].mxu1 }
 0x2cb   :  { %v3643_v27 = vadd.f32 %v11536_v19, %v3642_v53  ;;  %v9038_v0 = vpop.f32.mrb[246].mxu0  ;;  %8413 = vmatprep.subr.bf16.mxu1 %v5377_v51  ;;  %v4573_v53 = vpop.f32.mrb[19].mxu1  ;;  %v4582_v61 = vadd.f32 %v11536_v19, %v9270_v52 }
 0x2cc   :  { %v3654_v9 = vadd.f32 %v11536_v19, %v9038_v0  ;;  %v3645_v16 = vpop.f32.mrb[247].mxu0  ;;  %8414 = vmatpush3.bf16.msra.mxu1 %v11654_v5  ;;  %v4959_v42 = vmax.f32 %v3651_v22, 0.0  ;;  %v4574_v0 = vadd.f32 %v11536_v19, %v4573_v53  ;;  %v9273_v20 = vpop.f32.mrb[20].mxu1  ;;  %v11820_v53 = vld [vmem:[%s12980_s3 + $0xc0] sm:$0xff] }
 0x2cd   :  { %v3646_v6 = vadd.f32 %v11536_v19, %v3645_v16  ;;  %8415 = vmatprep.subr.bf16.mxu1 %v5378_v46  ;;  %v4957_v25 = vmax.f32 %v3643_v27, 0.0  ;;  %v4586_v62 = vpop.f32.mrb[21].mxu1 }
 0x2ce   :  { %v4960_v10 = vmax.f32 %v3654_v9, 0.0  ;;  %9144 = vmatmul.mubr.msk.bf16.gmra.mrb[96].mxu0 %vm1859_vm0, %v10127_v59  ;;  %v4579_v59 = vadd.f32 %v11536_v19, %v9269_v8  ;;  %v10131_v9 = vld [vmem:[%s12977_s0 + $0x5a8] sm:$0xff]  }
 0x2cf   :  { %v4958_v14 = vmax.f32 %v3646_v6, 0.0  ;;  %9147 = vmatprep.mubr.msk.bf16.mxu0 %vm1859_vm0, %v10128_v1 }
 0x2d0   :  { %v5380_v5 = vpack.c.bf16 %v4960_v10, %v4959_v42  ;;  %8416 = vmatpush3.bf16.msra.mxu1 %v11649_v41  ;;  %v5188_v41 = vmax.f32 %v4566_v29, 0.0  ;;  %v5191_v16 = vmax.f32 %v4579_v59, 0.0  ;;  %v10132_v42 = vld [vmem:[%s12977_s0 + $0x5b0] sm:$0xff]   ;;  %v5190_v10 = vmax.f32 %v4574_v0, 0.0 }
 0x2d1   :  { %v5379_v55 = vpack.c.bf16 %v4958_v14, %v4957_v25  ;;  %v9041_v24 = vpop.f32.mrb[248].mxu0 }
 0x2d2   :  { %v3667_v30 = vadd.f32 %v11536_v19, %v9041_v24  ;;  %v3658_v4 = vpop.f32.mrb[249].mxu0  ;;  %v11768_v44 = vpack.c.bf16 %v5188_v41, %v5187_v33  ;;  %v11793_v21 = vpack.c.bf16 %v5190_v10, %v5189_v15  ;;  %v9274_v24 = vpop.f32.mrb[22].mxu1  ;;  %v4587_v33 = vadd.f32 %v11536_v19, %v4586_v62 }
 0x2d3   :  { %v3659_v3 = vadd.f32 %v11536_v19, %v3658_v4  ;;  %v9042_v7 = vpop.f32.mrb[250].mxu0  ;;  %8417 = vmatprep.subr.bf16.mxu1 %v5379_v55  ;;  %v4589_v4 = vpop.f32.mrb[23].mxu1  ;;  %v4598_v34 = vadd.f32 %v11536_v19, %v9274_v24  ;;  %v10136_v24 = vld [vmem:[%s12977_s0 + $0x5d0] sm:$0xff]  }
 0x2d4   :  { %v3670_v38 = vadd.f32 %v11536_v19, %v9042_v7  ;;  %v3661_v43 = vpop.f32.mrb[251].mxu0  ;;  %8418 = vmatpush3.bf16.msra.mxu1 %v11670_v18  ;;  %v4963_v50 = vmax.f32 %v3667_v30, 0.0  ;;  %v4590_v7 = vadd.f32 %v11536_v19, %v4589_v4  ;;  %v5193_v8 = vmax.f32 %v4587_v33, 0.0  ;;  %v9277_v59 = vpop.f32.mrb[24].mxu1 }
 0x2d5   :  { %v3662_v46 = vadd.f32 %v11536_v19, %v3661_v43  ;;  %8419 = vmatprep.subr.bf16.mxu1 %v5380_v5  ;;  %v4961_v56 = vmax.f32 %v3659_v3, 0.0 }
 0x2d6   :  { %v4964_v51 = vmax.f32 %v3670_v38, 0.0  ;;  %9148 = vmatmul.mubr.msk.bf16.gmra.mrb[100].mxu0 %vm1859_vm0, %v10129_v31  ;;  %v4595_v31 = vadd.f32 %v11536_v19, %v9273_v20  ;;  %v10133_v38 = vld [vmem:[%s12977_s0 + $0x5b8] sm:$0xff]   ;;  %v10135_v20 = vld [vmem:[%s12977_s0 + $0x5c8] sm:$0xff]  }
 0x2d7   :  { %v4962_v22 = vmax.f32 %v3662_v46, 0.0  ;;  %9151 = vmatprep.mubr.msk.bf16.mxu0 %vm1859_vm0, %v10130_v36 }
 0x2d8   :  { %v5382_v18 = vpack.c.bf16 %v4964_v51, %v4963_v50  ;;  %8420 = vmatpush3.bf16.msra.mxu1 %v11668_v58  ;;  %v5192_v58 = vmax.f32 %v4582_v61, 0.0  ;;  %v5195_v43 = vmax.f32 %v4595_v31, 0.0  ;;  %v10134_v50 = vld [vmem:[%s12977_s0 + $0x5c0] sm:$0xff]   ;;  %v5194_v51 = vmax.f32 %v4590_v7, 0.0 }
 0x2d9   :  { %v5381_v23 = vpack.c.bf16 %v4962_v22, %v4961_v56  ;;  %v9045_v27 = vpop.f32.mrb[252].mxu0  ;;  %v11815_v22 = vld [vmem:[%s12980_s3 + $0x40] sm:$0xff] }
 0x2da   :  { %v3683_v1 = vadd.f32 %v11536_v19, %v9045_v27  ;;  %v3674_v39 = vpop.f32.mrb[253].mxu0  ;;  %v11790_v14 = vpack.c.bf16 %v5192_v58, %v5191_v16  ;;  %v11825_v61 = vpack.c.bf16 %v5194_v51, %v5193_v8  ;;  %v7972_v16 = vcombine.high %v11815_v22, %v11820_v53 }
 0x2db   :  { %v3675_v6 = vadd.f32 %v11536_v19, %v3674_v39  ;;  %v9046_v63 = vpop.f32.mrb[254].mxu0  ;;  %8421 = vmatprep.subr.bf16.mxu1 %v5381_v23  ;;  %v4602_v23 = vpop.f32.mrb[25].mxu1 }
 0x2dc   :  { %v3686_v13 = vadd.f32 %v11536_v19, %v9046_v63  ;;  %v3677_v25 = vpop.f32.mrb[255].mxu0  ;;  %8422 = vmatpush3.bf16.msra.mxu1 %v11689_v45  ;;  %v4967_v29 = vmax.f32 %v3683_v1, 0.0  ;;  %v9278_v0 = vpop.f32.mrb[26].mxu1  ;;  %v4603_v63 = vadd.f32 %v11536_v19, %v4602_v23 }
 0x2dd   :  { %v3678_v5 = vadd.f32 %v11536_v19, %v3677_v25  ;;  %8423 = vmatprep.subr.bf16.mxu1 %v5382_v18  ;;  %v4965_v26 = vmax.f32 %v3675_v6, 0.0  ;;  %v4605_v15 = vpop.f32.mrb[27].mxu1  ;;  %v4611_v6 = vadd.f32 %v11536_v19, %v9277_v59 }
 0x2de   :  { %v4968_v55 = vmax.f32 %v3686_v13, 0.0  ;;  %9152 = vmatmul.mubr.msk.bf16.gmra.mrb[104].mxu0 %vm1859_vm0, %v10131_v9  ;;  %v7969_v9 = vcombine.low %v11638_v28, %v11643_v35  ;;  %v4606_v28 = vadd.f32 %v11536_v19, %v4605_v15  ;;  %v9281_v31 = vpop.f32.mrb[28].mxu1 }
 0x2df   :  { %v4966_v30 = vmax.f32 %v3678_v5, 0.0  ;;  %9155 = vmatprep.mubr.msk.bf16.mxu0 %vm1859_vm0, %v10132_v42  ;;  %v4614_v42 = vadd.f32 %v11536_v19, %v9278_v0  ;;  %v5199_v5 = vmax.f32 %v4611_v6, 0.0 }
 0x2e0   :  { %v5384_v45 = vpack.c.bf16 %v4968_v55, %v4967_v29  ;;  %8424 = vmatpush3.bf16.msra.mxu1 %v11684_v12  ;;  %v5196_v12 = vmax.f32 %v4598_v34, 0.0 }
 0x2e1   :  { %v5383_v41 = vpack.c.bf16 %v4966_v30, %v4965_v26  ;;  %v9049_v3 = vpop.f32.mrb[0].mxu0  ;;  %v5200_v62 = vmax.f32 %v4614_v42, 0.0  ;;  %v5198_v26 = vmax.f32 %v4606_v28, 0.0 }
 0x2e2   :  { %v3699_v36 = vadd.f32 %v11536_v19, %v9049_v3  ;;  %v3690_v37 = vpop.f32.mrb[1].mxu0  ;;  %v11822_v18 = vpack.c.bf16 %v5196_v12, %v5195_v43  ;;  %v4627_v12 = vadd.f32 %v11536_v19, %v9281_v31 }
 0x2e3   :  { %v3691_v46 = vadd.f32 %v11536_v19, %v3690_v37  ;;  %v9050_v57 = vpop.f32.mrb[2].mxu0  ;;  %8425 = vmatprep.subr.bf16.mxu1 %v5383_v41  ;;  %v4618_v41 = vpop.f32.mrb[29].mxu1 }
 0x2e4   :  { %v3702_v52 = vadd.f32 %v11536_v19, %v9050_v57  ;;  %v3693_v56 = vpop.f32.mrb[3].mxu0  ;;  %8426 = vmatpush3.bf16.msra.mxu1 %v11713_v11  ;;  %v4971_v11 = vmax.f32 %v3699_v36, 0.0  ;;  %v9282_v36 = vpop.f32.mrb[30].mxu1  ;;  %v5203_v23 = vmax.f32 %v4627_v12, 0.0  ;;  %v10140_v12 = vld [vmem:[%s12977_s0 + $0x5f0] sm:$0xff]  }
 0x2e5   :  { %v3694_v60 = vadd.f32 %v11536_v19, %v3693_v56  ;;  %8427 = vmatprep.subr.bf16.mxu1 %v5384_v45  ;;  %v4969_v1 = vmax.f32 %v3691_v46, 0.0  ;;  %v11851_v45 = vpack.c.bf16 %v5200_v62, %v5199_v5  ;;  %v4621_v43 = vpop.f32.mrb[31].mxu1  ;;  %v4619_v46 = vadd.f32 %v11536_v19, %v4618_v41 }
 0x2e6   :  { %v4972_v27 = vmax.f32 %v3702_v52, 0.0  ;;  %9156 = vmatmul.mubr.msk.bf16.gmra.mrb[108].mxu0 %vm1859_vm0, %v10133_v38  ;;  %v4630_v57 = vadd.f32 %v11536_v19, %v9282_v36  ;;  %v4622_v52 = vadd.f32 %v11536_v19, %v4621_v43 }
 0x2e7   :  { %v4970_v39 = vmax.f32 %v3694_v60, 0.0  ;;  %9159 = vmatprep.mubr.msk.bf16.mxu0 %vm1859_vm0, %v10134_v50  ;;  %v10137_v60 = vld [vmem:[%s12977_s0 + $0x5d8] sm:$0xff]  }
 0x2e8   :  { %v11833_v58 = vpack.c.bf16 %v4972_v27, %v4971_v11  ;;  %8428 = vmatpush3.bf16.msra.mxu1 %v11708_v47  ;;  %v5197_v47 = vmax.f32 %v4603_v63, 0.0  ;;  %v5201_v11 = vmax.f32 %v4619_v46, 0.0  ;;  %v5204_v27 = vmax.f32 %v4630_v57, 0.0  ;;  %v9285_v63 = vpop.f32.mrb[32].mxu1 }
 0x2e9   :  { %v11839_v10 = vpack.c.bf16 %v4970_v39, %v4969_v1  ;;  %v9053_v13 = vpop.f32.mrb[4].mxu0  ;;  %v10138_v39 = vld [vmem:[%s12977_s0 + $0x5e0] sm:$0xff]   ;;  %v4634_v28 = vpop.f32.mrb[33].mxu1 }
 0x2ea   :  { %v3715_v35 = vadd.f32 %v11536_v19, %v9053_v13  ;;  %v3706_v25 = vpop.f32.mrb[5].mxu0  ;;  %v11854_v34 = vpack.c.bf16 %v5198_v26, %v5197_v47  ;;  %v11875_v6 = vpack.c.bf16 %v5204_v27, %v5203_v23 }
 0x2eb   :  { %v3707_v29 = vadd.f32 %v11536_v19, %v3706_v25  ;;  %v9054_v55 = vpop.f32.mrb[6].mxu0  ;;  %5993 = vmatmul.mubr.bf16.vlgmr.msra.gmra.mrb[80].mxu1 %v7969_v9  ;;  %v5202_v9 = vmax.f32 %v4622_v52, 0.0 }
 0x2ec   :  { %v3718_v30 = vadd.f32 %v11536_v19, %v9054_v55  ;;  %v3709_v4 = vpop.f32.mrb[7].mxu0  ;;  %6033 = vmatprep.mubr.bf16.mxu1 %v7972_v16  ;;  %v4975_v3 = vmax.f32 %v3715_v35, 0.0  ;;  %v4643_v55 = vadd.f32 %v11536_v19, %v9285_v63 }
 0x2ed   :  { %v3710_v33 = vadd.f32 %v11536_v19, %v3709_v4  ;;  %v4973_v37 = vmax.f32 %v3707_v29, 0.0  ;;  %v11878_v13 = vpack.c.bf16 %v5202_v9, %v5201_v11 }
 0x2ee   :  { %v4976_v7 = vmax.f32 %v3718_v30, 0.0  ;;  %9160 = vmatmul.mubr.msk.bf16.gmra.mrb[112].mxu0 %vm1859_vm0, %v10135_v20  ;;  %v9286_v20 = vpop.f32.mrb[34].mxu1 }
 0x2ef   :  { %v4974_v38 = vmax.f32 %v3710_v33, 0.0  ;;  %9163 = vmatprep.mubr.msk.bf16.mxu0 %vm1859_vm0, %v10136_v24  ;;  %v4637_v62 = vpop.f32.mrb[35].mxu1  ;;  %v4635_v24 = vadd.f32 %v11536_v19, %v4634_v28  ;;  %v4646_v26 = vadd.f32 %v11536_v19, %v9286_v20 }
 0x2f0   :  { %v11858_v8 = vpack.c.bf16 %v4976_v7, %v4975_v3  ;;  %v4638_v31 = vadd.f32 %v11536_v19, %v4637_v62  ;;  %v10139_v3 = vld [vmem:[%s12977_s0 + $0x5e8] sm:$0xff]   ;;  %v5207_v7 = vmax.f32 %v4643_v55, 0.0 }
 0x2f1   :  { %v11863_v50 = vpack.c.bf16 %v4974_v38, %v4973_v37  ;;  %v9057_v51 = vpop.f32.mrb[8].mxu0  ;;  %v5205_v36 = vmax.f32 %v4635_v24, 0.0  ;;  %v5208_v37 = vmax.f32 %v4646_v26, 0.0 }
 0x2f2   :  { %v3731_v56 = vadd.f32 %v11536_v19, %v9057_v51  ;;  %v3722_v59 = vpop.f32.mrb[9].mxu0  ;;  %v5206_v46 = vmax.f32 %v4638_v31, 0.0 }
 0x2f3   :  { %v3723_v0 = vadd.f32 %v11536_v19, %v3722_v59  ;;  %v9058_v1 = vpop.f32.mrb[10].mxu0  ;;  %v11899_v52 = vpack.c.bf16 %v5208_v37, %v5207_v7  ;;  %v11925_v7 = vld [vmem:[%s12979_s2] ss:$0 sm:$0xff] }
 0x2f4   :  { %v3734_v16 = vadd.f32 %v11536_v19, %v9058_v1  ;;  %v3725_v15 = vpop.f32.mrb[11].mxu0  ;;  %v4979_v35 = vmax.f32 %v3731_v56, 0.0  ;;  %v9289_v56 = vpop.f32.mrb[36].mxu1 }
 0x2f5   :  { %v3726_v42 = vadd.f32 %v11536_v19, %v3725_v15  ;;  %v4977_v5 = vmax.f32 %v3723_v0, 0.0  ;;  %v4650_v23 = vpop.f32.mrb[37].mxu1  ;;  %v4659_v15 = vadd.f32 %v11536_v19, %v9289_v56 }
 0x2f6   :  { %v4980_v25 = vmax.f32 %v3734_v16, 0.0  ;;  %9164 = vmatmul.mubr.msk.bf16.gmra.mrb[116].mxu0 %vm1859_vm0, %v10137_v60  ;;  %v11902_v60 = vpack.c.bf16 %v5206_v46, %v5205_v36  ;;  %v9290_v0 = vpop.f32.mrb[38].mxu1  ;;  %v4651_v63 = vadd.f32 %v11536_v19, %v4650_v23 }
 0x2f7   :  { %v4978_v47 = vmax.f32 %v3726_v42, 0.0  ;;  %9167 = vmatprep.mubr.msk.bf16.mxu0 %vm1859_vm0, %v10138_v39  ;;  %v4653_v9 = vpop.f32.mrb[39].mxu1  ;;  %v4662_v42 = vadd.f32 %v11536_v19, %v9290_v0  ;;  %v5211_v62 = vmax.f32 %v4659_v15, 0.0 }
 0x2f8   :  { %v11882_v29 = vpack.c.bf16 %v4980_v25, %v4979_v35  ;;  %v4654_v25 = vadd.f32 %v11536_v19, %v4653_v9  ;;  %v5209_v55 = vmax.f32 %v4651_v63, 0.0  ;;  %v9293_v26 = vpop.f32.mrb[40].mxu1 }
 0x2f9   :  { %v11887_v30 = vpack.c.bf16 %v4978_v47, %v4977_v5  ;;  %v9061_v4 = vpop.f32.mrb[12].mxu0  ;;  %v10141_v47 = vld [vmem:[%s12977_s0 + $0x5f8] sm:$0xff]   ;;  %v5212_v24 = vmax.f32 %v4662_v42, 0.0  ;;  %v4675_v46 = vadd.f32 %v11925_v7, %v9293_v26 }
 0x2fa   :  { %v3747_v33 = vadd.f32 %v11536_v19, %v9061_v4  ;;  %v3738_v41 = vpop.f32.mrb[13].mxu0 }
 0x2fb   :  { %v3739_v38 = vadd.f32 %v11536_v19, %v3738_v41  ;;  %v9062_v43 = vpop.f32.mrb[14].mxu0  ;;  %v5210_v41 = vmax.f32 %v4654_v25, 0.0 }
 0x2fc   :  { %v3750_v57 = vadd.f32 %v11536_v19, %v9062_v43  ;;  %v3741_v51 = vpop.f32.mrb[15].mxu0  ;;  %v4983_v11 = vmax.f32 %v3747_v33, 0.0  ;;  %v10142_v33 = vld [vmem:[%s12977_s0 + $0x600] sm:$0xff]  }
 0x2fd   :  { %v3742_v59 = vadd.f32 %v11536_v19, %v3741_v51  ;;  %v4981_v1 = vmax.f32 %v3739_v38, 0.0  ;;  %v11928_v38 = vpack.c.bf16 %v5212_v24, %v5211_v62  ;;  %v10143_v24 = vld [vmem:[%s12977_s0 + $0x608] sm:$0xff]  }
 0x2fe   :  { %v4984_v27 = vmax.f32 %v3750_v57, 0.0  ;;  %9168 = vmatmul.mubr.msk.bf16.gmra.mrb[120].mxu0 %vm1859_vm0, %v10139_v3  ;;  %v4666_v3 = vpop.f32.mrb[41].mxu1 }
 0x2ff   :  { %v4982_v39 = vmax.f32 %v3742_v59, 0.0  ;;  %9171 = vmatprep.mubr.msk.bf16.mxu0 %vm1859_vm0, %v10140_v12  ;;  %v9294_v43 = vpop.f32.mrb[42].mxu1  ;;  %v11931_v12 = vpack.c.bf16 %v5210_v41, %v5209_v55 }
 0x300   :  { %v11906_v16 = vpack.c.bf16 %v4984_v27, %v4983_v11  ;;  %v4669_v57 = vpop.f32.mrb[43].mxu1  ;;  %v5215_v27 = vmax.f32 %v4675_v46, 0.0  ;;  %v4678_v9 = vadd.f32 %v11925_v7, %v9294_v43 }
 0x301   :  { %v11911_v28 = vpack.c.bf16 %v4982_v39, %v4981_v1  ;;  %v9065_v35 = vpop.f32.mrb[16].mxu0  ;;  %v9297_v59 = vpop.f32.mrb[44].mxu1  ;;  %v4667_v39 = vadd.f32 %v11925_v7, %v4666_v3  ;;  %v4670_v15 = vadd.f32 %v11925_v7, %v4669_v57 }
 0x302   :  { %v3763_v20 = vadd.f32 %v11536_v19, %v9065_v35  ;;  %v3754_v5 = vpop.f32.mrb[17].mxu0  ;;  %v4682_v0 = vpop.f32.mrb[45].mxu1  ;;  %v4691_v25 = vadd.f32 %v11925_v7, %v9297_v59 }
 0x303   :  { %v3755_v4 = vadd.f32 %v11536_v19, %v3754_v5  ;;  %v9066_v31 = vpop.f32.mrb[18].mxu0  ;;  %v9298_v63 = vpop.f32.mrb[46].mxu1  ;;  %v5213_v26 = vmax.f32 %v4667_v39, 0.0 }
 0x304   :  { %v3766_v36 = vadd.f32 %v11925_v7, %v9066_v31  ;;  %v3757_v37 = vpop.f32.mrb[19].mxu0  ;;  %v4987_v51 = vmax.f32 %v3763_v20, 0.0  ;;  %v4683_v20 = vadd.f32 %v11925_v7, %v4682_v0  ;;  %v4694_v5 = vadd.f32 %v11925_v7, %v9298_v63 }
 0x305   :  { %v3758_v19 = vadd.f32 %v11925_v7, %v3757_v37  ;;  %v4985_v23 = vmax.f32 %v3755_v4, 0.0  ;;  %v5216_v4 = vmax.f32 %v4678_v9, 0.0  ;;  %v5214_v31 = vmax.f32 %v4670_v15, 0.0 }
 0x306   :  { %v4988_v56 = vmax.f32 %v3766_v36, 0.0  ;;  %9172 = vmatmul.mubr.msk.bf16.gmra.mrb[124].mxu0 %vm1859_vm0, %v10141_v47  ;;  %v4685_v47 = vpop.f32.mrb[47].mxu1  ;;  %v10144_v36 = vld [vmem:[%s12977_s0 + $0x610] sm:$0xff]   ;;  %v5219_v37 = vmax.f32 %v4691_v25, 0.0  ;;  %v5220_v43 = vmax.f32 %v4694_v5, 0.0 }
 0x307   :  { %v4986_v11 = vmax.f32 %v3758_v19, 0.0  ;;  %9175 = vmatprep.mubr.msk.bf16.mxu0 %vm1859_vm0, %v10142_v33  ;;  %v9301_v33 = vpop.f32.mrb[48].mxu1  ;;  %v4686_v39 = vadd.f32 %v11925_v7, %v4685_v47 }
 0x308   :  { %v5394_v1 = vpack.c.bf16 %v4988_v56, %v4987_v51  ;;  %v4698_v19 = vpop.f32.mrb[49].mxu1  ;;  %v11952_v51 = vpack.c.bf16 %v5216_v4, %v5215_v27  ;;  %v11954_v56 = vpack.c.bf16 %v5214_v31, %v5213_v26  ;;  %v11957_v0 = vpack.c.bf16 %v5220_v43, %v5219_v37 }
 0x309   :  { %v5393_v42 = vpack.c.bf16 %v4986_v11, %v4985_v23  ;;  %v9069_v35 = vpop.f32.mrb[20].mxu0  ;;  %v9302_v59 = vpop.f32.mrb[50].mxu1  ;;  %v5217_v11 = vmax.f32 %v4683_v20, 0.0  ;;  %v5218_v25 = vmax.f32 %v4686_v39, 0.0  ;;  %v4699_v47 = vadd.f32 %v11925_v7, %v4698_v19 }
 0x30a   :  { %v3779_v62 = vadd.f32 %v11925_v7, %v9069_v35  ;;  %v3770_v55 = vpop.f32.mrb[21].mxu0  ;;  %v4701_v9 = vpop.f32.mrb[51].mxu1 }
 0x30b   :  { %v3771_v41 = vadd.f32 %v11925_v7, %v3770_v55  ;;  %v9070_v3 = vpop.f32.mrb[22].mxu0  ;;  %8435 = vmatprep.subr.bf16.mxu1 %v5393_v42  ;;  %v8275_v27 = vpop.f32.mrb[52].mxu1  ;;  %v11965_v4 = vpack.c.bf16 %v5218_v25, %v5217_v11  ;;  %v4702_v31 = vadd.f32 %v11925_v7, %v4701_v9 }
 0x30c   :  { %v3782_v46 = vadd.f32 %v11925_v7, %v9070_v3  ;;  %v3773_v57 = vpop.f32.mrb[23].mxu0  ;;  %8436 = vmatpush3.bf16.msra.mxu1 %v11839_v10  ;;  %v4991_v15 = vmax.f32 %v3779_v62, 0.0  ;;  %v4707_v10 = vadd.f32 %v11925_v7, %v9301_v33  ;;  %v8276_v5 = vpop.f32.mrb[53].mxu1 }
 0x30d   :  { %v3774_v23 = vadd.f32 %v11925_v7, %v3773_v57  ;;  %8437 = vmatprep.subr.bf16.mxu1 %v5394_v1  ;;  %v4989_v42 = vmax.f32 %v3771_v41, 0.0  ;;  %v8278_v55 = vpop.f32.mrb[54].mxu1  ;;  %v8277_v37 = vadd.f32 %v8276_v5, %v8275_v27  ;;  %v10146_v57 = vld [vmem:[%s12977_s0 + $0x620] sm:$0xff]  }
 0x30e   :  { %v4992_v63 = vmax.f32 %v3782_v46, 0.0  ;;  %9176 = vmatmul.mubr.msk.bf16.gmra.mrb[128].mxu0 %vm1859_vm0, %v10143_v24  ;;  %v5223_v20 = vmax.f32 %v4707_v10, 0.0  ;;  %v4710_v24 = vadd.f32 %v11925_v7, %v9302_v59  ;;  %v8279_v33 = vpop.f32.mrb[55].mxu1 }
 0x30f   :  { %v4990_v35 = vmax.f32 %v3774_v23, 0.0  ;;  %9179 = vmatprep.mubr.msk.bf16.mxu0 %vm1859_vm0, %v10144_v36  ;;  %v5221_v36 = vmax.f32 %v4699_v47, 0.0  ;;  %v8297_v43 = vpop.f32.mrb[56].mxu1  ;;  %v5222_v23 = vmax.f32 %v4702_v31, 0.0 }
 0x310   :  { %v5396_v1 = vpack.c.bf16 %v4992_v63, %v4991_v15  ;;  %8438 = vmatpush3.bf16.msra.mxu1 %v11833_v58  ;;  %v10145_v58 = vld [vmem:[%s12977_s0 + $0x618] sm:$0xff]   ;;  %v5224_v59 = vmax.f32 %v4710_v24, 0.0  ;;  %v8298_v11 = vpop.f32.mrb[57].mxu1  ;;  %v8280_v15 = vadd.f32 %v8279_v33, %v8278_v55 }
 0x311   :  { %v5395_v62 = vpack.c.bf16 %v4990_v35, %v4989_v42  ;;  %v9073_v26 = vpop.f32.mrb[24].mxu0  ;;  %v8300_v63 = vpop.f32.mrb[58].mxu1  ;;  %v11982_v42 = vpack.c.bf16 %v5222_v23, %v5221_v36  ;;  %v8299_v24 = vadd.f32 %v8298_v11, %v8297_v43 }
 0x312   :  { %v3795_v41 = vadd.f32 %v11925_v7, %v9073_v26  ;;  %v3786_v3 = vpop.f32.mrb[25].mxu0  ;;  %v11980_v27 = vpack.c.bf16 %v5224_v59, %v5223_v20  ;;  %v8301_v35 = vpop.f32.mrb[59].mxu1 }
 0x313   :  { %v3787_v19 = vadd.f32 %v11925_v7, %v3786_v3  ;;  %v9074_v46 = vpop.f32.mrb[26].mxu0  ;;  %8439 = vmatprep.subr.bf16.mxu1 %v5395_v62  ;;  %v8319_v47 = vpop.f32.mrb[60].mxu1  ;;  %v8302_v33 = vadd.f32 %v8301_v35, %v8300_v63 }
 0x314   :  { %v3798_v39 = vadd.f32 %v11925_v7, %v9074_v46  ;;  %v3789_v9 = vpop.f32.mrb[27].mxu0  ;;  %8440 = vmatpush3.bf16.msra.mxu1 %v11863_v50  ;;  %v4995_v25 = vmax.f32 %v3795_v41, 0.0  ;;  %v8320_v50 = vpop.f32.mrb[61].mxu1 }
 0x315   :  { %v3790_v10 = vadd.f32 %v11925_v7, %v3789_v9  ;;  %8441 = vmatprep.subr.bf16.mxu1 %v5396_v1  ;;  %v4993_v62 = vmax.f32 %v3787_v19, 0.0  ;;  %v8322_v1 = vpop.f32.mrb[62].mxu1  ;;  %v8321_v3 = vadd.f32 %v8320_v50, %v8319_v47  ;;  %v5749_v19 = vadd.f32 %v8299_v24, %v8277_v37 }
 0x316   :  { %v4996_v5 = vmax.f32 %v3798_v39, 0.0  ;;  %9180 = vmatmul.mubr.msk.bf16.gmra.mrb[132].mxu0 %vm1859_vm0, %v10145_v58  ;;  %v8323_v36 = vpop.f32.mrb[63].mxu1  ;;  %v10147_v58 = vld [vmem:[%s12977_s0 + $0x628] sm:$0xff]   ;;  %v5752_v43 = vadd.f32 %v8302_v33, %v8280_v15 }
 0x317   :  { %v4994_v26 = vmax.f32 %v3790_v10, 0.0  ;;  %9183 = vmatprep.mubr.msk.bf16.mxu0 %vm1859_vm0, %v10146_v57  ;;  %v8341_v57 = vpop.f32.mrb[64].mxu1  ;;  %v5790_v63 = vadd.f32 %v8321_v3, %v5749_v19  ;;  %v8324_v10 = vadd.f32 %v8323_v36, %v8322_v1 }
 0x318   :  { %v5398_v55 = vpack.c.bf16 %v4996_v5, %v4995_v25  ;;  %8442 = vmatpush3.bf16.msra.mxu1 %v11858_v8  ;;  %v10148_v8 = vld [vmem:[%s12977_s0 + $0x630] sm:$0xff]   ;;  %v8342_v11 = vpop.f32.mrb[65].mxu1 }
 0x319   :  { %v5397_v20 = vpack.c.bf16 %v4994_v26, %v4993_v62  ;;  %v9077_v31 = vpop.f32.mrb[28].mxu0  ;;  %v8344_v35 = vpop.f32.mrb[66].mxu1  ;;  %v5793_v62 = vadd.f32 %v8324_v10, %v5752_v43  ;;  %v12022_v10 = vld [vmem:[%s12980_s3 + $0xc8] sm:$0xff] }
 0x31a   :  { %v3811_v41 = vadd.f32 %v11925_v7, %v9077_v31  ;;  %v3802_v46 = vpop.f32.mrb[29].mxu0  ;;  %v8345_v25 = vpop.f32.mrb[67].mxu1 }
 0x31b   :  { %v3803_v59 = vadd.f32 %v11925_v7, %v3802_v46  ;;  %v9078_v23 = vpop.f32.mrb[30].mxu0  ;;  %8443 = vmatprep.subr.bf16.mxu1 %v5397_v20  ;;  %v8363_v26 = vpop.f32.mrb[68].mxu1 }
 0x31c   :  { %v3814_v39 = vadd.f32 %v11925_v7, %v9078_v23  ;;  %v3805_v9 = vpop.f32.mrb[31].mxu0  ;;  %8444 = vmatpush3.bf16.msra.mxu1 %v11887_v30  ;;  %v4999_v5 = vmax.f32 %v3811_v41, 0.0  ;;  %v8364_v24 = vpop.f32.mrb[69].mxu1  ;;  %v8343_v30 = vadd.f32 %v8342_v11, %v8341_v57 }
 0x31d   :  { %v3806_v37 = vadd.f32 %v11925_v7, %v3805_v9  ;;  %8445 = vmatprep.subr.bf16.mxu1 %v5398_v55  ;;  %v4997_v15 = vmax.f32 %v3803_v59, 0.0  ;;  %v8366_v1 = vpop.f32.mrb[70].mxu1  ;;  %v8346_v55 = vadd.f32 %v8345_v25, %v8344_v35  ;;  %v8365_v3 = vadd.f32 %v8364_v24, %v8363_v26 }
 0x31e   :  { %v5000_v47 = vmax.f32 %v3814_v39, 0.0  ;;  %9184 = vmatmul.mubr.msk.bf16.gmra.mrb[136].mxu0 %vm1859_vm0, %v10147_v58  ;;  %v8367_v36 = vpop.f32.mrb[71].mxu1  ;;  %v10149_v58 = vld [vmem:[%s12977_s0 + $0x638] sm:$0xff]   ;;  %v5831_v19 = vadd.f32 %v8343_v30, %v5790_v63  ;;  %v12017_v63 = vld [vmem:[%s12980_s3 + $0x48] sm:$0xff] }
 0x31f   :  { %v4998_v50 = vmax.f32 %v3806_v37, 0.0  ;;  %9187 = vmatprep.mubr.msk.bf16.mxu0 %vm1859_vm0, %v10148_v8  ;;  %v5834_v57 = vadd.f32 %v8346_v55, %v5793_v62  ;;  %v8368_v39 = vadd.f32 %v8367_v36, %v8366_v1  ;;  %v7974_v26 = vcombine.high %v12017_v63, %v12022_v10  ;;  %v10151_v30 = vld [vmem:[%s12977_s0 + $0x648] sm:$0xff]  }
 0x320   :  { %v5400_v20 = vpack.c.bf16 %v5000_v47, %v4999_v5  ;;  %8446 = vmatpush3.bf16.msra.mxu1 %v11882_v29  ;;  %v10150_v29 = vld [vmem:[%s12977_s0 + $0x640] sm:$0xff]   ;;  %v12011_v11 = vadd.f32 %v8365_v3, %v5831_v19  ;;  %v7971_v47 = vcombine.low %v11815_v22, %v11820_v53 }
 0x321   :  { %v5399_v31 = vpack.c.bf16 %v4998_v50, %v4997_v15  ;;  %v9081_v33 = vpop.f32.mrb[32].mxu0 }
 0x322   :  { %v3827_v41 = vadd.f32 %v11925_v7, %v9081_v33  ;;  %v3818_v46 = vpop.f32.mrb[33].mxu0 }
 0x323   :  { %v3819_v59 = vadd.f32 %v11925_v7, %v3818_v46  ;;  %v9082_v23 = vpop.f32.mrb[34].mxu0  ;;  %8447 = vmatprep.subr.bf16.mxu1 %v5399_v31 }
 0x324   :  { %v3830_v8 = vadd.f32 %v11925_v7, %v9082_v23  ;;  %v3821_v43 = vpop.f32.mrb[35].mxu0  ;;  %8448 = vmatpush3.bf16.msra.mxu1 %v11911_v28  ;;  %v5003_v35 = vmax.f32 %v3827_v41, 0.0  ;;  %v12025_v28 = vadd.f32 %v8368_v39, %v5834_v57 }
 0x325   :  { %v3822_v9 = vadd.f32 %v11925_v7, %v3821_v43  ;;  %8449 = vmatprep.subr.bf16.mxu1 %v5400_v20  ;;  %v5001_v25 = vmax.f32 %v3819_v59, 0.0  ;;  %v10154_v43 = vld [vmem:[%s12977_s0 + $0x660] sm:$0xff]  }
 0x326   :  { %v5004_v37 = vmax.f32 %v3830_v8, 0.0  ;;  %9188 = vmatmul.mubr.msk.bf16.gmra.mrb[140].mxu0 %vm1859_vm0, %v10149_v58 }
 0x327   :  { %v5002_v5 = vmax.f32 %v3822_v9, 0.0  ;;  %9191 = vmatprep.mubr.msk.bf16.mxu0 %vm1859_vm0, %v10150_v29  ;;  %v10153_v29 = vld [vmem:[%s12977_s0 + $0x658] sm:$0xff]  }
 0x328   :  { %v12030_v62 = vpack.c.bf16 %v5004_v37, %v5003_v35  ;;  %8450 = vmatpush3.bf16.msra.mxu1 %v11906_v16  ;;  %v10152_v16 = vld [vmem:[%s12977_s0 + $0x650] sm:$0xff]  }
 0x329   :  { %v12035_v15 = vpack.c.bf16 %v5002_v5, %v5001_v25  ;;  %v9085_v50 = vpop.f32.mrb[36].mxu0 }
 0x32a   :  { %v3843_v24 = vadd.f32 %v11925_v7, %v9085_v50  ;;  %v3834_v20 = vpop.f32.mrb[37].mxu0 }
 0x32b   :  { %v3835_v22 = vadd.f32 %v11925_v7, %v3834_v20  ;;  %v9086_v53 = vpop.f32.mrb[38].mxu0  ;;  %6034 = vmatmul.mubr.bf16.vlgmr.msra.gmra.mrb[84].mxu1 %v7971_v47 }
 0x32c   :  { %v3846_v1 = vadd.f32 %v11925_v7, %v9086_v53  ;;  %v3837_v31 = vpop.f32.mrb[39].mxu0  ;;  %6074 = vmatprep.mubr.bf16.mxu1 %v7974_v26  ;;  %v5007_v55 = vmax.f32 %v3843_v24, 0.0 }
 0x32d   :  { %v3838_v33 = vadd.f32 %v11925_v7, %v3837_v31  ;;  %v5005_v36 = vmax.f32 %v3835_v22, 0.0  ;;  %v10155_v22 = vld [vmem:[%s12977_s0 + $0x668] sm:$0xff]  }
 0x32e   :  { %v5008_v3 = vmax.f32 %v3846_v1, 0.0  ;;  %9192 = vmatmul.mubr.msk.bf16.gmra.mrb[144].mxu0 %vm1859_vm0, %v10151_v30  ;;  %v10156_v1 = vld [vmem:[%s12977_s0 + $0x670] sm:$0xff]  }
 0x32f   :  { %v5006_v41 = vmax.f32 %v3838_v33, 0.0  ;;  %9195 = vmatprep.mubr.msk.bf16.mxu0 %vm1859_vm0, %v10152_v16 }
 0x330   :  { %v12049_v46 = vpack.c.bf16 %v5008_v3, %v5007_v55 }
 0x331   :  { %v12051_v58 = vpack.c.bf16 %v5006_v41, %v5005_v36  ;;  %v9089_v19 = vpop.f32.mrb[40].mxu0 }
 0x332   :  { %v3859_v59 = vadd.f32 %v11925_v7, %v9089_v19  ;;  %v3850_v23 = vpop.f32.mrb[41].mxu0 }
 0x333   :  { %v3851_v57 = vadd.f32 %v11925_v7, %v3850_v23  ;;  %v9090_v8 = vpop.f32.mrb[42].mxu0 }
 0x334   :  { %v3862_v39 = vadd.f32 %v11925_v7, %v9090_v8  ;;  %v3853_v9 = vpop.f32.mrb[43].mxu0  ;;  %v5011_v37 = vmax.f32 %v3859_v59, 0.0 }
 0x335   :  { %v3854_v35 = vadd.f32 %v11925_v7, %v3853_v9  ;;  %v5009_v5 = vmax.f32 %v3851_v57, 0.0 }
 0x336   :  { %v5012_v25 = vmax.f32 %v3862_v39, 0.0  ;;  %9196 = vmatmul.mubr.msk.bf16.gmra.mrb[148].mxu0 %vm1859_vm0, %v10153_v29 }
 0x337   :  { %v5010_v47 = vmax.f32 %v3854_v35, 0.0  ;;  %9199 = vmatprep.mubr.msk.bf16.mxu0 %vm1859_vm0, %v10154_v43 }
 0x338   :  { %v12065_v26 = vpack.c.bf16 %v5012_v25, %v5011_v37  ;;  %v10157_v25 = vld [vmem:[%s12977_s0 + $0x678] sm:$0xff]  }
 0x339   :  { %v12067_v50 = vpack.c.bf16 %v5010_v47, %v5009_v5  ;;  %v9093_v24 = vpop.f32.mrb[44].mxu0 }
 0x33a   :  { %v3875_v20 = vadd.f32 %v11925_v7, %v9093_v24  ;;  %v3866_v30 = vpop.f32.mrb[45].mxu0 }
 0x33b   :  { %v3867_v53 = vadd.f32 %v11925_v7, %v3866_v30  ;;  %v9094_v16 = vpop.f32.mrb[46].mxu0  ;;  %v10158_v30 = vld [vmem:[%s12977_s0 + $0x680] sm:$0xff]  }
 0x33c   :  { %v3878_v31 = vadd.f32 %v11925_v7, %v9094_v16  ;;  %v3869_v33 = vpop.f32.mrb[47].mxu0  ;;  %v5015_v3 = vmax.f32 %v3875_v20, 0.0 }
 0x33d   :  { %v3870_v55 = vadd.f32 %v11925_v7, %v3869_v33  ;;  %v5013_v19 = vmax.f32 %v3867_v53, 0.0 }
 0x33e   :  { %v5016_v36 = vmax.f32 %v3878_v31, 0.0  ;;  %9200 = vmatmul.mubr.msk.bf16.gmra.mrb[152].mxu0 %vm1859_vm0, %v10155_v22  ;;  %v8385_v41 = vpop.f32.mrb[72].mxu1 }
 0x33f   :  { %v5014_v59 = vmax.f32 %v3870_v55, 0.0  ;;  %9203 = vmatprep.mubr.msk.bf16.mxu0 %vm1859_vm0, %v10156_v1  ;;  %v8386_v23 = vpop.f32.mrb[73].mxu1 }
 0x340   :  { %v12081_v29 = vpack.c.bf16 %v5016_v36, %v5015_v3  ;;  %v8387_v57 = vadd.f32 %v8386_v23, %v8385_v41  ;;  %v8388_v8 = vpop.f32.mrb[74].mxu1 }
 0x341   :  { %v12083_v43 = vpack.c.bf16 %v5014_v59, %v5013_v19  ;;  %v9097_v39 = vpop.f32.mrb[48].mxu0  ;;  %v8389_v9 = vpop.f32.mrb[75].mxu1 }
 0x342   :  { %v3891_v35 = vadd.f32 %v11925_v7, %v9097_v39  ;;  %v3882_v37 = vpop.f32.mrb[49].mxu0  ;;  %v12090_v5 = vadd.f32 %v8387_v57, %v12011_v11  ;;  %v8390_v47 = vadd.f32 %v8389_v9, %v8388_v8  ;;  %v10160_v8 = vld [vmem:[%s12977_s0 + $0x690] sm:$0xff]  }
 0x343   :  { %v3883_v24 = vadd.f32 %v11925_v7, %v3882_v37  ;;  %v9098_v20 = vpop.f32.mrb[50].mxu0 }
 0x344   :  { %v3894_v22 = vadd.f32 %v11925_v7, %v9098_v20  ;;  %v3885_v53 = vpop.f32.mrb[51].mxu0  ;;  %v12098_v16 = vadd.f32 %v8390_v47, %v12025_v28  ;;  %v5019_v31 = vmax.f32 %v3891_v35, 0.0  ;;  %v10159_v28 = vld [vmem:[%s12977_s0 + $0x688] sm:$0xff]  }
 0x345   :  { %v3886_v1 = vadd.f32 %v11925_v7, %v3885_v53  ;;  %v5017_v11 = vmax.f32 %v3883_v24, 0.0 }
 0x346   :  { %v5020_v33 = vmax.f32 %v3894_v22, 0.0  ;;  %9204 = vmatmul.mubr.msk.bf16.gmra.mrb[156].mxu0 %vm1859_vm0, %v10157_v25 }
 0x347   :  { %v5018_v55 = vmax.f32 %v3886_v1, 0.0  ;;  %9207 = vmatprep.mubr.msk.bf16.mxu0 %vm1859_vm0, %v10158_v30 }
 0x348   :  { %v5410_v3 = vpack.c.bf16 %v5020_v33, %v5019_v31 }
 0x349   :  { %v5409_v36 = vpack.c.bf16 %v5018_v55, %v5017_v11  ;;  %v9101_v41 = vpop.f32.mrb[52].mxu0  ;;  %v10162_v11 = vld [vmem:[%s12977_s0 + $0x6a0] sm:$0xff]  }
 0x34a   :  { %v3907_v19 = vadd.f32 %v11925_v7, %v9101_v41  ;;  %v3898_v59 = vpop.f32.mrb[53].mxu0 }
 0x34b   :  { %v3899_v23 = vadd.f32 %v11925_v7, %v3898_v59  ;;  %v9102_v57 = vpop.f32.mrb[54].mxu0  ;;  %8457 = vmatprep.subr.bf16.mxu1 %v5409_v36 }
 0x34c   :  { %v3910_v39 = vadd.f32 %v11925_v7, %v9102_v57  ;;  %v3901_v9 = vpop.f32.mrb[55].mxu0  ;;  %8458 = vmatpush3.bf16.msra.mxu1 %v12035_v15  ;;  %v5023_v37 = vmax.f32 %v3907_v19, 0.0  ;;  %v10161_v15 = vld [vmem:[%s12977_s0 + $0x698] sm:$0xff]  }
 0x34d   :  { %v3902_v35 = vadd.f32 %v11925_v7, %v3901_v9  ;;  %8459 = vmatprep.subr.bf16.mxu1 %v5410_v3  ;;  %v5021_v47 = vmax.f32 %v3899_v23, 0.0 }
 0x34e   :  { %v5024_v25 = vmax.f32 %v3910_v39, 0.0  ;;  %9208 = vmatmul.mubr.msk.bf16.gmra.mrb[160].mxu0 %vm1859_vm0, %v10159_v28 }
 0x34f   :  { %v5022_v24 = vmax.f32 %v3902_v35, 0.0  ;;  %9211 = vmatprep.mubr.msk.bf16.mxu0 %vm1859_vm0, %v10160_v8 }
 0x350   :  { %v5412_v20 = vpack.c.bf16 %v5024_v25, %v5023_v37  ;;  %8460 = vmatpush3.bf16.msra.mxu1 %v12030_v62  ;;  %v10164_v37 = vld [vmem:[%s12977_s0 + $0x6b0] sm:$0xff]  }
 0x351   :  { %v5411_v30 = vpack.c.bf16 %v5022_v24, %v5021_v47  ;;  %v9105_v22 = vpop.f32.mrb[56].mxu0 }
 0x352   :  { %v3923_v53 = vadd.f32 %v11925_v7, %v9105_v22  ;;  %v3914_v1 = vpop.f32.mrb[57].mxu0 }
 0x353   :  { %v3915_v31 = vadd.f32 %v11925_v7, %v3914_v1  ;;  %v9106_v33 = vpop.f32.mrb[58].mxu0  ;;  %8461 = vmatprep.subr.bf16.mxu1 %v5411_v30 }
 0x354   :  { %v3926_v55 = vadd.f32 %v11925_v7, %v9106_v33  ;;  %v3917_v62 = vpop.f32.mrb[59].mxu0  ;;  %8462 = vmatpush3.bf16.msra.mxu1 %v12051_v58  ;;  %v5027_v36 = vmax.f32 %v3923_v53, 0.0  ;;  %v10163_v58 = vld [vmem:[%s12977_s0 + $0x6a8] sm:$0xff]  }
 0x355   :  { %v3918_v3 = vadd.f32 %v11925_v7, %v3917_v62  ;;  %8463 = vmatprep.subr.bf16.mxu1 %v5412_v20  ;;  %v5025_v19 = vmax.f32 %v3915_v31, 0.0  ;;  %v10166_v62 = vld [vmem:[%s12977_s0 + $0x6c0] sm:$0xff]  }
 0x356   :  { %v5028_v41 = vmax.f32 %v3926_v55, 0.0  ;;  %9212 = vmatmul.mubr.msk.bf16.gmra.mrb[164].mxu0 %vm1859_vm0, %v10161_v15 }
 0x357   :  { %v5026_v59 = vmax.f32 %v3918_v3, 0.0  ;;  %9215 = vmatprep.mubr.msk.bf16.mxu0 %vm1859_vm0, %v10162_v11 }
 0x358   :  { %v5414_v28 = vpack.c.bf16 %v5028_v41, %v5027_v36  ;;  %8464 = vmatpush3.bf16.msra.mxu1 %v12049_v46  ;;  %v12159_v41 = vld [vmem:[%s12980_s3 + $0x50] sm:$0xff] }
 0x359   :  { %v5413_v23 = vpack.c.bf16 %v5026_v59, %v5025_v19  ;;  %v9109_v57 = vpop.f32.mrb[60].mxu0  ;;  %v12164_v19 = vld [vmem:[%s12980_s3 + $0xd0] sm:$0xff] }
 0x35a   :  { %v3939_v8 = vadd.f32 %v11925_v7, %v9109_v57  ;;  %v3930_v39 = vpop.f32.mrb[61].mxu0 }
 0x35b   :  { %v3931_v9 = vadd.f32 %v11925_v7, %v3930_v39  ;;  %v9110_v35 = vpop.f32.mrb[62].mxu0  ;;  %8465 = vmatprep.subr.bf16.mxu1 %v5413_v23  ;;  %v7976_v39 = vcombine.high %v12159_v41, %v12164_v19 }
 0x35c   :  { %v3942_v25 = vadd.f32 %v11925_v7, %v9110_v35  ;;  %v3933_v46 = vpop.f32.mrb[63].mxu0  ;;  %8466 = vmatpush3.bf16.msra.mxu1 %v12067_v50  ;;  %v5031_v24 = vmax.f32 %v3939_v8, 0.0  ;;  %v10165_v50 = vld [vmem:[%s12977_s0 + $0x6b8] sm:$0xff]  }
 0x35d   :  { %v3934_v47 = vadd.f32 %v11925_v7, %v3933_v46  ;;  %8467 = vmatprep.subr.bf16.mxu1 %v5414_v28  ;;  %v5029_v30 = vmax.f32 %v3931_v9, 0.0 }
 0x35e   :  { %v5032_v20 = vmax.f32 %v3942_v25, 0.0  ;;  %9216 = vmatmul.mubr.msk.bf16.gmra.mrb[168].mxu0 %vm1859_vm0, %v10163_v58  ;;  %v10167_v25 = vld [vmem:[%s12977_s0 + $0x6c8] sm:$0xff]  }
 0x35f   :  { %v5030_v22 = vmax.f32 %v3934_v47, 0.0  ;;  %9219 = vmatprep.mubr.msk.bf16.mxu0 %vm1859_vm0, %v10164_v37 }
 0x360   :  { %v5416_v53 = vpack.c.bf16 %v5032_v20, %v5031_v24  ;;  %8468 = vmatpush3.bf16.msra.mxu1 %v12065_v26 }
 0x361   :  { %v5415_v1 = vpack.c.bf16 %v5030_v22, %v5029_v30  ;;  %v9113_v15 = vpop.f32.mrb[64].mxu0 }
 0x362   :  { %v3955_v31 = vadd.f32 %v11925_v7, %v9113_v15  ;;  %v3946_v33 = vpop.f32.mrb[65].mxu0 }
 0x363   :  { %v3947_v11 = vadd.f32 %v11925_v7, %v3946_v33  ;;  %v9114_v55 = vpop.f32.mrb[66].mxu0  ;;  %8469 = vmatprep.subr.bf16.mxu1 %v5415_v1 }
 0x364   :  { %v3958_v3 = vadd.f32 %v11925_v7, %v9114_v55  ;;  %v3949_v26 = vpop.f32.mrb[67].mxu0  ;;  %8470 = vmatpush3.bf16.msra.mxu1 %v12083_v43  ;;  %v5035_v59 = vmax.f32 %v3955_v31, 0.0  ;;  %v7973_v43 = vcombine.low %v12017_v63, %v12022_v10 }
 0x365   :  { %v3950_v36 = vadd.f32 %v11925_v7, %v3949_v26  ;;  %8471 = vmatprep.subr.bf16.mxu1 %v5416_v53  ;;  %v5033_v23 = vmax.f32 %v3947_v11, 0.0  ;;  %v10169_v11 = vld [vmem:[%s12977_s0 + $0x6d8] sm:$0xff]  }
 0x366   :  { %v5036_v28 = vmax.f32 %v3958_v3, 0.0  ;;  %9220 = vmatmul.mubr.msk.bf16.gmra.mrb[172].mxu0 %vm1859_vm0, %v10165_v50  ;;  %v10170_v3 = vld [vmem:[%s12977_s0 + $0x6e0] sm:$0xff]  }
 0x367   :  { %v5034_v57 = vmax.f32 %v3950_v36, 0.0  ;;  %9223 = vmatprep.mubr.msk.bf16.mxu0 %vm1859_vm0, %v10166_v62 }
 0x368   :  { %v12170_v8 = vpack.c.bf16 %v5036_v28, %v5035_v59  ;;  %8472 = vmatpush3.bf16.msra.mxu1 %v12081_v29  ;;  %v10168_v29 = vld [vmem:[%s12977_s0 + $0x6d0] sm:$0xff]  }
 0x369   :  { %v12175_v58 = vpack.c.bf16 %v5034_v57, %v5033_v23  ;;  %v9117_v9 = vpop.f32.mrb[68].mxu0 }
 0x36a   :  { %v3971_v35 = vadd.f32 %v11925_v7, %v9117_v9  ;;  %v3962_v37 = vpop.f32.mrb[69].mxu0 }
 0x36b   :  { %v3963_v63 = vadd.f32 %v11925_v7, %v3962_v37  ;;  %v9118_v10 = vpop.f32.mrb[70].mxu0  ;;  %6075 = vmatmul.mubr.bf16.vlgmr.msra.gmra.mrb[88].mxu1 %v7973_v43 }
 0x36c   :  { %v3974_v46 = vadd.f32 %v11925_v7, %v9118_v10  ;;  %v3965_v47 = vpop.f32.mrb[71].mxu0  ;;  %6115 = vmatprep.mubr.bf16.mxu1 %v7976_v39  ;;  %v5039_v20 = vmax.f32 %v3971_v35, 0.0 }
 0x36d   :  { %v3966_v24 = vadd.f32 %v11925_v7, %v3965_v47  ;;  %v5037_v22 = vmax.f32 %v3963_v63, 0.0  ;;  %v10171_v63 = vld [vmem:[%s12977_s0 + $0x6e8] sm:$0xff]  }
 0x36e   :  { %v5040_v30 = vmax.f32 %v3974_v46, 0.0  ;;  %9224 = vmatmul.mubr.msk.bf16.gmra.mrb[176].mxu0 %vm1859_vm0, %v10167_v25  ;;  %v10172_v46 = vld [vmem:[%s12977_s0 + $0x6f0] sm:$0xff]  }
 0x36f   :  { %v5038_v53 = vmax.f32 %v3966_v24, 0.0  ;;  %9227 = vmatprep.mubr.msk.bf16.mxu0 %vm1859_vm0, %v10168_v29 }
 0x370   :  { %v12189_v1 = vpack.c.bf16 %v5040_v30, %v5039_v20 }
 0x371   :  { %v12191_v15 = vpack.c.bf16 %v5038_v53, %v5037_v22  ;;  %v9121_v31 = vpop.f32.mrb[72].mxu0 }
 0x372   :  { %v3987_v33 = vadd.f32 %v11925_v7, %v9121_v31  ;;  %v3978_v50 = vpop.f32.mrb[73].mxu0 }
 0x373   :  { %v3979_v55 = vadd.f32 %v11925_v7, %v3978_v50  ;;  %v9122_v62 = vpop.f32.mrb[74].mxu0 }
 0x374   :  { %v3990_v26 = vadd.f32 %v11925_v7, %v9122_v62  ;;  %v3981_v36 = vpop.f32.mrb[75].mxu0  ;;  %v5043_v28 = vmax.f32 %v3987_v33, 0.0 }
 0x375   :  { %v3982_v59 = vadd.f32 %v11925_v7, %v3981_v36  ;;  %v5041_v57 = vmax.f32 %v3979_v55, 0.0 }
 0x376   :  { %v5044_v23 = vmax.f32 %v3990_v26, 0.0  ;;  %9228 = vmatmul.mubr.msk.bf16.gmra.mrb[180].mxu0 %vm1859_vm0, %v10169_v11 }
 0x377   :  { %v5042_v43 = vmax.f32 %v3982_v59, 0.0  ;;  %9231 = vmatprep.mubr.msk.bf16.mxu0 %vm1859_vm0, %v10170_v3 }
 0x378   :  { %v12205_v39 = vpack.c.bf16 %v5044_v23, %v5043_v28  ;;  %v10173_v23 = vld [vmem:[%s12977_s0 + $0x6f8] sm:$0xff]  }
 0x379   :  { %v12207_v9 = vpack.c.bf16 %v5042_v43, %v5041_v57  ;;  %v9125_v35 = vpop.f32.mrb[76].mxu0 }
 0x37a   :  { %v4003_v37 = vadd.f32 %v11925_v7, %v9125_v35  ;;  %v3994_v25 = vpop.f32.mrb[77].mxu0 }
 0x37b   :  { %v3995_v10 = vadd.f32 %v11925_v7, %v3994_v25  ;;  %v9126_v29 = vpop.f32.mrb[78].mxu0  ;;  %v10174_v25 = vld [vmem:[%s12977_s0 + $0x700] sm:$0xff]  }
 0x37c   :  { %v4006_v47 = vadd.f32 %v11925_v7, %v9126_v29  ;;  %v3997_v24 = vpop.f32.mrb[79].mxu0  ;;  %v5047_v30 = vmax.f32 %v4003_v37, 0.0 }
 0x37d   :  { %v3998_v20 = vadd.f32 %v11925_v7, %v3997_v24  ;;  %v5045_v31 = vmax.f32 %v3995_v10, 0.0 }
 0x37e   :  { %v5048_v22 = vmax.f32 %v4006_v47, 0.0  ;;  %9232 = vmatmul.mubr.msk.bf16.gmra.mrb[184].mxu0 %vm1859_vm0, %v10171_v63  ;;  %v8407_v53 = vpop.f32.mrb[76].mxu1 }
 0x37f   :  { %v5046_v33 = vmax.f32 %v3998_v20, 0.0  ;;  %9235 = vmatprep.mubr.msk.bf16.mxu0 %vm1859_vm0, %v10172_v46  ;;  %v8408_v50 = vpop.f32.mrb[77].mxu1 }
 0x380   :  { %v12221_v11 = vpack.c.bf16 %v5048_v22, %v5047_v30  ;;  %v8409_v55 = vadd.f32 %v8408_v50, %v8407_v53  ;;  %v8410_v62 = vpop.f32.mrb[78].mxu1 }
 0x381   :  { %v12223_v3 = vpack.c.bf16 %v5046_v33, %v5045_v31  ;;  %v9129_v26 = vpop.f32.mrb[80].mxu0  ;;  %v8411_v36 = vpop.f32.mrb[79].mxu1 }
 0x382   :  { %v4019_v59 = vadd.f32 %v11925_v7, %v9129_v26  ;;  %v4010_v28 = vpop.f32.mrb[81].mxu0  ;;  %v12230_v57 = vadd.f32 %v8409_v55, %v12090_v5  ;;  %v8412_v43 = vadd.f32 %v8411_v36, %v8410_v62  ;;  %v10176_v62 = vld [vmem:[%s12977_s0 + $0x710] sm:$0xff]  }
 0x383   :  { %v4011_v35 = vadd.f32 %v11925_v7, %v4010_v28  ;;  %v9130_v37 = vpop.f32.mrb[82].mxu0 }
 0x384   :  { %v4022_v63 = vadd.f32 %v11925_v7, %v9130_v37  ;;  %v4013_v10 = vpop.f32.mrb[83].mxu0  ;;  %v12238_v29 = vadd.f32 %v8412_v43, %v12098_v16  ;;  %v5051_v47 = vmax.f32 %v4019_v59, 0.0  ;;  %v10175_v16 = vld [vmem:[%s12977_s0 + $0x708] sm:$0xff]  }
 0x385   :  { %v4014_v46 = vadd.f32 %v11925_v7, %v4013_v10  ;;  %v5049_v5 = vmax.f32 %v4011_v35, 0.0 }
 0x386   :  { %v5052_v24 = vmax.f32 %v4022_v63, 0.0  ;;  %9236 = vmatmul.mubr.msk.bf16.gmra.mrb[188].mxu0 %vm1859_vm0, %v10173_v23 }
 0x387   :  { %v5050_v20 = vmax.f32 %v4014_v46, 0.0  ;;  %9239 = vmatprep.mubr.msk.bf16.mxu0 %vm1859_vm0, %v10174_v25 }
 0x388   :  { %v5426_v30 = vpack.c.bf16 %v5052_v24, %v5051_v47 }
 0x389   :  { %v5425_v22 = vpack.c.bf16 %v5050_v20, %v5049_v5  ;;  %v9133_v53 = vpop.f32.mrb[84].mxu0  ;;  %v10178_v5 = vld [vmem:[%s12977_s0 + $0x720] sm:$0xff]  }
 0x38a   :  { %v4035_v31 = vadd.f32 %v11925_v7, %v9133_v53  ;;  %v4026_v33 = vpop.f32.mrb[85].mxu0 }
 0x38b   :  { %v4027_v50 = vadd.f32 %v11925_v7, %v4026_v33  ;;  %v9134_v55 = vpop.f32.mrb[86].mxu0  ;;  %8479 = vmatprep.subr.bf16.mxu1 %v5425_v22 }
 0x38c   :  { %v4038_v26 = vadd.f32 %v11925_v7, %v9134_v55  ;;  %v4029_v36 = vpop.f32.mrb[87].mxu0  ;;  %8480 = vmatpush3.bf16.msra.mxu1 %v12175_v58  ;;  %v5055_v28 = vmax.f32 %v4035_v31, 0.0  ;;  %v10177_v58 = vld [vmem:[%s12977_s0 + $0x718] sm:$0xff]  }
 0x38d   :  { %v4030_v59 = vadd.f32 %v11925_v7, %v4029_v36  ;;  %8481 = vmatprep.subr.bf16.mxu1 %v5426_v30  ;;  %v5053_v43 = vmax.f32 %v4027_v50, 0.0 }
 0x38e   :  { %v5056_v23 = vmax.f32 %v4038_v26, 0.0  ;;  %9240 = vmatmul.mubr.msk.bf16.gmra.mrb[192].mxu0 %vm1859_vm0, %v10175_v16 }
 0x38f   :  { %v5054_v35 = vmax.f32 %v4030_v59, 0.0  ;;  %9243 = vmatprep.mubr.msk.bf16.mxu0 %vm1859_vm0, %v10176_v62 }
 0x390   :  { %v5428_v37 = vpack.c.bf16 %v5056_v23, %v5055_v28  ;;  %8482 = vmatpush3.bf16.msra.mxu1 %v12170_v8 }
 0x391   :  { %v5427_v25 = vpack.c.bf16 %v5054_v35, %v5053_v43  ;;  %v9137_v63 = vpop.f32.mrb[88].mxu0 }
 0x392   :  { %v4051_v10 = vadd.f32 %v11925_v7, %v9137_v63  ;;  %v4042_v46 = vpop.f32.mrb[89].mxu0 }
 0x393   :  { %v4043_v47 = vadd.f32 %v11925_v7, %v4042_v46  ;;  %v9138_v24 = vpop.f32.mrb[90].mxu0  ;;  %8483 = vmatprep.subr.bf16.mxu1 %v5427_v25 }
 0x394   :  { %v4054_v20 = vadd.f32 %v11925_v7, %v9138_v24  ;;  %v4045_v8 = vpop.f32.mrb[91].mxu0  ;;  %8484 = vmatpush3.bf16.msra.mxu1 %v12191_v15  ;;  %v5059_v22 = vmax.f32 %v4051_v10, 0.0  ;;  %v10179_v15 = vld [vmem:[%s12977_s0 + $0x728] sm:$0xff]  }
 0x395   :  { %v4046_v30 = vadd.f32 %v11925_v7, %v4045_v8  ;;  %8485 = vmatprep.subr.bf16.mxu1 %v5428_v37  ;;  %v5057_v31 = vmax.f32 %v4043_v47, 0.0  ;;  %v12288_v8 = vld [vmem:[%s12979_s2] ss:$0 sm:$0xff] }
 0x396   :  { %v5060_v53 = vmax.f32 %v4054_v20, 0.0  ;;  %9244 = vmatmul.mubr.msk.bf16.gmra.mrb[196].mxu0 %vm1859_vm0, %v10177_v58 }
 0x397   :  { %v5058_v33 = vmax.f32 %v4046_v30, 0.0  ;;  %9247 = vmatprep.mubr.msk.bf16.mxu0 %vm1859_vm0, %v10178_v5  ;;  %v12294_v30 = vld [vmem:[%s12980_s3 + $0x58] sm:$0xff] }
 0x398   :  { %v5430_v16 = vpack.c.bf16 %v5060_v53, %v5059_v22  ;;  %8486 = vmatpush3.bf16.msra.mxu1 %v12189_v1 }
 0x399   :  { %v5429_v50 = vpack.c.bf16 %v5058_v33, %v5057_v31  ;;  %v9141_v55 = vpop.f32.mrb[92].mxu0  ;;  %v7975_v33 = vcombine.low %v12159_v41, %v12164_v19 }
 0x39a   :  { %v4067_v62 = vadd.f32 %v11925_v7, %v9141_v55  ;;  %v4058_v26 = vpop.f32.mrb[93].mxu0 }
 0x39b   :  { %v4059_v36 = vadd.f32 %v11925_v7, %v4058_v26  ;;  %v9142_v59 = vpop.f32.mrb[94].mxu0  ;;  %8487 = vmatprep.subr.bf16.mxu1 %v5429_v50 }
 0x39c   :  { %v4070_v28 = vadd.f32 %v11925_v7, %v9142_v59  ;;  %v4061_v23 = vpop.f32.mrb[95].mxu0  ;;  %8488 = vmatpush3.bf16.msra.mxu1 %v12207_v9  ;;  %v5063_v43 = vmax.f32 %v4067_v62, 0.0 }
 0x39d   :  { %v4062_v1 = vadd.f32 %v11925_v7, %v4061_v23  ;;  %8489 = vmatprep.subr.bf16.mxu1 %v5430_v16  ;;  %v5061_v37 = vmax.f32 %v4059_v36, 0.0 }
 0x39e   :  { %v5064_v35 = vmax.f32 %v4070_v28, 0.0  ;;  %9248 = vmatmul.mubr.msk.bf16.gmra.mrb[200].mxu0 %vm1859_vm0, %v10179_v15 }
 0x39f   :  { %v5062_v25 = vmax.f32 %v4062_v1, 0.0 }
 0x3a0   :  { %v5432_v63 = vpack.c.bf16 %v5064_v35, %v5063_v43  ;;  %8490 = vmatpush3.bf16.msra.mxu1 %v12205_v39 }
 0x3a1   :  { %v5431_v10 = vpack.c.bf16 %v5062_v25, %v5061_v37  ;;  %v9145_v46 = vpop.f32.mrb[96].mxu0 }
 0x3a2   :  { %v4083_v58 = vadd.f32 %v11925_v7, %v9145_v46  ;;  %v4074_v47 = vpop.f32.mrb[97].mxu0 }
 0x3a3   :  { %v4075_v24 = vadd.f32 %v11925_v7, %v4074_v47  ;;  %v9146_v9 = vpop.f32.mrb[98].mxu0  ;;  %8491 = vmatprep.subr.bf16.mxu1 %v5431_v10 }
 0x3a4   :  { %v4086_v5 = vadd.f32 %v11925_v7, %v9146_v9  ;;  %v4077_v20 = vpop.f32.mrb[99].mxu0  ;;  %8492 = vmatpush3.bf16.msra.mxu1 %v12223_v3  ;;  %v12299_v7 = vld [vmem:[%s12980_s3 + $0xd8] sm:$0xff]  ;;  %v5067_v22 = vmax.f32 %v4083_v58, 0.0 }
 0x3a5   :  { %v4078_v39 = vadd.f32 %v12288_v8, %v4077_v20  ;;  %8493 = vmatprep.subr.bf16.mxu1 %v5432_v63  ;;  %v5065_v53 = vmax.f32 %v4075_v24, 0.0  ;;  %v7978_v50 = vcombine.high %v12294_v30, %v12299_v7 }
 0x3a6   :  { %v5068_v3 = vmax.f32 %v4086_v5, 0.0 }
 0x3a7   :  { %v5066_v31 = vmax.f32 %v4078_v39, 0.0 }
 0x3a8   :  { %v12303_v16 = vpack.c.bf16 %v5068_v3, %v5067_v22  ;;  %8494 = vmatpush3.bf16.msra.mxu1 %v12221_v11 }
 0x3a9   :  { %v12308_v55 = vpack.c.bf16 %v5066_v31, %v5065_v53  ;;  %v9149_v62 = vpop.f32.mrb[100].mxu0 }
 0x3aa   :  { %v4099_v26 = vadd.f32 %v12288_v8, %v9149_v62  ;;  %v4090_v15 = vpop.f32.mrb[101].mxu0 }
 0x3ab   :  { %v4091_v36 = vadd.f32 %v12288_v8, %v4090_v15  ;;  %v9150_v59 = vpop.f32.mrb[102].mxu0  ;;  %6116 = vmatmul.mubr.bf16.vlgmr.msra.gmra.mrb[92].mxu1 %v7975_v33 }
 0x3ac   :  { %v4102_v28 = vadd.f32 %v12288_v8, %v9150_v59  ;;  %v4093_v41 = vpop.f32.mrb[103].mxu0  ;;  %6156 = vmatprep.mubr.bf16.mxu1 %v7978_v50  ;;  %v5071_v11 = vmax.f32 %v4099_v26, 0.0 }
 0x3ad   :  { %v4094_v19 = vadd.f32 %v12288_v8, %v4093_v41  ;;  %v5069_v1 = vmax.f32 %v4091_v36, 0.0 }
 0x3ae   :  { %v5072_v23 = vmax.f32 %v4102_v28, 0.0 }
 0x3af   :  { %v5070_v43 = vmax.f32 %v4094_v19, 0.0 }
 0x3b0   :  { %v12314_v35 = vpack.c.bf16 %v5072_v23, %v5071_v11 }
 0x3b1   :  { %v12316_v37 = vpack.c.bf16 %v5070_v43, %v5069_v1  ;;  %v9153_v25 = vpop.f32.mrb[104].mxu0 }
 0x3b2   :  { %v4115_v63 = vadd.f32 %v12288_v8, %v9153_v25  ;;  %v4106_v10 = vpop.f32.mrb[105].mxu0 }
 0x3b3   :  { %v4107_v46 = vadd.f32 %v12288_v8, %v4106_v10  ;;  %v9154_v58 = vpop.f32.mrb[106].mxu0 }
 0x3b4   :  { %v4118_v47 = vadd.f32 %v12288_v8, %v9154_v58  ;;  %v4109_v24 = vpop.f32.mrb[107].mxu0  ;;  %v5075_v5 = vmax.f32 %v4115_v63, 0.0 }
 0x3b5   :  { %v4110_v9 = vadd.f32 %v12288_v8, %v4109_v24  ;;  %v5073_v39 = vmax.f32 %v4107_v46, 0.0 }
 0x3b6   :  { %v5076_v20 = vmax.f32 %v4118_v47, 0.0 }
 0x3b7   :  { %v5074_v22 = vmax.f32 %v4110_v9, 0.0 }
 0x3b8   :  { %v12322_v3 = vpack.c.bf16 %v5076_v20, %v5075_v5 }
 0x3b9   :  { %v12324_v53 = vpack.c.bf16 %v5074_v22, %v5073_v39  ;;  %v9157_v31 = vpop.f32.mrb[108].mxu0 }
 0x3ba   :  { %v4131_v33 = vadd.f32 %v12288_v8, %v9157_v31  ;;  %v4122_v50 = vpop.f32.mrb[109].mxu0 }
 0x3bb   :  { %v4123_v62 = vadd.f32 %v12288_v8, %v4122_v50  ;;  %v9158_v26 = vpop.f32.mrb[110].mxu0 }
 0x3bc   :  { %v4134_v15 = vadd.f32 %v12288_v8, %v9158_v26  ;;  %v4125_v36 = vpop.f32.mrb[111].mxu0  ;;  %v5079_v28 = vmax.f32 %v4131_v33, 0.0 }
 0x3bd   :  { %v4126_v59 = vadd.f32 %v12288_v8, %v4125_v36  ;;  %v5077_v11 = vmax.f32 %v4123_v62, 0.0 }
 0x3be   :  { %v5080_v41 = vmax.f32 %v4134_v15, 0.0  ;;  %v8429_v19 = vpop.f32.mrb[80].mxu1 }
 0x3bf   :  { %v5078_v23 = vmax.f32 %v4126_v59, 0.0  ;;  %v8430_v1 = vpop.f32.mrb[81].mxu1 }
 0x3c0   :  { %v12330_v43 = vpack.c.bf16 %v5080_v41, %v5079_v28  ;;  %v8431_v25 = vadd.f32 %v8430_v1, %v8429_v19  ;;  %v8432_v63 = vpop.f32.mrb[82].mxu1 }
 0x3c1   :  { %v12332_v10 = vpack.c.bf16 %v5078_v23, %v5077_v11  ;;  %v9161_v46 = vpop.f32.mrb[112].mxu0  ;;  %v8433_v58 = vpop.f32.mrb[83].mxu1 }
 0x3c2   :  { %v12335_v47 = vadd.f32 %v8431_v25, %v12230_v57  ;;  %v4147_v24 = vadd.f32 %v12288_v8, %v9161_v46  ;;  %v8434_v9 = vadd.f32 %v8433_v58, %v8432_v63  ;;  %v4138_v5 = vpop.f32.mrb[113].mxu0 }
 0x3c3   :  { %v4139_v20 = vadd.f32 %v12288_v8, %v4138_v5  ;;  %v9162_v39 = vpop.f32.mrb[114].mxu0 }
 0x3c4   :  { %v12340_v22 = vadd.f32 %v8434_v9, %v12238_v29  ;;  %v4150_v31 = vadd.f32 %v12288_v8, %v9162_v39  ;;  %v4141_v33 = vpop.f32.mrb[115].mxu0  ;;  %v5083_v62 = vmax.f32 %v4147_v24, 0.0 }
 0x3c5   :  { %v4142_v50 = vadd.f32 %v12288_v8, %v4141_v33  ;;  %v5081_v15 = vmax.f32 %v4139_v20, 0.0 }
 0x3c6   :  { %v5084_v26 = vmax.f32 %v4150_v31, 0.0 }
 0x3c7   :  { %v5082_v57 = vmax.f32 %v4142_v50, 0.0 }
 0x3c8   :  { %v5442_v36 = vpack.c.bf16 %v5084_v26, %v5083_v62 }
 0x3c9   :  { %v5441_v59 = vpack.c.bf16 %v5082_v57, %v5081_v15  ;;  %v9165_v28 = vpop.f32.mrb[116].mxu0 }
 0x3ca   :  { %v4163_v41 = vadd.f32 %v12288_v8, %v9165_v28  ;;  %v4154_v19 = vpop.f32.mrb[117].mxu0 }
 0x3cb   :  { %v4155_v11 = vadd.f32 %v12288_v8, %v4154_v19  ;;  %v9166_v23 = vpop.f32.mrb[118].mxu0  ;;  %8501 = vmatprep.subr.bf16.mxu1 %v5441_v59 }
 0x3cc   :  { %v4166_v29 = vadd.f32 %v12288_v8, %v9166_v23  ;;  %v4157_v1 = vpop.f32.mrb[119].mxu0  ;;  %8502 = vmatpush3.bf16.msra.mxu1 %v12308_v55  ;;  %v5087_v63 = vmax.f32 %v4163_v41, 0.0 }
 0x3cd   :  { %v4158_v25 = vadd.f32 %v12288_v8, %v4157_v1  ;;  %8503 = vmatprep.subr.bf16.mxu1 %v5442_v36  ;;  %v5085_v58 = vmax.f32 %v4155_v11, 0.0 }
 0x3ce   :  { %v5088_v46 = vmax.f32 %v4166_v29, 0.0 }
 0x3cf   :  { %v5086_v24 = vmax.f32 %v4158_v25, 0.0 }
 0x3d0   :  { %v5444_v9 = vpack.c.bf16 %v5088_v46, %v5087_v63  ;;  %8504 = vmatpush3.bf16.msra.mxu1 %v12303_v16 }
 0x3d1   :  { %v5443_v5 = vpack.c.bf16 %v5086_v24, %v5085_v58  ;;  %v9169_v20 = vpop.f32.mrb[120].mxu0 }
 0x3d2   :  { %v4179_v39 = vadd.f32 %v12288_v8, %v9169_v20  ;;  %v4170_v31 = vpop.f32.mrb[121].mxu0 }
 0x3d3   :  { %v4171_v33 = vadd.f32 %v12288_v8, %v4170_v31  ;;  %v9170_v50 = vpop.f32.mrb[122].mxu0  ;;  %8505 = vmatprep.subr.bf16.mxu1 %v5443_v5 }
 0x3d4   :  { %v4182_v55 = vadd.f32 %v12288_v8, %v9170_v50  ;;  %v4173_v62 = vpop.f32.mrb[123].mxu0  ;;  %8506 = vmatpush3.bf16.msra.mxu1 %v12316_v37  ;;  %v5091_v15 = vmax.f32 %v4179_v39, 0.0 }
 0x3d5   :  { %v4174_v26 = vadd.f32 %v12288_v8, %v4173_v62  ;;  %8507 = vmatprep.subr.bf16.mxu1 %v5444_v9  ;;  %v5089_v16 = vmax.f32 %v4171_v33, 0.0  ;;  %v12375_v62 = vld [vmem:[%s12980_s3 + $0xe0] sm:$0xff] }
 0x3d6   :  { %v5092_v57 = vmax.f32 %v4182_v55, 0.0 }
 0x3d7   :  { %v5090_v36 = vmax.f32 %v4174_v26, 0.0 }
 0x3d8   :  { %v5446_v59 = vpack.c.bf16 %v5092_v57, %v5091_v15  ;;  %8508 = vmatpush3.bf16.msra.mxu1 %v12314_v35 }
 0x3d9   :  { %v5445_v28 = vpack.c.bf16 %v5090_v36, %v5089_v16  ;;  %v9173_v41 = vpop.f32.mrb[124].mxu0 }
 0x3da   :  { %v4195_v19 = vadd.f32 %v12288_v8, %v9173_v41  ;;  %v4186_v11 = vpop.f32.mrb[125].mxu0 }
 0x3db   :  { %v4187_v23 = vadd.f32 %v12288_v8, %v4186_v11  ;;  %v9174_v29 = vpop.f32.mrb[126].mxu0  ;;  %8509 = vmatprep.subr.bf16.mxu1 %v5445_v28 }
 0x3dc   :  { %v4198_v37 = vadd.f32 %v12288_v8, %v9174_v29  ;;  %v4189_v1 = vpop.f32.mrb[127].mxu0  ;;  %8510 = vmatpush3.bf16.msra.mxu1 %v12324_v53  ;;  %v5095_v63 = vmax.f32 %v4195_v19, 0.0 }
 0x3dd   :  { %v4190_v25 = vadd.f32 %v12288_v8, %v4189_v1  ;;  %8511 = vmatprep.subr.bf16.mxu1 %v5446_v59  ;;  %v5093_v35 = vmax.f32 %v4187_v23, 0.0 }
 0x3de   :  { %v5096_v46 = vmax.f32 %v4198_v37, 0.0 }
 0x3df   :  { %v5094_v58 = vmax.f32 %v4190_v25, 0.0 }
 0x3e0   :  { %v5448_v24 = vpack.c.bf16 %v5096_v46, %v5095_v63  ;;  %8512 = vmatpush3.bf16.msra.mxu1 %v12322_v3  ;;  %v12370_v3 = vld [vmem:[%s12980_s3 + $0x60] sm:$0xff] }
 0x3e1   :  { %v5447_v9 = vpack.c.bf16 %v5094_v58, %v5093_v35  ;;  %v9177_v5 = vpop.f32.mrb[128].mxu0  ;;  %v7980_v59 = vcombine.high %v12370_v3, %v12375_v62 }
 0x3e2   :  { %v4211_v20 = vadd.f32 %v12288_v8, %v9177_v5  ;;  %v4202_v39 = vpop.f32.mrb[129].mxu0 }
 0x3e3   :  { %v4203_v31 = vadd.f32 %v12288_v8, %v4202_v39  ;;  %v9178_v33 = vpop.f32.mrb[130].mxu0  ;;  %8513 = vmatprep.subr.bf16.mxu1 %v5447_v9 }
 0x3e4   :  { %v4214_v53 = vadd.f32 %v12288_v8, %v9178_v33  ;;  %v4205_v50 = vpop.f32.mrb[131].mxu0  ;;  %8514 = vmatpush3.bf16.msra.mxu1 %v12332_v10  ;;  %v5099_v26 = vmax.f32 %v4211_v20, 0.0  ;;  %v7977_v10 = vcombine.low %v12294_v30, %v12299_v7 }
 0x3e5   :  { %v4206_v55 = vadd.f32 %v12288_v8, %v4205_v50  ;;  %8515 = vmatprep.subr.bf16.mxu1 %v5448_v24  ;;  %v5097_v57 = vmax.f32 %v4203_v31, 0.0 }
 0x3e6   :  { %v5100_v15 = vmax.f32 %v4214_v53, 0.0 }
 0x3e7   :  { %v5098_v16 = vmax.f32 %v4206_v55, 0.0 }
 0x3e8   :  { %v12379_v36 = vpack.c.bf16 %v5100_v15, %v5099_v26  ;;  %8516 = vmatpush3.bf16.msra.mxu1 %v12330_v43 }
 0x3e9   :  { %v12384_v28 = vpack.c.bf16 %v5098_v16, %v5097_v57  ;;  %v9181_v41 = vpop.f32.mrb[132].mxu0 }
 0x3ea   :  { %v4227_v19 = vadd.f32 %v12288_v8, %v9181_v41  ;;  %v4218_v11 = vpop.f32.mrb[133].mxu0 }
 0x3eb   :  { %v4219_v23 = vadd.f32 %v12288_v8, %v4218_v11  ;;  %v9182_v29 = vpop.f32.mrb[134].mxu0  ;;  %6157 = vmatmul.mubr.bf16.vlgmr.msra.gmra.mrb[96].mxu1 %v7977_v10 }
 0x3ec   :  { %v4230_v37 = vadd.f32 %v12288_v8, %v9182_v29  ;;  %v4221_v30 = vpop.f32.mrb[135].mxu0  ;;  %6197 = vmatprep.mubr.bf16.mxu1 %v7980_v59  ;;  %v5103_v43 = vmax.f32 %v4227_v19, 0.0 }
 0x3ed   :  { %v4222_v7 = vadd.f32 %v12288_v8, %v4221_v30  ;;  %v5101_v25 = vmax.f32 %v4219_v23, 0.0 }
 0x3ee   :  { %v5104_v1 = vmax.f32 %v4230_v37, 0.0 }
 0x3ef   :  { %v5102_v63 = vmax.f32 %v4222_v7, 0.0 }
 0x3f0   :  { %v12390_v46 = vpack.c.bf16 %v5104_v1, %v5103_v43 }
 0x3f1   :  { %v12392_v35 = vpack.c.bf16 %v5102_v63, %v5101_v25  ;;  %v9185_v58 = vpop.f32.mrb[136].mxu0 }
 0x3f2   :  { %v4243_v24 = vadd.f32 %v12288_v8, %v9185_v58  ;;  %v4234_v9 = vpop.f32.mrb[137].mxu0 }
 0x3f3   :  { %v4235_v5 = vadd.f32 %v12288_v8, %v4234_v9  ;;  %v9186_v20 = vpop.f32.mrb[138].mxu0 }
 0x3f4   :  { %v4246_v39 = vadd.f32 %v12288_v8, %v9186_v20  ;;  %v4237_v31 = vpop.f32.mrb[139].mxu0  ;;  %v5107_v53 = vmax.f32 %v4243_v24, 0.0 }
 0x3f5   :  { %v4238_v33 = vadd.f32 %v12288_v8, %v4237_v31  ;;  %v5105_v55 = vmax.f32 %v4235_v5, 0.0 }
 0x3f6   :  { %v5108_v50 = vmax.f32 %v4246_v39, 0.0 }
 0x3f7   :  { %v5106_v26 = vmax.f32 %v4238_v33, 0.0 }
 0x3f8   :  { %v12398_v15 = vpack.c.bf16 %v5108_v50, %v5107_v53 }
 0x3f9   :  { %v12400_v57 = vpack.c.bf16 %v5106_v26, %v5105_v55  ;;  %v9189_v16 = vpop.f32.mrb[140].mxu0 }
 0x3fa   :  { %v4259_v10 = vadd.f32 %v12288_v8, %v9189_v16  ;;  %v4250_v59 = vpop.f32.mrb[141].mxu0 }
 0x3fb   :  { %v4251_v41 = vadd.f32 %v12288_v8, %v4250_v59  ;;  %v9190_v19 = vpop.f32.mrb[142].mxu0 }
 0x3fc   :  { %v4262_v11 = vadd.f32 %v12288_v8, %v9190_v19  ;;  %v4253_v23 = vpop.f32.mrb[143].mxu0  ;;  %v5111_v37 = vmax.f32 %v4259_v10, 0.0 }
 0x3fd   :  { %v4254_v29 = vadd.f32 %v12288_v8, %v4253_v23  ;;  %v5109_v43 = vmax.f32 %v4251_v41, 0.0 }
 0x3fe   :  { %v5112_v30 = vmax.f32 %v4262_v11, 0.0  ;;  %v8451_v7 = vpop.f32.mrb[84].mxu1 }
 0x3ff   :  { %v5110_v1 = vmax.f32 %v4254_v29, 0.0  ;;  %v8452_v25 = vpop.f32.mrb[85].mxu1 }
 0x400   :  { %v12406_v63 = vpack.c.bf16 %v5112_v30, %v5111_v37  ;;  %v8453_v58 = vadd.f32 %v8452_v25, %v8451_v7  ;;  %v8454_v24 = vpop.f32.mrb[86].mxu1 }
 0x401   :  { %v12408_v9 = vpack.c.bf16 %v5110_v1, %v5109_v43  ;;  %v9193_v5 = vpop.f32.mrb[144].mxu0  ;;  %v8455_v20 = vpop.f32.mrb[87].mxu1 }
 0x402   :  { %v12411_v39 = vadd.f32 %v8453_v58, %v12335_v47  ;;  %v4275_v31 = vadd.f32 %v12288_v8, %v9193_v5  ;;  %v8456_v33 = vadd.f32 %v8455_v20, %v8454_v24  ;;  %v4266_v53 = vpop.f32.mrb[145].mxu0 }
 0x403   :  { %v4267_v50 = vadd.f32 %v12288_v8, %v4266_v53  ;;  %v9194_v55 = vpop.f32.mrb[146].mxu0 }
 0x404   :  { %v12416_v26 = vadd.f32 %v8456_v33, %v12340_v22  ;;  %v4278_v16 = vadd.f32 %v12288_v8, %v9194_v55  ;;  %v4269_v10 = vpop.f32.mrb[147].mxu0  ;;  %v5115_v41 = vmax.f32 %v4275_v31, 0.0 }
 0x405   :  { %v4270_v59 = vadd.f32 %v12288_v8, %v4269_v10  ;;  %v5113_v11 = vmax.f32 %v4267_v50, 0.0 }
 0x406   :  { %v5116_v19 = vmax.f32 %v4278_v16, 0.0 }
 0x407   :  { %v5114_v47 = vmax.f32 %v4270_v59, 0.0 }
 0x408   :  { %v5458_v23 = vpack.c.bf16 %v5116_v19, %v5115_v41 }
 0x409   :  { %v5457_v29 = vpack.c.bf16 %v5114_v47, %v5113_v11  ;;  %v9197_v37 = vpop.f32.mrb[148].mxu0 }
 0x40a   :  { %v4291_v30 = vadd.f32 %v12288_v8, %v9197_v37  ;;  %v4282_v7 = vpop.f32.mrb[149].mxu0 }
 0x40b   :  { %v4283_v43 = vadd.f32 %v12288_v8, %v4282_v7  ;;  %v9198_v1 = vpop.f32.mrb[150].mxu0  ;;  %8523 = vmatprep.subr.bf16.mxu1 %v5457_v29 }
 0x40c   :  { %v4294_v22 = vadd.f32 %v12288_v8, %v9198_v1  ;;  %v4285_v25 = vpop.f32.mrb[151].mxu0  ;;  %8524 = vmatpush3.bf16.msra.mxu1 %v12384_v28  ;;  %v5119_v24 = vmax.f32 %v4291_v30, 0.0 }
 0x40d   :  { %v4286_v58 = vadd.f32 %v12288_v8, %v4285_v25  ;;  %8525 = vmatprep.subr.bf16.mxu1 %v5458_v23  ;;  %v5117_v20 = vmax.f32 %v4283_v43, 0.0 }
 0x40e   :  { %v5120_v5 = vmax.f32 %v4294_v22, 0.0 }
 0x40f   :  { %v5118_v31 = vmax.f32 %v4286_v58, 0.0 }
 0x410   :  { %v5460_v33 = vpack.c.bf16 %v5120_v5, %v5119_v24  ;;  %8526 = vmatpush3.bf16.msra.mxu1 %v12379_v36 }
 0x411   :  { %v5459_v53 = vpack.c.bf16 %v5118_v31, %v5117_v20  ;;  %v9201_v50 = vpop.f32.mrb[152].mxu0 }
 0x412   :  { %v4307_v55 = vadd.f32 %v12288_v8, %v9201_v50  ;;  %v4298_v16 = vpop.f32.mrb[153].mxu0 }
 0x413   :  { %v4299_v10 = vadd.f32 %v12288_v8, %v4298_v16  ;;  %v9202_v59 = vpop.f32.mrb[154].mxu0  ;;  %8527 = vmatprep.subr.bf16.mxu1 %v5459_v53 }
 0x414   :  { %v4310_v28 = vadd.f32 %v12288_v8, %v9202_v59  ;;  %v4301_v41 = vpop.f32.mrb[155].mxu0  ;;  %8528 = vmatpush3.bf16.msra.mxu1 %v12392_v35  ;;  %v5123_v11 = vmax.f32 %v4307_v55, 0.0 }
 0x415   :  { %v4302_v19 = vadd.f32 %v12288_v8, %v4301_v41  ;;  %8529 = vmatprep.subr.bf16.mxu1 %v5460_v33  ;;  %v5121_v36 = vmax.f32 %v4299_v10, 0.0  ;;  %v12451_v41 = vld [vmem:[%s12980_s3 + $0xe8] sm:$0xff] }
 0x416   :  { %v5124_v47 = vmax.f32 %v4310_v28, 0.0 }
 0x417   :  { %v5122_v23 = vmax.f32 %v4302_v19, 0.0 }
 0x418   :  { %v5462_v29 = vpack.c.bf16 %v5124_v47, %v5123_v11  ;;  %8530 = vmatpush3.bf16.msra.mxu1 %v12390_v46 }
 0x419   :  { %v5461_v37 = vpack.c.bf16 %v5122_v23, %v5121_v36  ;;  %v9205_v30 = vpop.f32.mrb[156].mxu0 }
 0x41a   :  { %v4323_v7 = vadd.f32 %v12288_v8, %v9205_v30  ;;  %v4314_v43 = vpop.f32.mrb[157].mxu0 }
 0x41b   :  { %v4315_v1 = vadd.f32 %v12288_v8, %v4314_v43  ;;  %v9206_v22 = vpop.f32.mrb[158].mxu0  ;;  %8531 = vmatprep.subr.bf16.mxu1 %v5461_v37 }
 0x41c   :  { %v4326_v35 = vadd.f32 %v12288_v8, %v9206_v22  ;;  %v4317_v25 = vpop.f32.mrb[159].mxu0  ;;  %8532 = vmatpush3.bf16.msra.mxu1 %v12400_v57  ;;  %v5127_v24 = vmax.f32 %v4323_v7, 0.0 }
 0x41d   :  { %v4318_v58 = vadd.f32 %v12288_v8, %v4317_v25  ;;  %8533 = vmatprep.subr.bf16.mxu1 %v5462_v29  ;;  %v5125_v46 = vmax.f32 %v4315_v1, 0.0 }
 0x41e   :  { %v5128_v5 = vmax.f32 %v4326_v35, 0.0 }
 0x41f   :  { %v5126_v20 = vmax.f32 %v4318_v58, 0.0 }
 0x420   :  { %v5464_v31 = vpack.c.bf16 %v5128_v5, %v5127_v24  ;;  %8534 = vmatpush3.bf16.msra.mxu1 %v12398_v15  ;;  %v12446_v15 = vld [vmem:[%s12980_s3 + $0x68] sm:$0xff] }
 0x421   :  { %v5463_v33 = vpack.c.bf16 %v5126_v20, %v5125_v46  ;;  %v9209_v53 = vpop.f32.mrb[160].mxu0  ;;  %v7982_v29 = vcombine.high %v12446_v15, %v12451_v41 }
 0x422   :  { %v4339_v50 = vadd.f32 %v12288_v8, %v9209_v53  ;;  %v4330_v55 = vpop.f32.mrb[161].mxu0 }
 0x423   :  { %v4331_v16 = vadd.f32 %v12288_v8, %v4330_v55  ;;  %v9210_v10 = vpop.f32.mrb[162].mxu0  ;;  %8535 = vmatprep.subr.bf16.mxu1 %v5463_v33 }
 0x424   :  { %v4342_v57 = vadd.f32 %v12288_v8, %v9210_v10  ;;  %v4333_v59 = vpop.f32.mrb[163].mxu0  ;;  %8536 = vmatpush3.bf16.msra.mxu1 %v12408_v9  ;;  %v5131_v19 = vmax.f32 %v4339_v50, 0.0  ;;  %v7979_v9 = vcombine.low %v12370_v3, %v12375_v62 }
 0x425   :  { %v4334_v28 = vadd.f32 %v12288_v8, %v4333_v59  ;;  %8537 = vmatprep.subr.bf16.mxu1 %v5464_v31  ;;  %v5129_v47 = vmax.f32 %v4331_v16, 0.0 }
 0x426   :  { %v5132_v11 = vmax.f32 %v4342_v57, 0.0 }
 0x427   :  { %v5130_v36 = vmax.f32 %v4334_v28, 0.0 }
 0x428   :  { %v12455_v23 = vpack.c.bf16 %v5132_v11, %v5131_v19  ;;  %8538 = vmatpush3.bf16.msra.mxu1 %v12406_v63 }
 0x429   :  { %v12460_v37 = vpack.c.bf16 %v5130_v36, %v5129_v47  ;;  %v9213_v30 = vpop.f32.mrb[164].mxu0 }
 0x42a   :  { %v4355_v7 = vadd.f32 %v12288_v8, %v9213_v30  ;;  %v4346_v43 = vpop.f32.mrb[165].mxu0 }
 0x42b   :  { %v4347_v1 = vadd.f32 %v12288_v8, %v4346_v43  ;;  %v9214_v22 = vpop.f32.mrb[166].mxu0  ;;  %6198 = vmatmul.mubr.bf16.vlgmr.msra.gmra.mrb[100].mxu1 %v7979_v9 }
 0x42c   :  { %v4358_v35 = vadd.f32 %v12288_v8, %v9214_v22  ;;  %v4349_v3 = vpop.f32.mrb[167].mxu0  ;;  %6238 = vmatprep.mubr.bf16.mxu1 %v7982_v29  ;;  %v5135_v63 = vmax.f32 %v4355_v7, 0.0 }
 0x42d   :  { %v4350_v62 = vadd.f32 %v12288_v8, %v4349_v3  ;;  %v5133_v58 = vmax.f32 %v4347_v1, 0.0 }
 0x42e   :  { %v5136_v25 = vmax.f32 %v4358_v35, 0.0 }
 0x42f   :  { %v5134_v24 = vmax.f32 %v4350_v62, 0.0 }
 0x430   :  { %v12466_v5 = vpack.c.bf16 %v5136_v25, %v5135_v63 }
 0x431   :  { %v12468_v46 = vpack.c.bf16 %v5134_v24, %v5133_v58  ;;  %v9217_v20 = vpop.f32.mrb[168].mxu0 }
 0x432   :  { %v4371_v31 = vadd.f32 %v12288_v8, %v9217_v20  ;;  %v4362_v33 = vpop.f32.mrb[169].mxu0 }
 0x433   :  { %v4363_v53 = vadd.f32 %v12288_v8, %v4362_v33  ;;  %v9218_v50 = vpop.f32.mrb[170].mxu0 }
 0x434   :  { %v4374_v55 = vadd.f32 %v12288_v8, %v9218_v50  ;;  %v4365_v16 = vpop.f32.mrb[171].mxu0  ;;  %v5139_v57 = vmax.f32 %v4371_v31, 0.0 }
 0x435   :  { %v4366_v10 = vadd.f32 %v12288_v8, %v4365_v16  ;;  %v5137_v28 = vmax.f32 %v4363_v53, 0.0 }
 0x436   :  { %v5140_v59 = vmax.f32 %v4374_v55, 0.0 }
 0x437   :  { %v5138_v19 = vmax.f32 %v4366_v10, 0.0 }
 0x438   :  { %v12474_v11 = vpack.c.bf16 %v5140_v59, %v5139_v57 }
 0x439   :  { %v12476_v47 = vpack.c.bf16 %v5138_v19, %v5137_v28  ;;  %v9221_v36 = vpop.f32.mrb[172].mxu0 }
 0x43a   :  { %v4387_v9 = vadd.f32 %v12288_v8, %v9221_v36  ;;  %v4378_v29 = vpop.f32.mrb[173].mxu0 }
 0x43b   :  { %v4379_v30 = vadd.f32 %v12288_v8, %v4378_v29  ;;  %v9222_v7 = vpop.f32.mrb[174].mxu0 }
 0x43c   :  { %v4390_v43 = vadd.f32 %v12288_v8, %v9222_v7  ;;  %v4381_v1 = vpop.f32.mrb[175].mxu0  ;;  %v5143_v35 = vmax.f32 %v4387_v9, 0.0 }
 0x43d   :  { %v4382_v22 = vadd.f32 %v12288_v8, %v4381_v1  ;;  %v5141_v63 = vmax.f32 %v4379_v30, 0.0 }
 0x43e   :  { %v5144_v3 = vmax.f32 %v4390_v43, 0.0  ;;  %v8473_v62 = vpop.f32.mrb[88].mxu1 }
 0x43f   :  { %v5142_v25 = vmax.f32 %v4382_v22, 0.0  ;;  %v8474_v58 = vpop.f32.mrb[89].mxu1 }
 0x440   :  { %v12482_v24 = vpack.c.bf16 %v5144_v3, %v5143_v35  ;;  %v8475_v20 = vadd.f32 %v8474_v58, %v8473_v62  ;;  %v8476_v31 = vpop.f32.mrb[90].mxu1 }
 0x441   :  { %v12484_v33 = vpack.c.bf16 %v5142_v25, %v5141_v63  ;;  %v9225_v53 = vpop.f32.mrb[176].mxu0  ;;  %v8477_v50 = vpop.f32.mrb[91].mxu1 }
 0x442   :  { %v12487_v55 = vadd.f32 %v8475_v20, %v12411_v39  ;;  %v4403_v16 = vadd.f32 %v12288_v8, %v9225_v53  ;;  %v8478_v10 = vadd.f32 %v8477_v50, %v8476_v31  ;;  %v4394_v57 = vpop.f32.mrb[177].mxu0 }
 0x443   :  { %v4395_v59 = vadd.f32 %v12288_v8, %v4394_v57  ;;  %v9226_v28 = vpop.f32.mrb[178].mxu0 }
 0x444   :  { %v12492_v19 = vadd.f32 %v8478_v10, %v12416_v26  ;;  %v4406_v36 = vadd.f32 %v12288_v8, %v9226_v28  ;;  %v4397_v9 = vpop.f32.mrb[179].mxu0  ;;  %v5147_v30 = vmax.f32 %v4403_v16, 0.0 }
 0x445   :  { %v4398_v29 = vadd.f32 %v12288_v8, %v4397_v9  ;;  %v5145_v43 = vmax.f32 %v4395_v59, 0.0 }
 0x446   :  { %v5148_v7 = vmax.f32 %v4406_v36, 0.0 }
 0x447   :  { %v5146_v39 = vmax.f32 %v4398_v29, 0.0 }
 0x448   :  { %v5474_v1 = vpack.c.bf16 %v5148_v7, %v5147_v30 }
 0x449   :  { %v5473_v22 = vpack.c.bf16 %v5146_v39, %v5145_v43  ;;  %v9229_v35 = vpop.f32.mrb[180].mxu0 }
 0x44a   :  { %v4419_v3 = vadd.f32 %v12288_v8, %v9229_v35  ;;  %v4410_v62 = vpop.f32.mrb[181].mxu0 }
 0x44b   :  { %v4411_v63 = vadd.f32 %v12288_v8, %v4410_v62  ;;  %v9230_v25 = vpop.f32.mrb[182].mxu0  ;;  %8545 = vmatprep.subr.bf16.mxu1 %v5473_v22 }
 0x44c   :  { %v4422_v26 = vadd.f32 %v12288_v8, %v9230_v25  ;;  %v4413_v58 = vpop.f32.mrb[183].mxu0  ;;  %8546 = vmatpush3.bf16.msra.mxu1 %v12460_v37  ;;  %v5151_v31 = vmax.f32 %v4419_v3, 0.0 }
 0x44d   :  { %v4414_v20 = vadd.f32 %v12288_v8, %v4413_v58  ;;  %8547 = vmatprep.subr.bf16.mxu1 %v5474_v1  ;;  %v5149_v50 = vmax.f32 %v4411_v63, 0.0 }
 0x44e   :  { %v5152_v53 = vmax.f32 %v4422_v26, 0.0 }
 0x44f   :  { %v5150_v16 = vmax.f32 %v4414_v20, 0.0 }
 0x450   :  { %v5476_v10 = vpack.c.bf16 %v5152_v53, %v5151_v31  ;;  %8548 = vmatpush3.bf16.msra.mxu1 %v12455_v23 }
 0x451   :  { %v5475_v57 = vpack.c.bf16 %v5150_v16, %v5149_v50  ;;  %v9233_v59 = vpop.f32.mrb[184].mxu0 }
 0x452   :  { %v4435_v28 = vadd.f32 %v12288_v8, %v9233_v59  ;;  %v4426_v36 = vpop.f32.mrb[185].mxu0 }
 0x453   :  { %v4427_v9 = vadd.f32 %v12288_v8, %v4426_v36  ;;  %v9234_v29 = vpop.f32.mrb[186].mxu0  ;;  %8549 = vmatprep.subr.bf16.mxu1 %v5475_v57 }
 0x454   :  { %v4438_v37 = vadd.f32 %v12288_v8, %v9234_v29  ;;  %v4429_v30 = vpop.f32.mrb[187].mxu0  ;;  %8550 = vmatpush3.bf16.msra.mxu1 %v12468_v46  ;;  %v5155_v43 = vmax.f32 %v4435_v28, 0.0 }
 0x455   :  { %v4430_v7 = vadd.f32 %v12288_v8, %v4429_v30  ;;  %8551 = vmatprep.subr.bf16.mxu1 %v5476_v10  ;;  %v5153_v23 = vmax.f32 %v4427_v9, 0.0 }
 0x456   :  { %v5156_v39 = vmax.f32 %v4438_v37, 0.0 }
 0x457   :  { %v5154_v1 = vmax.f32 %v4430_v7, 0.0  ;;  %v12527_v7 = vld [vmem:[%s12980_s3 + $0xf0] sm:$0xff] }
 0x458   :  { %v5478_v22 = vpack.c.bf16 %v5156_v39, %v5155_v43  ;;  %8552 = vmatpush3.bf16.msra.mxu1 %v12466_v5 }
 0x459   :  { %v5477_v35 = vpack.c.bf16 %v5154_v1, %v5153_v23  ;;  %v9237_v3 = vpop.f32.mrb[188].mxu0  ;;  %v7981_v1 = vcombine.low %v12446_v15, %v12451_v41 }
 0x45a   :  { %v4451_v62 = vadd.f32 %v12288_v8, %v9237_v3  ;;  %v4442_v63 = vpop.f32.mrb[189].mxu0 }
 0x45b   :  { %v4443_v25 = vadd.f32 %v12288_v8, %v4442_v63  ;;  %v9238_v26 = vpop.f32.mrb[190].mxu0  ;;  %8553 = vmatprep.subr.bf16.mxu1 %v5477_v35 }
 0x45c   :  { %v4454_v46 = vadd.f32 %v12288_v8, %v9238_v26  ;;  %v4445_v58 = vpop.f32.mrb[191].mxu0  ;;  %8554 = vmatpush3.bf16.msra.mxu1 %v12476_v47  ;;  %v5159_v31 = vmax.f32 %v4451_v62, 0.0 }
 0x45d   :  { %v4446_v20 = vadd.f32 %v12288_v8, %v4445_v58  ;;  %8555 = vmatprep.subr.bf16.mxu1 %v5478_v22  ;;  %v5157_v5 = vmax.f32 %v4443_v25, 0.0 }
 0x45e   :  { %v5160_v53 = vmax.f32 %v4454_v46, 0.0 }
 0x45f   :  { %v5158_v50 = vmax.f32 %v4446_v20, 0.0 }
 0x460   :  { %v5480_v16 = vpack.c.bf16 %v5160_v53, %v5159_v31  ;;  %8556 = vmatpush3.bf16.msra.mxu1 %v12474_v11  ;;  %v12522_v11 = vld [vmem:[%s12980_s3 + $0x70] sm:$0xff] }
 0x461   :  { %v5479_v10 = vpack.c.bf16 %v5158_v50, %v5157_v5  ;;  %v9241_v57 = vpop.f32.mrb[192].mxu0  ;;  %v7984_v22 = vcombine.high %v12522_v11, %v12527_v7 }
 0x462   :  { %v4467_v59 = vadd.f32 %v12288_v8, %v9241_v57  ;;  %v4458_v28 = vpop.f32.mrb[193].mxu0 }
 0x463   :  { %v4459_v36 = vadd.f32 %v12288_v8, %v4458_v28  ;;  %v9242_v9 = vpop.f32.mrb[194].mxu0  ;;  %8557 = vmatprep.subr.bf16.mxu1 %v5479_v10 }
 0x464   :  { %v5163_v47 = vmax.f32 %v4467_v59, 0.0  ;;  %v4470_v29 = vadd.f32 %v12288_v8, %v9242_v9  ;;  %v4461_v37 = vpop.f32.mrb[195].mxu0  ;;  %8558 = vmatpush3.bf16.msra.mxu1 %v12484_v33 }
 0x465   :  { %v4462_v30 = vadd.f32 %v12288_v8, %v4461_v37  ;;  %8559 = vmatprep.subr.bf16.mxu1 %v5480_v16  ;;  %v5161_v39 = vmax.f32 %v4459_v36, 0.0 }
 0x466   :  { %v5164_v43 = vmax.f32 %v4470_v29, 0.0 }
 0x467   :  { %v5162_v23 = vmax.f32 %v4462_v30, 0.0 }
 0x468   :  { %v5482_v33 = vpack.c.bf16 %v5164_v43, %v5163_v47  ;;  %8560 = vmatpush3.bf16.msra.mxu1 %v12482_v24 }
 0x469   :  { %v5481_v35 = vpack.c.bf16 %v5162_v23, %v5161_v39  ;;  %v9245_v3 = vpop.f32.mrb[196].mxu0  ;;  %8567 = vmatprep.subr.bf16.mxu1 %v11728_v48 }
 0x46a   :  { %v4483_v62 = vadd.f32 %v12288_v8, %v9245_v3  ;;  %v4474_v63 = vpop.f32.mrb[197].mxu0 }
 0x46b   :  { %v4475_v25 = vadd.f32 %v12288_v8, %v4474_v63  ;;  %v9246_v26 = vpop.f32.mrb[198].mxu0  ;;  %6239 = vmatmul.mubr.bf16.vlgmr.msra.gmra.mrb[104].mxu1 %v7981_v1 }
 0x46c   :  { %v5167_v46 = vmax.f32 %v4483_v62, 0.0  ;;  %v4486_v15 = vadd.f32 %v12288_v8, %v9246_v26  ;;  %v4477_v41 = vpop.f32.mrb[199].mxu0  ;;  %8568 = vmatpush3.bf16.msra.mxu1 %v5481_v35  ;;  %6279 = vmatprep.mubr.bf16.mxu1 %v7984_v22 }
 0x46d   :  { %v4478_v24 = vadd.f32 %v12288_v8, %v4477_v41  ;;  %8569 = vmatprep.subr.bf16.mxu1 %v11725_v32  ;;  %v5165_v20 = vmax.f32 %v4475_v25, 0.0 }
 0x46e   :  { %v5168_v58 = vmax.f32 %v4486_v15, 0.0 }
 0x46f   :  { %v5166_v48 = vmax.f32 %v4478_v24, 0.0 }
 0x470   :  { %v5484_v31 = vpack.c.bf16 %v5168_v58, %v5167_v46  ;;  %8570 = vmatpush3.bf16.msra.mxu1 %v5482_v33 }
 0x471   :  { %v5483_v53 = vpack.c.bf16 %v5166_v48, %v5165_v20  ;;  %v9249_v5 = vpop.f32.mrb[200].mxu0  ;;  %8571 = vmatprep.subr.bf16.mxu1 %v11749_v49 }
 0x472   :  { %v4499_v50 = vadd.f32 %v12288_v8, %v9249_v5  ;;  %v4490_v16 = vpop.f32.mrb[201].mxu0 }
 0x473   :  { %v4491_v10 = vadd.f32 %v12288_v8, %v4490_v16  ;;  %v9250_v57 = vpop.f32.mrb[202].mxu0 }
 0x474   :  { %v5171_v59 = vmax.f32 %v4499_v50, 0.0  ;;  %v4502_v28 = vadd.f32 %v12288_v8, %v9250_v57  ;;  %v4493_v36 = vpop.f32.mrb[203].mxu0  ;;  %8572 = vmatpush3.bf16.msra.mxu1 %v5483_v53  ;;  %v6421_v57 = vld [vmem:[%s12983_s6 + $0x10] sm:$0xff] }
 0x475   :  { %v4494_v32 = vadd.f32 %v12288_v8, %v4493_v36  ;;  %8573 = vmatprep.subr.bf16.mxu1 %v11746_v17  ;;  %v5169_v47 = vmax.f32 %v4491_v10, 0.0 }
 0x476   :  { %v5172_v9 = vmax.f32 %v4502_v28, 0.0 }
 0x477   :  { %v5170_v29 = vmax.f32 %v4494_v32, 0.0 }
 0x478   :  { %v5486_v37 = vpack.c.bf16 %v5172_v9, %v5171_v59  ;;  %8574 = vmatpush3.bf16.msra.mxu1 %v5484_v31  ;;  %v6422_v59 = vld [vmem:[%s12983_s6 + $0x18] sm:$0xff] }
 0x479   :  { %v5485_v49 = vpack.c.bf16 %v5170_v29, %v5169_v47  ;;  %8575 = vmatprep.subr.bf16.mxu1 %v11771_v54  ;;  %v5256_v54 = vld [vmem:[%s12980_s3 + $0xf8] sm:$0xff]  ;;  %v9662_v9 = vpack.c.bf16 %v6422_v59, %v6421_v57  ;;  %v6423_v47 = vld [vmem:[%s12983_s6 + $0x20] sm:$0xff]  ;;  %v6424_v29 = vld [vmem:[%s12983_s6 + $0x28] sm:$0xff]  ;;  %v6533_v59 = vlaneseq }
 0x47c   :  { %8576 = vmatpush3.bf16.msra.mxu1 %v5485_v49  ;;  %v6425_v49 = vld [vmem:[%s12983_s6 + $0x30] sm:$0xff] }
 0x47d   :  { %8577 = vmatprep.subr.bf16.mxu1 %v11768_v44  ;;  %v5240_v44 = vld [vmem:[%s12980_s3 + $0x78] sm:$0xff] }
 0x47e   :  { %v8495_v30 = vpop.f32.mrb[92].mxu1 }
 0x47f   :  { %v8496_v43 = vpop.f32.mrb[93].mxu1 }
 0x480   :  { %v8497_v39 = vadd.f32 %v8496_v43, %v8495_v30  ;;  %v8498_v23 = vpop.f32.mrb[94].mxu1  ;;  %8578 = vmatpush3.bf16.msra.mxu1 %v5486_v37  ;;  %v9666_v37 = vpack.c.bf16 %v6424_v29, %v6423_v47  ;;  %v6426_v30 = vld [vmem:[%s12983_s6 + $0x38] sm:$0xff] }
 0x481   :  { %v8499_v1 = vpop.f32.mrb[95].mxu1  ;;  %8579 = vmatprep.subr.bf16.mxu1 %v11793_v21  ;;  %v7983_v21 = vcombine.low %v12522_v11, %v12527_v7  ;;  %v9670_v43 = vpack.c.bf16 %v6426_v30, %v6425_v49 }
 0x482   :  { %v6118_v17 = vadd.f32 %v8497_v39, %v12487_v55  ;;  %v8500_v8 = vadd.f32 %v8499_v1, %v8498_v23  ;;  %v7986_v55 = vcombine.high %v5240_v44, %v5256_v54  ;;  %v6427_v39 = vld [vmem:[%s12983_s6 + $0x40] sm:$0xff]  ;;  %v6428_v23 = vld [vmem:[%s12983_s6 + $0x48] sm:$0xff] }
 0x483   :  { %v9674_v1 = vpack.c.bf16 %v6428_v23, %v6427_v39 }
 0x484   :  { %v6121_v33 = vadd.f32 %v8500_v8, %v12492_v19  ;;  %8580 = vmatpush3.bf16.msra.mxu1 %v11704_v2  ;;  %v6420_v19 = vld [vmem:[%s12983_s6 + $0x8] sm:$0xff]  ;;  %v6430_v8 = vld [vmem:[%s12983_s6 + $0x58] sm:$0xff] }
 0x485   :  { %8581 = vmatprep.subr.bf16.mxu1 %v11790_v14 }
 0x488   :  { %8582 = vmatpush3.bf16.msra.mxu1 %v11701_v40  ;;  %v7985_v40 = vcombine.low %v5240_v44, %v5256_v54  ;;  %v6431_v44 = vld [vmem:[%s12983_s6 + $0x60] sm:$0xff]  ;;  %v6432_v54 = vld [vmem:[%s12983_s6 + $0x68] sm:$0xff] }
 0x489   :  { %8589 = vmatprep.subr.bf16.mxu1 %v11931_v12 }
 0x48b   :  { %6280 = vmatmul.mubr.bf16.vlgmr.msra.gmra.mrb[108].mxu1 %v7983_v21  ;;  %v9682_v21 = vpack.c.bf16 %v6432_v54, %v6431_v44 }
 0x48c   :  { %8590 = vmatpush3.bf16.msra.mxu1 %v11825_v61  ;;  %6320 = vmatprep.mubr.bf16.mxu1 %v7986_v55  ;;  %v6433_v55 = vld [vmem:[%s12983_s6 + $0x70] sm:$0xff] }
 0x48d   :  { %8591 = vmatprep.subr.bf16.mxu1 %v11928_v38 }
 0x490   :  { %8592 = vmatpush3.bf16.msra.mxu1 %v11822_v18 }
 0x491   :  { %8593 = vmatprep.subr.bf16.mxu1 %v11954_v56 }
 0x494   :  { %8594 = vmatpush3.bf16.msra.mxu1 %v11854_v34 }
 0x495   :  { %8595 = vmatprep.subr.bf16.mxu1 %v11952_v51 }
 0x498   :  { %8596 = vmatpush3.bf16.msra.mxu1 %v11851_v45 }
 0x499   :  { %8597 = vmatprep.subr.bf16.mxu1 %v11965_v4 }
 0x49c   :  { %8598 = vmatpush3.bf16.msra.mxu1 %v11878_v13 }
 0x49d   :  { %8599 = vmatprep.subr.bf16.mxu1 %v11957_v0 }
 0x4a0   :  { %8600 = vmatpush3.bf16.msra.mxu1 %v11875_v6  ;;  %v6329_v6 = vld [vmem:[%s12981_s4] sm:$0xff] }
 0x4a1   :  { %8601 = vmatprep.subr.bf16.mxu1 %v11982_v42  ;;  %v6419_v42 = vld [vmem:[%s12983_s6] sm:$0xff] }
 0x4a2   :  { %v9658_v11 = vpack.c.bf16 %v6420_v19, %v6419_v42  ;;  %v6523_v42 = vld [vmem:[%s12985_s8 + $0x30] sm:$0xff]  ;;  %v6524_v19 = vld [vmem:[%s12985_s8 + $0x38] sm:$0xff] }
 0x4a4   :  { %8602 = vmatpush3.bf16.msra.mxu1 %v11902_v60 }
 0x4a5   :  { %8603 = vmatprep.subr.bf16.mxu1 %v11980_v27 }
 0x4a8   :  { %8604 = vmatpush3.bf16.msra.mxu1 %v11899_v52 }
 0x4a9   :  { %9303 = vmatprep.subr.mxu1 %v6329_v6 }
 0x4ab   :  { %6321 = vmatmul.mubr.bf16.vlgmr.msra.gmra.mrb[112].mxu1 %v7985_v40  ;;  %v6434_v40 = vld [vmem:[%s12983_s6 + $0x78] sm:$0xff] }
 0x4ac   :  { %9304 = vmatpush3.msra.mxu1 %v6329_v6 }
 0x4ad   :  { %9659 = vmatprep.subr.bf16.mxu1 %v9658_v11 }
 0x4be   :  { %v8517_v2 = vpop.f32.mrb[96].mxu1 }
 0x4bf   :  { %v8518_v14 = vpop.f32.mrb[97].mxu1 }
 0x4c0   :  { %v8519_v18 = vadd.f32 %v8518_v14, %v8517_v2  ;;  %v8520_v61 = vpop.f32.mrb[98].mxu1  ;;  %v9686_v2 = vpack.c.bf16 %v6434_v40, %v6433_v55  ;;  %v10272_v14 = vmov 0.0|0.0  }
 0x4c1   :  { %v8521_v45 = vpop.f32.mrb[99].mxu1 }
 0x4c2   :  { %v6159_v34 = vadd.f32 %v8519_v18, %v6118_v17  ;;  %v8522_v13 = vadd.f32 %v8521_v45, %v8520_v61  ;;  %v6429_v17 = vld [vmem:[%s12983_s6 + $0x50] sm:$0xff]  ;;  %v7987_v18 = vld [vmem:[%s12982_s5] ss:$0 sm:$0xff]  ;;  %v6518_v45 = vld [vmem:[%s12985_s8 + $0x8] sm:$0xff]  ;;  %s10276_s5 = smov 96  }
 0x4c3   :  { %v6517_v61 = vld [vmem:[%s12985_s8] sm:$0xff] }
 0x4c4   :  { %v6162_v38 = vadd.f32 %v8522_v13, %v6121_v33  ;;  %v9678_v33 = vpack.c.bf16 %v6430_v8, %v6429_v17  ;;  %v12639_v6 = vpack.c.bf16 %v6518_v45, %v6517_v61 }
 0x4fe   :  { %v8539_v60 = vpop.f32.mrb[100].mxu1 }
 0x4ff   :  { %v8540_v12 = vpop.f32.mrb[101].mxu1 }
 0x500   :  { %v8541_v51 = vadd.f32 %v8540_v12, %v8539_v60  ;;  %v8542_v56 = vpop.f32.mrb[102].mxu1  ;;  %v6519_v12 = vld [vmem:[%s12985_s8 + $0x10] sm:$0xff] }
 0x501   :  { %v8543_v52 = vpop.f32.mrb[103].mxu1 }
 0x502   :  { %v6200_v0 = vadd.f32 %v8541_v51, %v6159_v34  ;;  %v8544_v4 = vadd.f32 %v8543_v52, %v8542_v56  ;;  %v6520_v51 = vld [vmem:[%s12985_s8 + $0x18] sm:$0xff]  ;;  %v10274_v52 = vmov 0.0  }
 0x503   :  { %v12648_v56 = vpack.c.bf16 %v6520_v51, %v6519_v12 }
 0x504   :  { %v6203_v27 = vadd.f32 %v8544_v4, %v6162_v38  ;;  %v6522_v4 = vld [vmem:[%s12985_s8 + $0x28] sm:$0xff] }
 0x53e   :  { %v8561_v7 = vpop.f32.mrb[104].mxu1 }
 0x53f   :  { %v8562_v22 = vpop.f32.mrb[105].mxu1 }
 0x540   :  { %v8563_v35 = vadd.f32 %v8562_v22, %v8561_v7  ;;  %v8564_v3 = vpop.f32.mrb[106].mxu1  ;;  %v6525_v7 = vld [vmem:[%s12985_s8 + $0x40] sm:$0xff]  ;;  %v6526_v22 = vld [vmem:[%s12985_s8 + $0x48] sm:$0xff] }
 0x541   :  { %v8565_v62 = vpop.f32.mrb[107].mxu1 }
 0x542   :  { %v6241_v63 = vadd.f32 %v8563_v35, %v6200_v0  ;;  %v8566_v25 = vadd.f32 %v8565_v62, %v8564_v3  ;;  %v6521_v0 = vld [vmem:[%s12985_s8 + $0x20] sm:$0xff]  ;;  %v12680_v35 = vpack.c.bf16 %v6526_v22, %v6525_v7  ;;  %v6527_v3 = vld [vmem:[%s12985_s8 + $0x50] sm:$0xff]  ;;  %v6528_v62 = vld [vmem:[%s12985_s8 + $0x58] sm:$0xff] }
 0x544   :  { %v6244_v26 = vadd.f32 %v8566_v25, %v6203_v27  ;;  %v12660_v27 = vpack.c.bf16 %v6522_v4, %v6521_v0  ;;  %v6529_v25 = vld [vmem:[%s12985_s8 + $0x60] sm:$0xff] }
 0x55e   :  { %v8583_v46 = vpop.f32.mrb[108].mxu1 }
 0x55f   :  { %v8584_v15 = vpop.f32.mrb[109].mxu1 }
 0x560   :  { %v8585_v41 = vadd.f32 %v8584_v15, %v8583_v46  ;;  %v8586_v24 = vpop.f32.mrb[110].mxu1  ;;  %v6531_v15 = vld [vmem:[%s12985_s8 + $0x70] sm:$0xff] }
 0x561   :  { %v8587_v58 = vpop.f32.mrb[111].mxu1 }
 0x562   :  { %v6282_v20 = vadd.f32 %v8585_v41, %v6241_v63  ;;  %v8588_v48 = vadd.f32 %v8587_v58, %v8586_v24  ;;  %v12690_v63 = vpack.c.bf16 %v6528_v62, %v6527_v3  ;;  %v6532_v41 = vld [vmem:[%s12985_s8 + $0x78] sm:$0xff]  ;;  %v7990_v58 = vld [vmem:[%s12984_s7] ss:$0 sm:$0xff]  ;;  %s10275_s7 = smov 32  }
 0x563   :  { %v12710_v24 = vpack.c.bf16 %v6532_v41, %v6531_v15 }
 0x564   :  { %v6285_v31 = vadd.f32 %v8588_v48, %v6244_v26  ;;  %v6530_v26 = vld [vmem:[%s12985_s8 + $0x68] sm:$0xff] }
 0x565   :  { %v12700_v46 = vpack.c.bf16 %v6530_v26, %v6529_v25 }
 0x57e   :  { %v8605_v53 = vpop.f32.mrb[112].mxu1 }
 0x57f   :  { %v8606_v5 = vpop.f32.mrb[113].mxu1 }
 0x580   :  { %v8607_v50 = vadd.f32 %v8606_v5, %v8605_v53  ;;  %v8608_v16 = vpop.f32.mrb[114].mxu1 }
 0x581   :  { %v8609_v10 = vpop.f32.mrb[115].mxu1 }
 0x582   :  { %v6323_v28 = vadd.f32 %v8607_v50, %v6282_v20  ;;  %v8610_v36 = vadd.f32 %v8609_v10, %v8608_v16 }
 0x584   :  { %v6326_v32 = vadd.f32 %v8610_v36, %v6285_v31  ;;  %9305 = vmatprep.mubr.msk.f32.mxu1 %vm6337_vm2, %v6323_v28  ;;  %v6534_v36 = vand.u32 127, %v6533_v59 }
 0x586   :  { %9306 = vmatmul.mubr.msk.f32.vlgmr.msra.gmra.mrb[116].mxu1 %vm6337_vm2, %v6326_v32  ;;  %vm6535_vm4 = vcmp.ge.s32.totalorder %v6534_v36, 64  ;;  %vm6536_vm5 = vcmp.lt.s32.totalorder %v6534_v36, 96  ;;  %v7344_v32 = vld [vmem:[%s12986_s9 + $0x70] sm:$0xff] }
 0x587   :  { %9661 = vmatpush3.bf16.msra.mxu1 %v9658_v11  ;;  %v12670_v11 = vpack.c.bf16 %v6524_v19, %v6523_v42  ;;  %vm12742_vm6 = vmand %vm6535_vm4, %vm6536_vm5 }
 0x588   :  { %9663 = vmatprep.subr.bf16.mxu1 %v9662_v9 }
 0x58b   :  { %9665 = vmatpush3.bf16.msra.mxu1 %v9662_v9 }
 0x58c   :  { %9667 = vmatprep.subr.bf16.mxu1 %v9666_v37 }
 0x58f   :  { %9669 = vmatpush3.bf16.msra.mxu1 %v9666_v37 }
 0x590   :  { %9671 = vmatprep.subr.bf16.mxu1 %v9670_v43 }
 0x593   :  { %9673 = vmatpush3.bf16.msra.mxu1 %v9670_v43 }
 0x594   :  { %9675 = vmatprep.subr.bf16.mxu1 %v9674_v1 }
 0x597   :  { %9677 = vmatpush3.bf16.msra.mxu1 %v9674_v1 }
 0x598   :  { %9679 = vmatprep.subr.bf16.mxu1 %v9678_v33 }
 0x59b   :  { %9681 = vmatpush3.bf16.msra.mxu1 %v9678_v33 }
 0x59c   :  { %9683 = vmatprep.subr.bf16.mxu1 %v9682_v21 }
 0x59f   :  { %9685 = vmatpush3.bf16.msra.mxu1 %v9682_v21 }
 0x5a0   :  { %9687 = vmatprep.subr.bf16.mxu1 %v9686_v2 }
 0x5a3   :  { %9689 = vmatpush3.bf16.msra.mxu1 %v9686_v2 }
 0x5a4   :  { %9690 = vmatprep.subr.bf16.mxu1 %v10272_v14 }
 0x659   :  { %v9307_v34 = vpop.f32.mrb[116].mxu1 }
 0x65a   :  { %v6410_v13 = vpop.f32.mrb[117].mxu1  ;;  %v6416_v60 = vadd.f32 %v9307_v34, %v7987_v18 }
 0x65b   :  { %v6411_v38 = vadd.f32 %v7987_v18, %v6410_v13 }
 0x65d   :  { %9340 = vmatprep.mubr.f32.mxu1 %v6411_v38 }
 0x65e   :  { %9341 = vmatmul.mubr.f32.vlgmr.msra.gmra.mrb[118].mxu1 %v6416_v60 }
 0x65f   :  { %9692 = vmatpush3.bf16.msra.mxu1 %v12639_v6  ;;  %9375 = vmatprep.mubr.msk.f32.mxu1 %vm10273_vm3, %v10274_v52 }
 0x660   :  { %9693 = vmatprep.subr.bf16.mxu1 %v10272_v14 }
 0x663   :  { %9695 = vmatpush3.bf16.msra.mxu1 %v12648_v56 }
 0x664   :  { %9696 = vmatprep.subr.bf16.mxu1 %v10272_v14 }
 0x667   :  { %9698 = vmatpush3.bf16.msra.mxu1 %v12660_v27 }
 0x668   :  { %9699 = vmatprep.subr.bf16.mxu1 %v10272_v14 }
 0x66b   :  { %9701 = vmatpush3.bf16.msra.mxu1 %v12670_v11 }
 0x66c   :  { %9702 = vmatprep.subr.bf16.mxu1 %v10272_v14 }
 0x66f   :  { %9704 = vmatpush3.bf16.msra.mxu1 %v12680_v35 }
 0x670   :  { %9705 = vmatprep.subr.bf16.mxu1 %v10272_v14 }
 0x673   :  { %9707 = vmatpush3.bf16.msra.mxu1 %v12690_v63 }
 0x674   :  { %9708 = vmatprep.subr.bf16.mxu1 %v10272_v14 }
 0x677   :  { %9710 = vmatpush3.bf16.msra.mxu1 %v12700_v46 }
 0x678   :  { %9711 = vmatprep.subr.bf16.mxu1 %v10272_v14 }
 0x67b   :  { %9713 = vmatpush3.bf16.msra.mxu1 %v12710_v24 }
 0x67c   :  { %9714 = vmatprep.subr.bf16.mxu1 %v10272_v14 }
 0x67e   :  { %9376 = vmatmul.mubr.f32.vlgmr.msra.gmra.mrb[120].mxu1 %v10274_v52 }
 0x67f   :  { %9716 = vmatpush3.bf16.msra.mxu1 %v12639_v6  ;;  %9410 = vmatprep.mubr.msk.f32.mxu1 %vm10273_vm3, %v10274_v52 }
 0x680   :  { %9717 = vmatprep.subr.bf16.mxu1 %v10272_v14 }
 0x683   :  { %9719 = vmatpush3.bf16.msra.mxu1 %v12648_v56 }
 0x684   :  { %9720 = vmatprep.subr.bf16.mxu1 %v10272_v14 }
 0x687   :  { %9722 = vmatpush3.bf16.msra.mxu1 %v12660_v27 }
 0x688   :  { %9723 = vmatprep.subr.bf16.mxu1 %v10272_v14 }
 0x68b   :  { %9725 = vmatpush3.bf16.msra.mxu1 %v12670_v11 }
 0x68c   :  { %9726 = vmatprep.subr.bf16.mxu1 %v10272_v14 }
 0x68f   :  { %9728 = vmatpush3.bf16.msra.mxu1 %v12680_v35 }
 0x690   :  { %9729 = vmatprep.subr.bf16.mxu1 %v10272_v14 }
 0x693   :  { %9731 = vmatpush3.bf16.msra.mxu1 %v12690_v63 }
 0x694   :  { %9732 = vmatprep.subr.bf16.mxu1 %v10272_v14 }
 0x697   :  { %9734 = vmatpush3.bf16.msra.mxu1 %v12700_v46 }
 0x698   :  { %9735 = vmatprep.subr.bf16.mxu1 %v10272_v14 }
 0x69b   :  { %9737 = vmatpush3.bf16.msra.mxu1 %v12710_v24 }
 0x69c   :  { %9738 = vmatprep.subr.bf16.mxu1 %v10272_v14 }
 0x731   :  { %v9342_v20 = vpop.f32.mrb[118].mxu1 }
 0x732   :  { %v12737_v48 = vadd.f32 %v9342_v20, %v7990_v58  ;;  %v6508_v31 = vpop.f32.mrb[119].mxu1 }
 0x733   :  { %v12739_v53 = vadd.f32 %v7990_v58, %v6508_v31 }
 0x751   :  { %v6604_v5 = vpop.f32.mrb[120].mxu1 }
 0x752   :  { %v6608_v50 = vadd.f32 %v6604_v5, %v12739_v53  ;;  %v9377_v16 = vpop.f32.mrb[121].mxu1 }
 0x754   :  { %v7991_v10 = vmul.f32 -1.442695, %v6608_v50 }
 0x756   :  { %10180 = vpow2.f32 %v7991_v10 }
 0x757   :  { %10182 = vtanh.f32 %v6608_v50 }
 0x760   :  { %v10181_v57 = vpop.eup %10180 }
 0x761   :  { %v6613_v28 = vadd.f32 1.0, %v10181_v57  ;;  %v10183_v9 = vpop.eup %10182 }
 0x763   :  { %10184 = vrcp.f32 %v6613_v28 }
 0x76d   :  { %v10185_v47 = vpop.eup %10184 }
 0x76e   :  { %v6616_v29 = vsel %vm12742_vm6, %v10183_v9, %v10185_v47 }
 0x76f   :  { %6621 = vrot.lane.b32.xlu1 %v6616_v29, %s10275_s7  ;;  %6617 = vrot.lane.b32.xlu0 %v6616_v29, %s10276_s5 }
 0x773   :  { %6619 = vrot.lane.b32.xlu0 %v6616_v29, %s10277_s21 }
 0x7e1   :  { %v6618_v37 = vpop.permute.xlu0 %6617  ;;  %v6622_v1 = vpop.permute.xlu1 %6621 }
 0x7e2   :  { %v6623_v30 = vmul.f32 0.0, %v6618_v37 }
 0x7e5   :  { %v6620_v49 = vpop.permute.xlu0 %6619 }
 0x7e6   :  { %v6624_v43 = vmul.f32 %v6620_v49, %v6616_v29 }
 0x7e8   :  { %v6625_v39 = vadd.f32 %v6624_v43, %v6623_v30 }
 0x7ea   :  { %10186 = vtanh.f32 %v6625_v39 }
 0x7f4   :  { %v10187_v23 = vpop.eup %10186 }
 0x7f5   :  { %v6627_v17 = vmul.f32 %v10187_v23, %v6622_v1 }
 0x7f7   :  { %9411 = vmatmul.mubr.f32.vlgmr.msra.gmra.mrb[122].mxu1 %v6627_v17 }
 0x7f8   :  { %9740 = vmatpush3.bf16.msra.mxu1 %v12639_v6  ;;  %9445 = vmatprep.mubr.msk.f32.mxu1 %vm10273_vm3, %v10274_v52 }
 0x7f9   :  { %9741 = vmatprep.subr.bf16.mxu1 %v10272_v14 }
 0x7fc   :  { %9743 = vmatpush3.bf16.msra.mxu1 %v12648_v56 }
 0x7fd   :  { %9744 = vmatprep.subr.bf16.mxu1 %v10272_v14 }
 0x800   :  { %9746 = vmatpush3.bf16.msra.mxu1 %v12660_v27 }
 0x801   :  { %9747 = vmatprep.subr.bf16.mxu1 %v10272_v14 }
 0x804   :  { %9749 = vmatpush3.bf16.msra.mxu1 %v12670_v11 }
 0x805   :  { %9750 = vmatprep.subr.bf16.mxu1 %v10272_v14 }
 0x808   :  { %9752 = vmatpush3.bf16.msra.mxu1 %v12680_v35 }
 0x809   :  { %9753 = vmatprep.subr.bf16.mxu1 %v10272_v14 }
 0x80c   :  { %9755 = vmatpush3.bf16.msra.mxu1 %v12690_v63 }
 0x80d   :  { %9756 = vmatprep.subr.bf16.mxu1 %v10272_v14 }
 0x810   :  { %9758 = vmatpush3.bf16.msra.mxu1 %v12700_v46 }
 0x811   :  { %9759 = vmatprep.subr.bf16.mxu1 %v10272_v14 }
 0x814   :  { %9761 = vmatpush3.bf16.msra.mxu1 %v12710_v24 }
 0x815   :  { %9762 = vmatprep.subr.bf16.mxu1 %v10272_v14 }
 0x8ca   :  { %v6694_v8 = vpop.f32.mrb[122].mxu1 }
 0x8cb   :  { %v6699_v33 = vrot.slane %v6694_v8, 6  ;;  %v9412_v44 = vpop.f32.mrb[123].mxu1 }
 0x8cd   :  { %v6701_v54 = vadd.f32 %v6699_v33, %v12739_v53 }
 0x8cf   :  { %v7992_v21 = vmul.f32 -1.442695, %v6701_v54 }
 0x8d1   :  { %10188 = vpow2.f32 %v7992_v21 }
 0x8d2   :  { %10190 = vtanh.f32 %v6701_v54 }
 0x8db   :  { %v10189_v55 = vpop.eup %10188 }
 0x8dc   :  { %v6706_v40 = vadd.f32 1.0, %v10189_v55  ;;  %v10191_v2 = vpop.eup %10190 }
 0x8de   :  { %10192 = vrcp.f32 %v6706_v40 }
 0x8e8   :  { %v10193_v18 = vpop.eup %10192 }
 0x8e9   :  { %v6709_v61 = vsel %vm12742_vm6, %v10191_v2, %v10193_v18 }
 0x8ea   :  { %v6711_v45 = vrot.slane %v6709_v61, 2 }
 0x8ec   :  { %6713 = vrot.lane.b32.xlu0 %v6711_v45, %s10276_s5  ;;  %6715 = vrot.lane.b32.xlu1 %v6711_v45, %s10277_s21 }
 0x8f0   :  { %6717 = vrot.lane.b32.xlu1 %v6711_v45, %s10275_s7 }
 0x95e   :  { %v6716_v34 = vpop.permute.xlu1 %6715  ;;  %v6714_v38 = vpop.permute.xlu0 %6713 }
 0x95f   :  { %v6721_v13 = vrot.slane %v6716_v34, 6  ;;  %v6719_v12 = vmul.f32 %v6714_v38, %v6625_v39 }
 0x961   :  { %v6723_v60 = vmul.f32 %v6721_v13, %v6709_v61 }
 0x962   :  { %v6718_v42 = vpop.permute.xlu1 %6717 }
 0x963   :  { %v6725_v51 = vrot.slane %v6723_v60, 2 }
 0x965   :  { %v6727_v0 = vadd.f32 %v6725_v51, %v6719_v12 }
 0x967   :  { %10194 = vtanh.f32 %v6727_v0 }
 0x971   :  { %v10195_v4 = vpop.eup %10194 }
 0x972   :  { %v6729_v19 = vmul.f32 %v10195_v4, %v6718_v42 }
 0x974   :  { %9446 = vmatmul.mubr.f32.vlgmr.msra.gmra.mrb[124].mxu1 %v6729_v19 }
 0x975   :  { %9764 = vmatpush3.bf16.msra.mxu1 %v12639_v6  ;;  %9480 = vmatprep.mubr.msk.f32.mxu1 %vm10273_vm3, %v10274_v52 }
 0x976   :  { %9765 = vmatprep.subr.bf16.mxu1 %v10272_v14 }
 0x979   :  { %9767 = vmatpush3.bf16.msra.mxu1 %v12648_v56 }
 0x97a   :  { %9768 = vmatprep.subr.bf16.mxu1 %v10272_v14 }
 0x97d   :  { %9770 = vmatpush3.bf16.msra.mxu1 %v12660_v27 }
 0x97e   :  { %9771 = vmatprep.subr.bf16.mxu1 %v10272_v14 }
 0x981   :  { %9773 = vmatpush3.bf16.msra.mxu1 %v12670_v11 }
 0x982   :  { %9774 = vmatprep.subr.bf16.mxu1 %v10272_v14 }
 0x985   :  { %9776 = vmatpush3.bf16.msra.mxu1 %v12680_v35 }
 0x986   :  { %9777 = vmatprep.subr.bf16.mxu1 %v10272_v14 }
 0x989   :  { %9779 = vmatpush3.bf16.msra.mxu1 %v12690_v63 }
 0x98a   :  { %9780 = vmatprep.subr.bf16.mxu1 %v10272_v14 }
 0x98d   :  { %9782 = vmatpush3.bf16.msra.mxu1 %v12700_v46 }
 0x98e   :  { %9783 = vmatprep.subr.bf16.mxu1 %v10272_v14 }
 0x991   :  { %9785 = vmatpush3.bf16.msra.mxu1 %v12710_v24 }
 0x992   :  { %9786 = vmatprep.subr.bf16.mxu1 %v10272_v14 }
 0xa47   :  { %v6796_v7 = vpop.f32.mrb[124].mxu1 }
 0xa48   :  { %v6801_v22 = vrot.slane %v6796_v7, 4  ;;  %v9447_v3 = vpop.f32.mrb[125].mxu1 }
 0xa4a   :  { %v6803_v62 = vadd.f32 %v6801_v22, %v12739_v53 }
 0xa4c   :  { %v7993_v25 = vmul.f32 -1.442695, %v6803_v62 }
 0xa4e   :  { %10196 = vpow2.f32 %v7993_v25 }
 0xa4f   :  { %10198 = vtanh.f32 %v6803_v62 }
 0xa58   :  { %v10197_v26 = vpop.eup %10196 }
 0xa59   :  { %v6808_v15 = vadd.f32 1.0, %v10197_v26  ;;  %v10199_v41 = vpop.eup %10198 }
 0xa5b   :  { %10200 = vrcp.f32 %v6808_v15 }
 0xa65   :  { %v10201_v58 = vpop.eup %10200 }
 0xa66   :  { %v6811_v20 = vsel %vm12742_vm6, %v10199_v41, %v10201_v58 }
 0xa67   :  { %v6813_v31 = vrot.slane %v6811_v20, 4 }
 0xa69   :  { %6815 = vrot.lane.b32.xlu1 %v6813_v31, %s10276_s5  ;;  %6817 = vrot.lane.b32.xlu0 %v6813_v31, %s10277_s21 }
 0xa6d   :  { %6819 = vrot.lane.b32.xlu0 %v6813_v31, %s10275_s7 }
 0xadb   :  { %v6818_v5 = vpop.permute.xlu0 %6817  ;;  %v6816_v16 = vpop.permute.xlu1 %6815 }
 0xadc   :  { %v6823_v50 = vrot.slane %v6818_v5, 4  ;;  %v6821_v57 = vmul.f32 %v6816_v16, %v6727_v0 }
 0xade   :  { %v6825_v10 = vmul.f32 %v6823_v50, %v6811_v20 }
 0xadf   :  { %v6820_v9 = vpop.permute.xlu0 %6819 }
 0xae0   :  { %v6827_v59 = vrot.slane %v6825_v10, 4 }
 0xae2   :  { %v6829_v28 = vadd.f32 %v6827_v59, %v6821_v57 }
 0xae4   :  { %10202 = vtanh.f32 %v6829_v28 }
 0xaee   :  { %v10203_v36 = vpop.eup %10202 }
 0xaef   :  { %v6831_v47 = vmul.f32 %v10203_v36, %v6820_v9 }
 0xaf1   :  { %9481 = vmatmul.mubr.f32.vlgmr.msra.gmra.mrb[126].mxu1 %v6831_v47 }
 0xaf2   :  { %9788 = vmatpush3.bf16.msra.mxu1 %v12639_v6  ;;  %9515 = vmatprep.mubr.msk.f32.mxu1 %vm10273_vm3, %v10274_v52 }
 0xaf3   :  { %9789 = vmatprep.subr.bf16.mxu1 %v10272_v14 }
 0xaf6   :  { %9791 = vmatpush3.bf16.msra.mxu1 %v12648_v56 }
 0xaf7   :  { %9792 = vmatprep.subr.bf16.mxu1 %v10272_v14 }
 0xafa   :  { %9794 = vmatpush3.bf16.msra.mxu1 %v12660_v27 }
 0xafb   :  { %9795 = vmatprep.subr.bf16.mxu1 %v10272_v14 }
 0xafe   :  { %9797 = vmatpush3.bf16.msra.mxu1 %v12670_v11 }
 0xaff   :  { %9798 = vmatprep.subr.bf16.mxu1 %v10272_v14 }
 0xb02   :  { %9800 = vmatpush3.bf16.msra.mxu1 %v12680_v35 }
 0xb03   :  { %9801 = vmatprep.subr.bf16.mxu1 %v10272_v14 }
 0xb06   :  { %9803 = vmatpush3.bf16.msra.mxu1 %v12690_v63 }
 0xb07   :  { %9804 = vmatprep.subr.bf16.mxu1 %v10272_v14 }
 0xb0a   :  { %9806 = vmatpush3.bf16.msra.mxu1 %v12700_v46 }
 0xb0b   :  { %9807 = vmatprep.subr.bf16.mxu1 %v10272_v14 }
 0xb0e   :  { %9809 = vmatpush3.bf16.msra.mxu1 %v12710_v24 }
 0xb0f   :  { %9810 = vmatprep.subr.bf16.mxu1 %v10272_v14 }
 0xbc4   :  { %v6898_v29 = vpop.f32.mrb[126].mxu1 }
 0xbc5   :  { %v6903_v37 = vrot.slane %v6898_v29, 2  ;;  %v9482_v49 = vpop.f32.mrb[127].mxu1 }
 0xbc7   :  { %v6905_v30 = vadd.f32 %v6903_v37, %v12739_v53 }
 0xbc9   :  { %v7994_v43 = vmul.f32 -1.442695, %v6905_v30 }
 0xbcb   :  { %10204 = vpow2.f32 %v7994_v43 }
 0xbcc   :  { %10206 = vtanh.f32 %v6905_v30 }
 0xbd5   :  { %v10205_v39 = vpop.eup %10204 }
 0xbd6   :  { %v6910_v23 = vadd.f32 1.0, %v10205_v39  ;;  %v10207_v1 = vpop.eup %10206 }
 0xbd8   :  { %10208 = vrcp.f32 %v6910_v23 }
 0xbe2   :  { %v10209_v17 = vpop.eup %10208 }
 0xbe3   :  { %v6913_v8 = vsel %vm12742_vm6, %v10207_v1, %v10209_v17 }
 0xbe4   :  { %v6915_v33 = vrot.slane %v6913_v8, 6 }
 0xbe6   :  { %6917 = vrot.lane.b32.xlu0 %v6915_v33, %s10276_s5  ;;  %6919 = vrot.lane.b32.xlu1 %v6915_v33, %s10277_s21 }
 0xbea   :  { %6921 = vrot.lane.b32.xlu1 %v6915_v33, %s10275_s7 }
 0xc58   :  { %v6920_v44 = vpop.permute.xlu1 %6919  ;;  %v6918_v54 = vpop.permute.xlu0 %6917 }
 0xc59   :  { %v6925_v53 = vrot.slane %v6920_v44, 2  ;;  %v6923_v55 = vmul.f32 %v6918_v54, %v6829_v28 }
 0xc5b   :  { %v6927_v21 = vmul.f32 %v6925_v53, %v6913_v8 }
 0xc5c   :  { %v6922_v61 = vpop.permute.xlu1 %6921 }
 0xc5d   :  { %v6929_v40 = vrot.slane %v6927_v21, 6 }
 0xc5f   :  { %v6931_v2 = vadd.f32 %v6929_v40, %v6923_v55 }
 0xc61   :  { %10210 = vtanh.f32 %v6931_v2 }
 0xc6b   :  { %v10211_v18 = vpop.eup %10210 }
 0xc6c   :  { %v6933_v45 = vmul.f32 %v10211_v18, %v6922_v61 }
 0xc6e   :  { %9516 = vmatmul.mubr.f32.vlgmr.msra.gmra.mrb[128].mxu1 %v6933_v45  ;;  %v7330_v45 = vld [vmem:[%s12986_s9] sm:$0xff] }
 0xc6f   :  { %9812 = vmatpush3.bf16.msra.mxu1 %v12639_v6  ;;  %9550 = vmatprep.mubr.msk.f32.mxu1 %vm10273_vm3, %v10274_v52 }
 0xc70   :  { %9813 = vmatprep.subr.bf16.mxu1 %v10272_v14 }
 0xc73   :  { %9815 = vmatpush3.bf16.msra.mxu1 %v12648_v56 }
 0xc74   :  { %9816 = vmatprep.subr.bf16.mxu1 %v10272_v14 }
 0xc77   :  { %9818 = vmatpush3.bf16.msra.mxu1 %v12660_v27 }
 0xc78   :  { %9819 = vmatprep.subr.bf16.mxu1 %v10272_v14 }
 0xc7b   :  { %9821 = vmatpush3.bf16.msra.mxu1 %v12670_v11 }
 0xc7c   :  { %9822 = vmatprep.subr.bf16.mxu1 %v10272_v14 }
 0xc7f   :  { %9824 = vmatpush3.bf16.msra.mxu1 %v12680_v35 }
 0xc80   :  { %9825 = vmatprep.subr.bf16.mxu1 %v10272_v14 }
 0xc83   :  { %9827 = vmatpush3.bf16.msra.mxu1 %v12690_v63 }
 0xc84   :  { %9828 = vmatprep.subr.bf16.mxu1 %v10272_v14 }
 0xc87   :  { %9830 = vmatpush3.bf16.msra.mxu1 %v12700_v46 }
 0xc88   :  { %9831 = vmatprep.subr.bf16.mxu1 %v10272_v14 }
 0xc8b   :  { %9833 = vmatpush3.bf16.msra.mxu1 %v12710_v24 }
 0xc8c   :  { %9834 = vmatprep.subr.bf16.mxu1 %v10272_v14 }
 0xd41   :  { %v7000_v34 = vpop.f32.mrb[128].mxu1 }
 0xd42   :  { %v7004_v13 = vadd.f32 %v7000_v34, %v12737_v48  ;;  %v9517_v38 = vpop.f32.mrb[129].mxu1  ;;  %v7331_v34 = vld [vmem:[%s12986_s9 + $0x8] sm:$0xff] }
 0xd43   :  { %v9883_v38 = vpack.c.bf16 %v7331_v34, %v7330_v45 }
 0xd44   :  { %v7995_v60 = vmul.f32 -1.442695, %v7004_v13 }
 0xd46   :  { %10212 = vpow2.f32 %v7995_v60  ;;  %v7333_v60 = vld [vmem:[%s12986_s9 + $0x18] sm:$0xff] }
 0xd47   :  { %10214 = vtanh.f32 %v7004_v13  ;;  %v7332_v13 = vld [vmem:[%s12986_s9 + $0x10] sm:$0xff] }
 0xd50   :  { %v10213_v12 = vpop.eup %10212 }
 0xd51   :  { %v7009_v51 = vadd.f32 1.0, %v10213_v12  ;;  %v10215_v0 = vpop.eup %10214  ;;  %v9886_v12 = vpack.c.bf16 %v7333_v60, %v7332_v13 }
 0xd53   :  { %10216 = vrcp.f32 %v7009_v51  ;;  %v7335_v51 = vld [vmem:[%s12986_s9 + $0x28] sm:$0xff] }
 0xd5d   :  { %v10217_v4 = vpop.eup %10216 }
 0xd5e   :  { %v7012_v42 = vsel %vm12742_vm6, %v10215_v0, %v10217_v4 }
 0xd5f   :  { %7015 = vrot.lane.b32.xlu1 %v7012_v42, %s10277_s21  ;;  %7013 = vrot.lane.b32.xlu0 %v7012_v42, %s10276_s5 }
 0xd63   :  { %7017 = vrot.lane.b32.xlu0 %v7012_v42, %s10275_s7 }
 0xdd1   :  { %v7016_v19 = vpop.permute.xlu1 %7015  ;;  %v7014_v7 = vpop.permute.xlu0 %7013 }
 0xdd2   :  { %v7020_v22 = vmul.f32 %v7016_v19, %v7012_v42  ;;  %v7019_v3 = vmul.f32 %v7014_v7, %v6931_v2 }
 0xdd4   :  { %v7021_v62 = vadd.f32 %v7020_v22, %v7019_v3 }
 0xdd5   :  { %v7018_v26 = vpop.permute.xlu0 %7017 }
 0xdd6   :  { %10218 = vtanh.f32 %v7021_v62 }
 0xde0   :  { %v10219_v25 = vpop.eup %10218 }
 0xde1   :  { %v7023_v15 = vmul.f32 %v10219_v25, %v7018_v26  ;;  %v7336_v25 = vld [vmem:[%s12986_s9 + $0x30] sm:$0xff]  ;;  %v7337_v26 = vld [vmem:[%s12986_s9 + $0x38] sm:$0xff] }
 0xde3   :  { %9551 = vmatmul.mubr.f32.vlgmr.msra.gmra.mrb[130].mxu1 %v7023_v15  ;;  %v9892_v15 = vpack.c.bf16 %v7337_v26, %v7336_v25 }
 0xde4   :  { %9836 = vmatpush3.bf16.msra.mxu1 %v12639_v6  ;;  %9585 = vmatprep.mubr.msk.f32.mxu1 %vm10273_vm3, %v10274_v52 }
 0xde5   :  { %9837 = vmatprep.subr.bf16.mxu1 %v10272_v14 }
 0xde8   :  { %9839 = vmatpush3.bf16.msra.mxu1 %v12648_v56 }
 0xde9   :  { %9840 = vmatprep.subr.bf16.mxu1 %v10272_v14 }
 0xdec   :  { %9842 = vmatpush3.bf16.msra.mxu1 %v12660_v27 }
 0xded   :  { %9843 = vmatprep.subr.bf16.mxu1 %v10272_v14 }
 0xdf0   :  { %9845 = vmatpush3.bf16.msra.mxu1 %v12670_v11 }
 0xdf1   :  { %9846 = vmatprep.subr.bf16.mxu1 %v10272_v14 }
 0xdf4   :  { %9848 = vmatpush3.bf16.msra.mxu1 %v12680_v35 }
 0xdf5   :  { %9849 = vmatprep.subr.bf16.mxu1 %v10272_v14 }
 0xdf8   :  { %9851 = vmatpush3.bf16.msra.mxu1 %v12690_v63 }
 0xdf9   :  { %9852 = vmatprep.subr.bf16.mxu1 %v10272_v14 }
 0xdfc   :  { %9854 = vmatpush3.bf16.msra.mxu1 %v12700_v46 }
 0xdfd   :  { %9855 = vmatprep.subr.bf16.mxu1 %v10272_v14 }
 0xe00   :  { %9857 = vmatpush3.bf16.msra.mxu1 %v12710_v24 }
 0xe01   :  { %9858 = vmatprep.subr.bf16.mxu1 %v10272_v14 }
 0xeb6   :  { %v7090_v41 = vpop.f32.mrb[130].mxu1 }
 0xeb7   :  { %v7095_v58 = vrot.slane %v7090_v41, 6  ;;  %v9552_v20 = vpop.f32.mrb[131].mxu1  ;;  %v7339_v41 = vld [vmem:[%s12986_s9 + $0x48] sm:$0xff] }
 0xeb8   :  { %v7340_v20 = vld [vmem:[%s12986_s9 + $0x50] sm:$0xff] }
 0xeb9   :  { %v7097_v31 = vadd.f32 %v7095_v58, %v12737_v48 }
 0xebb   :  { %v7996_v5 = vmul.f32 -1.442695, %v7097_v31 }
 0xebd   :  { %10220 = vpow2.f32 %v7996_v5 }
 0xebe   :  { %10222 = vtanh.f32 %v7097_v31  ;;  %v7341_v31 = vld [vmem:[%s12986_s9 + $0x58] sm:$0xff] }
 0xec7   :  { %v10221_v50 = vpop.eup %10220 }
 0xec8   :  { %v7102_v16 = vadd.f32 1.0, %v10221_v50  ;;  %v10223_v10 = vpop.eup %10222  ;;  %v9898_v50 = vpack.c.bf16 %v7341_v31, %v7340_v20 }
 0xeca   :  { %10224 = vrcp.f32 %v7102_v16 }
 0xed4   :  { %v10225_v57 = vpop.eup %10224 }
 0xed5   :  { %v7105_v59 = vsel %vm12742_vm6, %v10223_v10, %v10225_v57 }
 0xed6   :  { %v7107_v28 = vrot.slane %v7105_v59, 2 }
 0xed8   :  { %7109 = vrot.lane.b32.xlu0 %v7107_v28, %s10276_s5  ;;  %7111 = vrot.lane.b32.xlu1 %v7107_v28, %s10277_s21 }
 0xedc   :  { %7113 = vrot.lane.b32.xlu1 %v7107_v28, %s10275_s7  ;;  %v7343_v28 = vld [vmem:[%s12986_s9 + $0x68] sm:$0xff] }
 0xf4a   :  { %v7112_v36 = vpop.permute.xlu1 %7111  ;;  %v7110_v47 = vpop.permute.xlu0 %7109 }
 0xf4b   :  { %v7117_v9 = vrot.slane %v7112_v36, 6  ;;  %v7115_v37 = vmul.f32 %v7110_v47, %v7021_v62 }
 0xf4d   :  { %v7119_v29 = vmul.f32 %v7117_v9, %v7105_v59  ;;  %v7342_v59 = vld [vmem:[%s12986_s9 + $0x60] sm:$0xff]  ;;  %v7345_v9 = vld [vmem:[%s12986_s9 + $0x78] sm:$0xff] }
 0xf4e   :  { %v7114_v39 = vpop.permute.xlu1 %7113  ;;  %v9901_v36 = vpack.c.bf16 %v7343_v28, %v7342_v59  ;;  %v9904_v47 = vpack.c.bf16 %v7345_v9, %v7344_v32 }
 0xf4f   :  { %v7121_v49 = vrot.slane %v7119_v29, 2 }
 0xf51   :  { %v7123_v30 = vadd.f32 %v7121_v49, %v7115_v37 }
 0xf53   :  { %10226 = vtanh.f32 %v7123_v30 }
 0xf5d   :  { %v10227_v43 = vpop.eup %10226 }
 0xf5e   :  { %v7125_v23 = vmul.f32 %v10227_v43, %v7114_v39 }
 0xf60   :  { %9586 = vmatmul.mubr.f32.vlgmr.msra.gmra.mrb[132].mxu1 %v7125_v23 }
 0xf61   :  { %9860 = vmatpush3.bf16.msra.mxu1 %v12639_v6  ;;  %9620 = vmatprep.mubr.msk.f32.mxu1 %vm10273_vm3, %v10274_v52 }
 0xf62   :  { %9861 = vmatprep.subr.bf16.mxu1 %v10272_v14 }
 0xf65   :  { %9863 = vmatpush3.bf16.msra.mxu1 %v12648_v56 }
 0xf66   :  { %9864 = vmatprep.subr.bf16.mxu1 %v10272_v14 }
 0xf69   :  { %9866 = vmatpush3.bf16.msra.mxu1 %v12660_v27 }
 0xf6a   :  { %9867 = vmatprep.subr.bf16.mxu1 %v10272_v14 }
 0xf6d   :  { %9869 = vmatpush3.bf16.msra.mxu1 %v12670_v11 }
 0xf6e   :  { %9870 = vmatprep.subr.bf16.mxu1 %v10272_v14 }
 0xf71   :  { %9872 = vmatpush3.bf16.msra.mxu1 %v12680_v35 }
 0xf72   :  { %9873 = vmatprep.subr.bf16.mxu1 %v10272_v14 }
 0xf75   :  { %9875 = vmatpush3.bf16.msra.mxu1 %v12690_v63 }
 0xf76   :  { %9876 = vmatprep.subr.bf16.mxu1 %v10272_v14 }
 0xf79   :  { %9878 = vmatpush3.bf16.msra.mxu1 %v12700_v46 }
 0xf7a   :  { %9879 = vmatprep.subr.bf16.mxu1 %v10272_v14 }
 0xf7d   :  { %9881 = vmatpush3.bf16.msra.mxu1 %v12710_v24 }
 0xf7e   :  { %9882 = vmatprep.subr.bf16.mxu1 %v10272_v14 }
0x1033   :  { %v7192_v6 = vpop.f32.mrb[132].mxu1 }
0x1034   :  { %v7197_v56 = vrot.slane %v7192_v6, 4  ;;  %v9587_v27 = vpop.f32.mrb[133].mxu1 }
0x1035   :  { %v7999_v27 = vld [vmem:[%s12987_s10] ss:$0 sm:$0xff] }
0x1036   :  { %v7199_v11 = vadd.f32 %v7197_v56, %v12737_v48 }
0x1038   :  { %v7997_v35 = vmul.f32 -1.442695, %v7199_v11 }
0x103a   :  { %10228 = vpow2.f32 %v7997_v35 }
0x103b   :  { %10230 = vtanh.f32 %v7199_v11 }
0x1044   :  { %v10229_v1 = vpop.eup %10228 }
0x1045   :  { %v7204_v17 = vadd.f32 1.0, %v10229_v1  ;;  %v10231_v63 = vpop.eup %10230 }
0x1047   :  { %10232 = vrcp.f32 %v7204_v17 }
0x1051   :  { %v10233_v8 = vpop.eup %10232 }
0x1052   :  { %v7207_v46 = vsel %vm12742_vm6, %v10231_v63, %v10233_v8 }
0x1053   :  { %v7209_v33 = vrot.slane %v7207_v46, 4 }
0x1055   :  { %7211 = vrot.lane.b32.xlu1 %v7209_v33, %s10276_s5  ;;  %7213 = vrot.lane.b32.xlu0 %v7209_v33, %s10277_s21 }
0x1059   :  { %7215 = vrot.lane.b32.xlu0 %v7209_v33, %s10275_s7 }
0x10c7   :  { %v7214_v24 = vpop.permute.xlu0 %7213  ;;  %v7212_v53 = vpop.permute.xlu1 %7211 }
0x10c8   :  { %v7219_v44 = vrot.slane %v7214_v24, 4  ;;  %v7217_v21 = vmul.f32 %v7212_v53, %v7123_v30 }
0x10ca   :  { %v7221_v54 = vmul.f32 %v7219_v44, %v7207_v46 }
0x10cb   :  { %v7216_v18 = vpop.permute.xlu0 %7215 }
0x10cc   :  { %v7223_v55 = vrot.slane %v7221_v54, 4 }
0x10ce   :  { %v12895_v40 = vadd.f32 %v7223_v55, %v7217_v21 }
0x10d0   :  { %10234 = vtanh.f32 %v12895_v40 }
0x10da   :  { %v10235_v2 = vpop.eup %10234 }
0x10db   :  { %v7227_v61 = vmul.f32 %v10235_v2, %v7216_v18 }
0x10dd   :  { %9621 = vmatmul.mubr.f32.vlgmr.msra.gmra.mrb[134].mxu1 %v7227_v61 }
0x10de   :  { %9655 = vmatprep.mubr.msk.f32.mxu1 %vm10273_vm3, %v10274_v52  ;;  %9884 = vmatpush3.bf16.msra.mxu1 %v9883_v38  ;;  %v7334_v52 = vld [vmem:[%s12986_s9 + $0x20] sm:$0xff] }
0x10df   :  { %9885 = vmatprep.subr.bf16.mxu1 %v10272_v14  ;;  %v9889_v0 = vpack.c.bf16 %v7335_v51, %v7334_v52 }
0x10e2   :  { %9887 = vmatpush3.bf16.msra.mxu1 %v9886_v12 }
0x10e3   :  { %9888 = vmatprep.subr.bf16.mxu1 %v10272_v14 }
0x10e6   :  { %9890 = vmatpush3.bf16.msra.mxu1 %v9889_v0 }
0x10e7   :  { %9891 = vmatprep.subr.bf16.mxu1 %v10272_v14 }
0x10ea   :  { %9893 = vmatpush3.bf16.msra.mxu1 %v9892_v15 }
0x10eb   :  { %9894 = vmatprep.subr.bf16.mxu1 %v10272_v14 }
0x11b0   :  { %v7294_v4 = vpop.f32.mrb[134].mxu1 }
0x11b1   :  { %v7299_v42 = vrot.slane %v7294_v4, 2  ;;  %v9622_v19 = vpop.f32.mrb[135].mxu1 }
0x11b3   :  { %v7301_v7 = vadd.f32 %v7299_v42, %v12737_v48  ;;  %v7338_v48 = vld [vmem:[%s12986_s9 + $0x40] sm:$0xff]  ;;  %s10278_s9 = smov [#allocation2]  }
0x11b4   :  { %v9895_v58 = vpack.c.bf16 %v7339_v41, %v7338_v48 }
0x11b5   :  { %v7998_v22 = vmul.f32 -1.442695, %v7301_v7 }
0x11b6   :  { %9896 = vmatpush3.bf16.msra.mxu1 %v9895_v58 }
0x11b7   :  { %10236 = vpow2.f32 %v7998_v22  ;;  %9897 = vmatprep.subr.bf16.mxu1 %v10272_v14 }
0x11b8   :  { %10238 = vtanh.f32 %v7301_v7 }
0x11ba   :  { %9899 = vmatpush3.bf16.msra.mxu1 %v9898_v50 }
0x11bb   :  { %9900 = vmatprep.subr.bf16.mxu1 %v10272_v14 }
0x11be   :  { %9902 = vmatpush3.bf16.msra.mxu1 %v9901_v36 }
0x11bf   :  { %9903 = vmatprep.subr.bf16.mxu1 %v10272_v14 }
0x11c1   :  { %v10237_v3 = vpop.eup %10236 }
0x11c2   :  { %v7306_v62 = vadd.f32 1.0, %v10237_v3  ;;  %v10239_v5 = vpop.eup %10238  ;;  %9905 = vmatpush3.bf16.msra.mxu1 %v9904_v47 }
0x11c4   :  { %10240 = vrcp.f32 %v7306_v62 }
0x11ce   :  { %v10241_v16 = vpop.eup %10240 }
0x11cf   :  { %v7309_v10 = vsel %vm12742_vm6, %v10239_v5, %v10241_v16 }
0x11d0   :  { %v7311_v57 = vrot.slane %v7309_v10, 6 }
0x11d2   :  { %7313 = vrot.lane.b32.xlu0 %v7311_v57, %s10276_s5  ;;  %7315 = vrot.lane.b32.xlu1 %v7311_v57, %s10277_s21 }
0x11d6   :  { %7317 = vrot.lane.b32.xlu1 %v7311_v57, %s10275_s7  ;;  %s7431_s7 = sshll.u32 %s10278_s9, 4  ;;  %s7432_s7 = int_to_ptr.vmem [resolvable:$true] %s7431_s7 }
0x11d7   :  { %s10248_s1 = scalar_lea.vmem %s7432_s7, 32  ;;  %p10253_p1 = scmp.lt.s32.totalorder %s7432_s7, %s7432_s7 }
0x11d8   :  { %p10249_p0 = scmp.ne.s32.totalorder %s7432_s7, %s10248_s1  ;;  %p10254_p2 = scmp.lt.s32.totalorder %s10248_s1, %s10248_s1 }
0x11da   :  { %p10255_p3 = por %p10254_p2, %p10253_p1 }
0x11dc   :  { %p10256_p4 = pnand %p10255_p3, %p10249_p0 }
0x1244   :  { %v7316_v29 = vpop.permute.xlu1 %7315  ;;  %v7314_v49 = vpop.permute.xlu0 %7313 }
0x1245   :  { %v7321_v37 = vrot.slane %v7316_v29, 2  ;;  %v7319_v43 = vmul.f32 %v7314_v49, %v12895_v40 }
0x1247   :  { %v7323_v30 = vmul.f32 %v7321_v37, %v7309_v10 }
0x1248   :  { %v7318_v6 = vpop.permute.xlu1 %7317 }
0x1249   :  { %v7325_v39 = vrot.slane %v7323_v30, 6 }
0x124b   :  { %v7327_v14 = vadd.f32 %v7325_v39, %v7319_v43 }
0x124d   :  { %10242 = vtanh.f32 %v7327_v14 }
0x1257   :  { %v10243_v23 = vpop.eup %10242 }
0x1258   :  { %v7329_v56 = vmul.f32 %v10243_v23, %v7318_v6 }
0x125a   :  { %9656 = vmatmul.mubr.f32.vlgmr.msra.gmra.mrb[136].mxu1 %v7329_v56 }
0x132d   :  { %v7419_v11 = vpop.f32.mrb[136].mxu1 }
0x132e   :  { %v7420_v35 = vadd.f32 %v7999_v27, %v7419_v11  ;;  %v9657_v1 = vpop.f32.mrb[137].mxu1 }
0x1330   :  { %7424 = vst.msk [vmem:[#allocation2] sm:$0x3] %vm7423_vm7, %v7420_v35 }
0x1331   :  { %10259 = shalt.err (!%p10256_p4)
}
0x1332   :  { %s10260_s29 = scalar_lea.hbm %s12988_s11, 32 }
0x1333   :  { %p10261_p5 = scmp.ne.s32.totalorder %s12988_s11, %s10260_s29  ;;  %p10264_p6 = scmp.lt.u32.totalorder %s10260_s29, %s12988_s11 }
0x1335   :  { %p10266_p7 = pnand %p10264_p6, %p10261_p5 }
0x1337   :  { %10269 = shalt.err (!%p10266_p7)
}
0x1338   :  { %7434 = dma.vmem_to_hbm [thread:$0]  %s7432_s7, 32, %s12988_s11, [#allocation3]  }
0x1339   :  { %10270 = dma.done.wait [#allocation3], 32  }
0x133a   :  { %10271 = vsyncadd [#allocation3], 4294967264 }
0x133b   :  { %7438 = vsyncpa [#allocation3], 1 }

</bundles_post_ra>
